<compile_context>
chip_gen: v6e
topology: v6e:2x2x1
jax: 0.10.0
libtpu: 0.0.40
codegen_flags: <defaults>
</compile_context>

<pallas_src>
import math

import jax
import jax.numpy as jnp
from jax.experimental import pallas as pl
from jax.experimental.pallas import tpu as pltpu

NEG_SLOPE = 0.01                      # nn.LeakyReLU() default
HIGHEST = jax.lax.Precision.HIGHEST   # pure-JAX reference only


def _round8(v):
    return ((v + 7) // 8) * 8


# --------------------------------------------------------------------------
# Pallas kernels (shape constants / tap offsets baked in via closures)
# --------------------------------------------------------------------------

def _make_conv_bn_kernel(offsets, cin, r_out):
    """eval-BN + LeakyReLU prologue (applied ONCE per input element), then a
    tap-accumulated matmul over statically sliced row windows of the
    flattened zero-padded input.  `mask` zeroes the activated value at
    padding / garbage positions -> exact zero-padding semantics."""
    def kernel(xp_ref, mask_ref, scale_ref, shift_ref, w_ref, b_ref, o_ref):
        x = xp_ref[0].astype(jnp.float32)                        # (Rin, Cin)
        y = x * scale_ref[...] + shift_ref[...]
        y = jnp.where(y >= 0.0, y, NEG_SLOPE * y)
        y = y * mask_ref[...]                                    # zero pad/garbage
        acc = None
        for t, off in enumerate(offsets):
            lhs = y[off:off + r_out, :].astype(jnp.bfloat16)     # slice in f32, dot in bf16
            d = jnp.dot(lhs, w_ref[t * cin:(t + 1) * cin, :],
                        preferred_element_type=jnp.float32)
            acc = d if acc is None else acc + d
        o_ref[0] = (acc + b_ref[...]).astype(o_ref.dtype)
    return kernel


def _make_conv_kernel(offsets, cin, r_out):
    """Tap-accumulated matmul without BN/activation (shortcut ConvTranspose)."""
    def kernel(xp_ref, w_ref, b_ref, o_ref):
        x = xp_ref[0].astype(jnp.float32)
        acc = None
        for t, off in enumerate(offsets):
            lhs = x[off:off + r_out, :].astype(jnp.bfloat16)
            d = jnp.dot(lhs, w_ref[t * cin:(t + 1) * cin, :],
                        preferred_element_type=jnp.float32)
            acc = d if acc is None else acc + d
        o_ref[0] = (acc + b_ref[...]).astype(o_ref.dtype)
    return kernel


def _make_ca_kernel(cout, n_valid):
    """ChannelAttention on the phase-major conv2 output: masked global
    avg/max pool, the two 1x1 FCs, sigmoid gate, plus the channel-wise
    mean/max of the gated tensor (SpatialAttention inputs).  Only the (1, C)
    gate and the tiny (R, 8) stats are written -- the gated (R, 4C) tensor
    never touches HBM."""
    def kernel(c2_ref, vmask_ref, w1_ref, w2_ref, gate_ref, stats_ref):
        x = c2_ref[0].astype(jnp.float32)                        # (R, 4*Cout)
        m = vmask_ref[...]                                       # (R, 1)
        csum = jnp.sum(x * m, axis=0, keepdims=True)             # (1, 4*Cout)
        cmax = jnp.max(jnp.where(m > 0.0, x, jnp.float32(-1e30)),
                       axis=0, keepdims=True)
        c = cout
        avg = (csum[:, 0:c] + csum[:, c:2 * c] +
               csum[:, 2 * c:3 * c] + csum[:, 3 * c:4 * c]) / (4.0 * n_valid)
        mx = jnp.maximum(jnp.maximum(cmax[:, 0:c], cmax[:, c:2 * c]),
                         jnp.maximum(cmax[:, 2 * c:3 * c], cmax[:, 3 * c:4 * c]))

        def fc(v):
            h = jnp.maximum(
                jnp.dot(v, w1_ref[...], preferred_element_type=jnp.float32), 0.0)
            return jnp.dot(h, w2_ref[...], preferred_element_type=jnp.float32)

        gate = 1.0 / (1.0 + jnp.exp(-(fc(avg) + fc(mx))))        # (1, Cout)
        gate_ref[0] = gate
        gated = [x[:, p * c:(p + 1) * c] * gate for p in range(4)]
        stats = ([jnp.mean(g, axis=1, keepdims=True) for g in gated] +
                 [jnp.max(g, axis=1, keepdims=True) for g in gated])
        stats_ref[0] = jnp.concatenate(stats, axis=1)            # (R, 8)
    return kernel


def _final_kernel(sc_ref, wsa_ref, e_ref, gate_ref, c2_ref, sh_ref, o_ref):
    """Fused SpatialAttention 7x7 conv (MXU dot over the 128-padded tap axis),
    sigmoid, ChannelAttention gate apply and residual add, in the lane-dense
    phase-major (R, 4*Cout) layout."""
    att = jnp.dot(sc_ref[0], wsa_ref[...],
                  preferred_element_type=jnp.float32)            # (R, 4)
    sa = 1.0 / (1.0 + jnp.exp(-att))
    sa_full = jnp.dot(sa, e_ref[...],
                      preferred_element_type=jnp.float32)        # (R, 4*Cout)
    out = sa_full * (gate_ref[0] * c2_ref[0].astype(jnp.float32)) \
        + sh_ref[0].astype(jnp.float32)
    o_ref[0] = out


# --------------------------------------------------------------------------
# pallas_call helper: grid over batch, per-batch full blocks
# --------------------------------------------------------------------------

def _per_batch_call(kernel, args, out_shapes, n_batch):
    """Batched operands get (1, ...) blocks indexed by the batch grid axis,
    shared operands get full-array blocks.  vmem_limit_bytes is derived from
    the actual block footprint; the batch axis is 'parallel' (uses both v7x
    TensorCores when N >= 2)."""
    arrays, in_specs, nbytes = [], [], 0
    for a, batched in args:
        arrays.append(a)
        if batched:
            blk = (1,) + tuple(a.shape[1:])
            in_specs.append(pl.BlockSpec(
                blk, lambda b, nd=a.ndim: (b,) + (0,) * (nd - 1)))
        else:
            blk = tuple(a.shape)
            in_specs.append(pl.BlockSpec(
                blk, lambda b, nd=a.ndim: (0,) * nd))
        nbytes += math.prod(blk) * a.dtype.itemsize
    out_specs = []
    for s in out_shapes:
        blk = (1,) + tuple(s.shape[1:])
        out_specs.append(pl.BlockSpec(
            blk, lambda b, nd=len(s.shape): (b,) + (0,) * (nd - 1)))
        nbytes += math.prod(blk) * s.dtype.itemsize
    vmem = int(min(100 << 20, max(32 << 20, 2 * nbytes + (4 << 20))))
    multi = len(out_shapes) > 1
    return pl.pallas_call(
        kernel,
        out_shape=tuple(out_shapes) if multi else out_shapes[0],
        grid=(n_batch,),
        in_specs=in_specs,
        out_specs=tuple(out_specs) if multi else out_specs[0],
        compiler_params=pltpu.CompilerParams(
            dimension_semantics=("parallel",),
            vmem_limit_bytes=vmem),
    )(*arrays)


# --------------------------------------------------------------------------
# Weight rearrangement (host-side, tiny)
# --------------------------------------------------------------------------

def conv_weight_folded(w_oihw):
    """PyTorch Conv2d weight (O, I, kh, kw) -> (kh*kw*I, O), tap-major."""
    cout, cin, k, _ = w_oihw.shape
    return jnp.transpose(w_oihw, (2, 3, 1, 0)).reshape(k * k * cin, cout)


def convT_phase_weights(w_iohw):
    """ConvTranspose2d(3x3, stride 2, pad 1, out_pad 1) weight (I, O, 3, 3) ->
    the (4*I, 4*O) matrix of the 4-phase decomposition.  Tap t = 2*di + dj
    uses x[i+di, j+dj]; phase p = 2*ph + pw produces out[2i+ph, 2j+pw]."""
    cin, cout, _, _ = w_iohw.shape
    wf = w_iohw[:, :, ::-1, ::-1]                    # flipped kernel
    z = jnp.zeros((cin, cout), w_iohw.dtype)
    g = lambda kh, kw: wf[:, :, kh, kw]
    tbl = {
        (0, 0): g(1, 1), (0, 1): g(1, 0), (0, 2): g(0, 1), (0, 3): g(0, 0),
        (1, 1): g(1, 2), (1, 3): g(0, 2),
        (2, 2): g(2, 1), (2, 3): g(2, 0),
        (3, 3): g(2, 2),
    }
    rows = [jnp.concatenate([tbl.get((t, p), z) for p in range(4)], axis=1)
            for t in range(4)]
    return jnp.concatenate(rows, axis=0)             # (4*Cin, 4*Cout)


# --------------------------------------------------------------------------
# ResBlockDecoder forward (NCHW in / NCHW out, like PyTorch)
# --------------------------------------------------------------------------

def resblock_decoder_forward(x_nchw, p):
    eps = 1e-5
    x = jnp.transpose(x_nchw, (0, 2, 3, 1)).astype(jnp.float32)   # NHWC
    n, h, w, cin = x.shape
    hidden = p["Wc1"].shape[0]
    cout = p["Wc2"].shape[1]
    wp = w + 2                      # shared padded row width of all flat grids
    r_out = h * wp                  # conv output rows (garbage at cols >= w)
    ho, wo = 2 * h, 2 * w

    # ---- BN affine folds (eval mode) ----
    scale1 = (p["g1"] / jnp.sqrt(p["rv1"] + eps))[None]
    shift1 = (p["b1"] - p["rm1"] * p["g1"] / jnp.sqrt(p["rv1"] + eps))[None]
    scale2 = (p["g2"] / jnp.sqrt(p["rv2"] + eps))[None]
    shift2 = (p["b2"] - p["rm2"] * p["g2"] / jnp.sqrt(p["rv2"] + eps))[None]

    # ---- validity masks (exact zero-padding after BN + LeakyReLU) ----
    rin1 = _round8((h + 2) * wp + 2)          # conv1 input rows (3x3 taps)
    rin2 = _round8((h + 1) * wp + 1)          # convT input rows (2x2 taps)

    def make_mask(rows, valid_fn):
        idx = jnp.arange(rows)
        return valid_fn(idx // wp, idx % wp).astype(jnp.float32)[:, None]

    mask1 = make_mask(rin1, lambda i, j: (i >= 1) & (i <= h) & (j >= 1) & (j <= w))
    mask2 = make_mask(rin2, lambda i, j: (i < h) & (j < w))
    vmask = make_mask(r_out, lambda i, j: j < w)

    # ---- weights / biases for the kernels (bf16 for MXU streaming) ----
    w1 = conv_weight_folded(p["Wc1"]).astype(jnp.bfloat16)          # (9*Cin, hid)
    b1 = p["bc1"][None]
    wp2 = convT_phase_weights(p["Wc2"]).astype(jnp.bfloat16)        # (4*hid, 4*Cout)
    b2 = jnp.tile(p["bc2"], 4)[None]
    wbp = convT_phase_weights(p["Wbp"]).astype(jnp.bfloat16)        # (4*Cin, 4*Cout)
    bbp = jnp.tile(p["bbp"], 4)[None]
    w1m = p["Wca1"][:, :, 0, 0].T                                    # (Cout, Cr)
    w2m = p["Wca2"][:, :, 0, 0].T                                    # (Cr, Cout)
    wsa128 = jnp.pad(conv_weight_folded(p["Wsa"]), ((0, 30), (0, 0)))   # (128, 1)
    wsa4 = jnp.kron(jnp.eye(4, dtype=jnp.float32), wsa128).astype(jnp.bfloat16)
    ephase = jnp.kron(jnp.eye(4, dtype=jnp.float32),
                      jnp.ones((1, cout), jnp.float32)).astype(jnp.bfloat16)

    # ---- conv1: BN1 + LeakyReLU + 3x3 conv (in-kernel flattened-row taps) ----
    xp1 = jnp.pad(x, ((0, 0), (1, 1), (1, 1), (0, 0))).reshape(n, (h + 2) * wp, cin)
    xp1 = jnp.pad(xp1, ((0, 0), (0, rin1 - (h + 2) * wp), (0, 0))).astype(jnp.bfloat16)
    offs1 = [kh * wp + kw for kh in range(3) for kw in range(3)]
    c1 = _per_batch_call(
        _make_conv_bn_kernel(offs1, cin, r_out),
        [(xp1, True), (mask1, False), (scale1, False), (shift1, False),
         (w1, False), (b1, False)],
        [jax.ShapeDtypeStruct((n, r_out, hidden), jnp.bfloat16)], n)

    # ---- conv2: BN2 + LeakyReLU + phase-decomposed ConvT(3x3, s=2) ----
    c1p = jnp.pad(c1, ((0, 0), (0, rin2 - r_out), (0, 0)))
    offsT = [0, 1, wp, wp + 1]
    c2 = _per_batch_call(
        _make_conv_bn_kernel(offsT, hidden, r_out),
        [(c1p, True), (mask2, False), (scale2, False), (shift2, False),
         (wp2, False), (b2, False)],
        [jax.ShapeDtypeStruct((n, r_out, 4 * cout), jnp.bfloat16)], n)

    # ---- shortcut: phase-decomposed ConvT on x (zero pad, no BN) ----
    xs = jnp.pad(x, ((0, 0), (0, 0), (0, 2), (0, 0))).reshape(n, r_out, cin)
    xs = jnp.pad(xs, ((0, 0), (0, rin2 - r_out), (0, 0))).astype(jnp.bfloat16)
    short = _per_batch_call(
        _make_conv_kernel(offsT, cin, r_out),
        [(xs, True), (wbp, False), (bbp, False)],
        [jax.ShapeDtypeStruct((n, r_out, 4 * cout), jnp.bfloat16)], n)

    # ---- ChannelAttention gate + channel-wise mean/max stats (fused) ----
    gate, stats = _per_batch_call(
        _make_ca_kernel(cout, h * w),
        [(c2, True), (vmask, False), (w1m, False), (w2m, False)],
        [jax.ShapeDtypeStruct((n, 1, cout), jnp.float32),
         jax.ShapeDtypeStruct((n, r_out, 8), jnp.float32)], n)

    # ---- SpatialAttention 7x7 taps on the tiny 2-channel stats map (XLA) ----
    st = stats.reshape(n, h, wp, 8)[:, :, :w, :]                     # (n,h,w,8)

    def interleave(a):                                               # (n,h,w,4) -> (n,ho,wo)
        return a.reshape(n, h, w, 2, 2).transpose(0, 1, 3, 2, 4).reshape(n, ho, wo)

    simg = jnp.stack([interleave(st[..., 0:4]), interleave(st[..., 4:8])], axis=-1)
    simg = jnp.pad(simg, ((0, 0), (3, 3), (3, 3), (0, 0)))           # (n,ho+6,wo+6,2)
    cols = [simg[:, kh:kh + ho, kw:kw + wo, :] for kh in range(7) for kw in range(7)]
    sc = jnp.concatenate(cols, axis=-1)                              # (n,ho,wo,98)
    sc = jnp.pad(sc, ((0, 0), (0, 0), (0, 0), (0, 30)))              # 98 -> 128 (MXU)
    sc = sc.reshape(n, h, 2, w, 2, 128).transpose(0, 1, 3, 2, 4, 5).reshape(n, h, w, 512)
    sc = jnp.pad(sc, ((0, 0), (0, 0), (0, 2), (0, 0)))               # garbage cols j>=w
    scols = sc.reshape(n, r_out, 512).astype(jnp.bfloat16)

    gate4 = jnp.tile(gate, (1, 1, 4))                                # (n,1,4*Cout)

    # ---- fused: SA conv + sigmoid + CA gate + residual (phase-major) ----
    out_pm = _per_batch_call(
        _final_kernel,
        [(scols, True), (wsa4, False), (ephase, False), (gate4, True),
         (c2, True), (short, True)],
        [jax.ShapeDtypeStruct((n, r_out, 4 * cout), jnp.float32)], n)

    # ---- single epilogue relayout: drop garbage cols, interleave, NCHW ----
    out = out_pm.reshape(n, h, wp, 2, 2, cout)[:, :, :w]             # (n,i,j,ph,pw,c)
    out = out.transpose(0, 5, 1, 3, 2, 4).reshape(n, cout, ho, wo)
    return out


# --------------------------------------------------------------------------
# Pure-JAX reference (for correctness check)
# --------------------------------------------------------------------------

def reference_forward(x_nchw, p):
    eps = 1e-5
    x = jnp.transpose(x_nchw, (0, 2, 3, 1)).astype(jnp.float32)

    def bn(v, g, b, rm, rv):
        return (v - rm) / jnp.sqrt(rv + eps) * g + b

    def lrelu(v):
        return jnp.where(v >= 0.0, v, NEG_SLOPE * v)

    def conv(v, w_oihw, bias, pad):
        rhs = jnp.transpose(w_oihw, (2, 3, 1, 0))
        o = jax.lax.conv_general_dilated(
            v, rhs, (1, 1), [(pad, pad), (pad, pad)],
            dimension_numbers=("NHWC", "HWIO", "NHWC"), precision=HIGHEST)
        return o if bias is None else o + bias

    def convT(v, w_iohw, bias):
        rhs = jnp.transpose(w_iohw[:, :, ::-1, ::-1], (2, 3, 0, 1))
        o = jax.lax.conv_general_dilated(
            v, rhs, (1, 1), [(1, 2), (1, 2)], lhs_dilation=(2, 2),
            dimension_numbers=("NHWC", "HWIO", "NHWC"), precision=HIGHEST)
        return o + bias

    y = lrelu(bn(x, p["g1"], p["b1"], p["rm1"], p["rv1"]))
    y = conv(y, p["Wc1"], p["bc1"], 1)
    y = lrelu(bn(y, p["g2"], p["b2"], p["rm2"], p["rv2"]))
    y = convT(y, p["Wc2"], p["bc2"])

    avg = jnp.mean(y, axis=(1, 2))
    mx = jnp.max(y, axis=(1, 2))
    w1m = p["Wca1"][:, :, 0, 0].T
    w2m = p["Wca2"][:, :, 0, 0].T

    def fc(v):
        h = jnp.maximum(jnp.dot(v, w1m, precision=HIGHEST), 0.0)
        return jnp.dot(h, w2m, precision=HIGHEST)

    gate = jax.nn.sigmoid(fc(avg) + fc(mx))[:, None, None, :]
    y = gate * y

    st = jnp.concatenate([jnp.mean(y, axis=-1, keepdims=True),
                          jnp.max(y, axis=-1, keepdims=True)], axis=-1)
    att = conv(st, p["Wsa"], None, 3)
    y = jax.nn.sigmoid(att) * y

    short = convT(x, p["Wbp"], p["bbp"])
    out = y + short
    return jnp.transpose(out, (0, 3, 1, 2))


# --------------------------------------------------------------------------
# Deterministic parameter init (shapes from ResBlockDecoder.__init__)
# --------------------------------------------------------------------------

def init_params(key, cin, hidden, cout, ratio=16):
    ks = jax.random.split(key, 17)
    n = lambda k, shape, s=0.1: s * jax.random.normal(k, shape, jnp.float32)
    cr = cout // ratio
    return dict(
        g1=1.0 + n(ks[0], (cin,)), b1=n(ks[1], (cin,)),
        rm1=n(ks[2], (cin,)),
        rv1=1.0 + 0.1 * jnp.abs(jax.random.normal(ks[3], (cin,))),
        Wc1=n(ks[4], (hidden, cin, 3, 3)), bc1=n(ks[5], (hidden,)),
        g2=1.0 + n(ks[6], (hidden,)), b2=n(ks[7], (hidden,)),
        rm2=n(ks[8], (hidden,)),
        rv2=1.0 + 0.1 * jnp.abs(jax.random.normal(ks[9], (hidden,))),
        Wc2=n(ks[10], (hidden, cout, 3, 3)), bc2=n(ks[11], (cout,)),
        Wbp=n(ks[12], (cin, cout, 3, 3)), bbp=n(ks[13], (cout,)),
        Wca1=n(ks[14], (cr, cout, 1, 1)), Wca2=n(ks[15], (cout, cr, 1, 1)),
        Wsa=n(ks[16], (1, 2, 7, 7)),
    )


if __name__ == "__main__":
    N, Cin, H, W = 2, 8, 16, 16
    hidden, Cout = 16, 16   # hidden_nc defaults to output_nc

    key = jax.random.PRNGKey(0)
    kx, kp = jax.random.split(key)
    x = jax.random.normal(kx, (N, Cin, H, W), jnp.float32)
    params = init_params(kp, Cin, Hidden := hidden, Cout)

    out = jax.block_until_ready(resblock_decoder_forward(x, params))
    ref = reference_forward(x, params)

    assert out.shape == (N, Cout, 2 * H, 2 * W), out.shape
    # Tolerance: streamed activations / weights are stored & fed to the MXU in
    # bf16 (f32 accumulation), whereas the reference runs at HIGHEST precision.
    if not bool(jnp.allclose(out, ref, rtol=2e-2, atol=2e-2)):
        raise AssertionError(
            f"mismatch vs reference, max abs err = "
            f"{float(jnp.max(jnp.abs(out - ref)))}")
    print("KERNEL_OK")
</pallas_src>

<mosaic_0001>
module attributes {stable_mosaic.version = 11 : i64} {
  func.func @kernel(%arg0: i32, %arg1: memref<1x328x8xbf16, #tpu.memory_space<vmem>>, %arg2: memref<328x1xf32, #tpu.memory_space<vmem>>, %arg3: memref<1x8xf32, #tpu.memory_space<vmem>>, %arg4: memref<1x8xf32, #tpu.memory_space<vmem>>, %arg5: memref<72x16xbf16, #tpu.memory_space<vmem>>, %arg6: memref<1x16xf32, #tpu.memory_space<vmem>>, %arg7: memref<1x288x16xbf16, #tpu.memory_space<vmem>>) attributes {dimension_semantics = [#tpu.dimension_semantics<parallel>], iteration_bounds = array<i64: 2>, scalar_prefetch = 0 : i64, scratch_operands = 0 : i64, tpu.core_type = #tpu.core_type<tc>, window_params = [{transform_indices = @transform_0, window_bounds = array<i64: 1, 328, 8>}, {pipeline_mode = #tpu.pipeline_mode<synchronous>, transform_indices = @transform_1, window_bounds = array<i64: 328, 1>}, {pipeline_mode = #tpu.pipeline_mode<synchronous>, transform_indices = @transform_2, window_bounds = array<i64: 1, 8>}, {pipeline_mode = #tpu.pipeline_mode<synchronous>, transform_indices = @transform_3, window_bounds = array<i64: 1, 8>}, {pipeline_mode = #tpu.pipeline_mode<synchronous>, transform_indices = @transform_4, window_bounds = array<i64: 72, 16>}, {pipeline_mode = #tpu.pipeline_mode<synchronous>, transform_indices = @transform_5, window_bounds = array<i64: 1, 16>}, {transform_indices = @transform_6, window_bounds = array<i64: 1, 288, 16>}]} {
    %c0 = arith.constant 0 : index
    %c0_0 = arith.constant 0 : index
    %c0_1 = arith.constant 0 : index
    %0 = vector.load %arg1[%c0, %c0_0, %c0_1] : memref<1x328x8xbf16, #tpu.memory_space<vmem>>, vector<1x328x8xbf16>
    %1 = vector.shape_cast %0 : vector<1x328x8xbf16> to vector<328x8xbf16>
    %2 = arith.extf %1 : vector<328x8xbf16> to vector<328x8xf32>
    %c0_2 = arith.constant 0 : index
    %c0_3 = arith.constant 0 : index
    %3 = vector.load %arg3[%c0_2, %c0_3] : memref<1x8xf32, #tpu.memory_space<vmem>>, vector<1x8xf32>
    %4 = vector.broadcast %3 : vector<1x8xf32> to vector<328x8xf32>
    %5 = arith.mulf %2, %4 : vector<328x8xf32>
    %c0_4 = arith.constant 0 : index
    %c0_5 = arith.constant 0 : index
    %6 = vector.load %arg4[%c0_4, %c0_5] : memref<1x8xf32, #tpu.memory_space<vmem>>, vector<1x8xf32>
    %7 = vector.broadcast %6 : vector<1x8xf32> to vector<328x8xf32>
    %8 = arith.addf %5, %7 : vector<328x8xf32>
    %cst = arith.constant 0.000000e+00 : f32
    %9 = vector.broadcast %cst : f32 to vector<328x8xf32>
    %10 = arith.cmpf oge, %8, %9 : vector<328x8xf32>
    %cst_6 = arith.constant 0.00999999977 : f32
    %11 = vector.broadcast %cst_6 : f32 to vector<328x8xf32>
    %12 = arith.mulf %11, %8 : vector<328x8xf32>
    %13 = arith.select %10, %8, %12 : vector<328x8xi1>, vector<328x8xf32>
    %c0_7 = arith.constant 0 : index
    %c0_8 = arith.constant 0 : index
    %14 = vector.load %arg2[%c0_7, %c0_8] : memref<328x1xf32, #tpu.memory_space<vmem>>, vector<328x1xf32>
    %15 = vector.broadcast %14 : vector<328x1xf32> to vector<328x8xf32>
    %16 = arith.mulf %13, %15 : vector<328x8xf32>
    %17 = vector.extract_strided_slice %16 {offsets = [0, 0], sizes = [288, 8], strides = [1, 1]} : vector<328x8xf32> to vector<288x8xf32>
    %18 = arith.truncf %17 : vector<288x8xf32> to vector<288x8xbf16>
    %c0_9 = arith.constant 0 : index
    %c0_10 = arith.constant 0 : index
    %19 = vector.load %arg5[%c0_9, %c0_10] : memref<72x16xbf16, #tpu.memory_space<vmem>>, vector<8x16xbf16>
    %cst_11 = arith.constant dense<0.000000e+00> : vector<288x16xf32>
    %20 = tpu.matmul %18, %19, %cst_11 {dimension_numbers = #tpu.dot_dimension_numbers<[1], [0], [0], [1], [0, 0, 1, 1], [], []>} : vector<288x8xbf16>, vector<8x16xbf16>, vector<288x16xf32> -> vector<288x16xf32>
    %21 = vector.extract_strided_slice %16 {offsets = [1, 0], sizes = [288, 8], strides = [1, 1]} : vector<328x8xf32> to vector<288x8xf32>
    %22 = arith.truncf %21 : vector<288x8xf32> to vector<288x8xbf16>
    %c8 = arith.constant 8 : index
    %c0_12 = arith.constant 0 : index
    %23 = vector.load %arg5[%c8, %c0_12] : memref<72x16xbf16, #tpu.memory_space<vmem>>, vector<8x16xbf16>
    %cst_13 = arith.constant dense<0.000000e+00> : vector<288x16xf32>
    %24 = tpu.matmul %22, %23, %cst_13 {dimension_numbers = #tpu.dot_dimension_numbers<[1], [0], [0], [1], [0, 0, 1, 1], [], []>} : vector<288x8xbf16>, vector<8x16xbf16>, vector<288x16xf32> -> vector<288x16xf32>
    %25 = arith.addf %20, %24 : vector<288x16xf32>
    %26 = vector.extract_strided_slice %16 {offsets = [2, 0], sizes = [288, 8], strides = [1, 1]} : vector<328x8xf32> to vector<288x8xf32>
    %27 = arith.truncf %26 : vector<288x8xf32> to vector<288x8xbf16>
    %c16 = arith.constant 16 : index
    %c0_14 = arith.constant 0 : index
    %28 = vector.load %arg5[%c16, %c0_14] : memref<72x16xbf16, #tpu.memory_space<vmem>>, vector<8x16xbf16>
    %cst_15 = arith.constant dense<0.000000e+00> : vector<288x16xf32>
    %29 = tpu.matmul %27, %28, %cst_15 {dimension_numbers = #tpu.dot_dimension_numbers<[1], [0], [0], [1], [0, 0, 1, 1], [], []>} : vector<288x8xbf16>, vector<8x16xbf16>, vector<288x16xf32> -> vector<288x16xf32>
    %30 = arith.addf %25, %29 : vector<288x16xf32>
    %31 = vector.extract_strided_slice %16 {offsets = [18, 0], sizes = [288, 8], strides = [1, 1]} : vector<328x8xf32> to vector<288x8xf32>
    %32 = arith.truncf %31 : vector<288x8xf32> to vector<288x8xbf16>
    %c24 = arith.constant 24 : index
    %c0_16 = arith.constant 0 : index
    %33 = vector.load %arg5[%c24, %c0_16] : memref<72x16xbf16, #tpu.memory_space<vmem>>, vector<8x16xbf16>
    %cst_17 = arith.constant dense<0.000000e+00> : vector<288x16xf32>
    %34 = tpu.matmul %32, %33, %cst_17 {dimension_numbers = #tpu.dot_dimension_numbers<[1], [0], [0], [1], [0, 0, 1, 1], [], []>} : vector<288x8xbf16>, vector<8x16xbf16>, vector<288x16xf32> -> vector<288x16xf32>
    %35 = arith.addf %30, %34 : vector<288x16xf32>
    %36 = vector.extract_strided_slice %16 {offsets = [19, 0], sizes = [288, 8], strides = [1, 1]} : vector<328x8xf32> to vector<288x8xf32>
    %37 = arith.truncf %36 : vector<288x8xf32> to vector<288x8xbf16>
    %c32 = arith.constant 32 : index
    %c0_18 = arith.constant 0 : index
    %38 = vector.load %arg5[%c32, %c0_18] : memref<72x16xbf16, #tpu.memory_space<vmem>>, vector<8x16xbf16>
    %cst_19 = arith.constant dense<0.000000e+00> : vector<288x16xf32>
    %39 = tpu.matmul %37, %38, %cst_19 {dimension_numbers = #tpu.dot_dimension_numbers<[1], [0], [0], [1], [0, 0, 1, 1], [], []>} : vector<288x8xbf16>, vector<8x16xbf16>, vector<288x16xf32> -> vector<288x16xf32>
    %40 = arith.addf %35, %39 : vector<288x16xf32>
    %41 = vector.extract_strided_slice %16 {offsets = [20, 0], sizes = [288, 8], strides = [1, 1]} : vector<328x8xf32> to vector<288x8xf32>
    %42 = arith.truncf %41 : vector<288x8xf32> to vector<288x8xbf16>
    %c40 = arith.constant 40 : index
    %c0_20 = arith.constant 0 : index
    %43 = vector.load %arg5[%c40, %c0_20] : memref<72x16xbf16, #tpu.memory_space<vmem>>, vector<8x16xbf16>
    %cst_21 = arith.constant dense<0.000000e+00> : vector<288x16xf32>
    %44 = tpu.matmul %42, %43, %cst_21 {dimension_numbers = #tpu.dot_dimension_numbers<[1], [0], [0], [1], [0, 0, 1, 1], [], []>} : vector<288x8xbf16>, vector<8x16xbf16>, vector<288x16xf32> -> vector<288x16xf32>
    %45 = arith.addf %40, %44 : vector<288x16xf32>
    %46 = vector.extract_strided_slice %16 {offsets = [36, 0], sizes = [288, 8], strides = [1, 1]} : vector<328x8xf32> to vector<288x8xf32>
    %47 = arith.truncf %46 : vector<288x8xf32> to vector<288x8xbf16>
    %c48 = arith.constant 48 : index
    %c0_22 = arith.constant 0 : index
    %48 = vector.load %arg5[%c48, %c0_22] : memref<72x16xbf16, #tpu.memory_space<vmem>>, vector<8x16xbf16>
    %cst_23 = arith.constant dense<0.000000e+00> : vector<288x16xf32>
    %49 = tpu.matmul %47, %48, %cst_23 {dimension_numbers = #tpu.dot_dimension_numbers<[1], [0], [0], [1], [0, 0, 1, 1], [], []>} : vector<288x8xbf16>, vector<8x16xbf16>, vector<288x16xf32> -> vector<288x16xf32>
    %50 = arith.addf %45, %49 : vector<288x16xf32>
    %51 = vector.extract_strided_slice %16 {offsets = [37, 0], sizes = [288, 8], strides = [1, 1]} : vector<328x8xf32> to vector<288x8xf32>
    %52 = arith.truncf %51 : vector<288x8xf32> to vector<288x8xbf16>
    %c56 = arith.constant 56 : index
    %c0_24 = arith.constant 0 : index
    %53 = vector.load %arg5[%c56, %c0_24] : memref<72x16xbf16, #tpu.memory_space<vmem>>, vector<8x16xbf16>
    %cst_25 = arith.constant dense<0.000000e+00> : vector<288x16xf32>
    %54 = tpu.matmul %52, %53, %cst_25 {dimension_numbers = #tpu.dot_dimension_numbers<[1], [0], [0], [1], [0, 0, 1, 1], [], []>} : vector<288x8xbf16>, vector<8x16xbf16>, vector<288x16xf32> -> vector<288x16xf32>
    %55 = arith.addf %50, %54 : vector<288x16xf32>
    %56 = vector.extract_strided_slice %16 {offsets = [38, 0], sizes = [288, 8], strides = [1, 1]} : vector<328x8xf32> to vector<288x8xf32>
    %57 = arith.truncf %56 : vector<288x8xf32> to vector<288x8xbf16>
    %c64 = arith.constant 64 : index
    %c0_26 = arith.constant 0 : index
    %58 = vector.load %arg5[%c64, %c0_26] : memref<72x16xbf16, #tpu.memory_space<vmem>>, vector<8x16xbf16>
    %cst_27 = arith.constant dense<0.000000e+00> : vector<288x16xf32>
    %59 = tpu.matmul %57, %58, %cst_27 {dimension_numbers = #tpu.dot_dimension_numbers<[1], [0], [0], [1], [0, 0, 1, 1], [], []>} : vector<288x8xbf16>, vector<8x16xbf16>, vector<288x16xf32> -> vector<288x16xf32>
    %60 = arith.addf %55, %59 : vector<288x16xf32>
    %c0_28 = arith.constant 0 : index
    %c0_29 = arith.constant 0 : index
    %61 = vector.load %arg6[%c0_28, %c0_29] : memref<1x16xf32, #tpu.memory_space<vmem>>, vector<1x16xf32>
    %62 = vector.broadcast %61 : vector<1x16xf32> to vector<288x16xf32>
    %63 = arith.addf %60, %62 : vector<288x16xf32>
    %64 = arith.truncf %63 : vector<288x16xf32> to vector<288x16xbf16>
    %c0_30 = arith.constant 0 : index
    %c0_31 = arith.constant 0 : index
    %c0_32 = arith.constant 0 : index
    %65 = vector.load %arg7[%c0_30, %c0_31, %c0_32] : memref<1x288x16xbf16, #tpu.memory_space<vmem>>, vector<1x288x16xbf16>
    %66 = vector.shape_cast %65 : vector<1x288x16xbf16> to vector<288x16xbf16>
    %67 = vector.shape_cast %64 : vector<288x16xbf16> to vector<1x288x16xbf16>
    tpu.vector_store %arg7[%c0_30, %c0_31, %c0_32], %67 {strides = array<i32>} : memref<1x288x16xbf16, #tpu.memory_space<vmem>>, vector<1x288x16xbf16>,
    return
  }
  func.func @transform_0(%arg0: i32) -> (i32, i32, i32) {
    %c0_i32 = arith.constant 0 : i32
    %c0_i32_0 = arith.constant 0 : i32
    %c0_i32_1 = arith.constant 0 : i32
    return %arg0, %c0_i32, %c0_i32_0 : i32, i32, i32
  }
  func.func @transform_1(%arg0: i32) -> (i32, i32) {
    %c0_i32 = arith.constant 0 : i32
    %c0_i32_0 = arith.constant 0 : i32
    %c0_i32_1 = arith.constant 0 : i32
    return %c0_i32, %c0_i32_0 : i32, i32
  }
  func.func @transform_2(%arg0: i32) -> (i32, i32) {
    %c0_i32 = arith.constant 0 : i32
    %c0_i32_0 = arith.constant 0 : i32
    %c0_i32_1 = arith.constant 0 : i32
    return %c0_i32, %c0_i32_0 : i32, i32
  }
  func.func @transform_3(%arg0: i32) -> (i32, i32) {
    %c0_i32 = arith.constant 0 : i32
    %c0_i32_0 = arith.constant 0 : i32
    %c0_i32_1 = arith.constant 0 : i32
    return %c0_i32, %c0_i32_0 : i32, i32
  }
  func.func @transform_4(%arg0: i32) -> (i32, i32) {
    %c0_i32 = arith.constant 0 : i32
    %c0_i32_0 = arith.constant 0 : i32
    %c0_i32_1 = arith.constant 0 : i32
    return %c0_i32, %c0_i32_0 : i32, i32
  }
  func.func @transform_5(%arg0: i32) -> (i32, i32) {
    %c0_i32 = arith.constant 0 : i32
    %c0_i32_0 = arith.constant 0 : i32
    %c0_i32_1 = arith.constant 0 : i32
    return %c0_i32, %c0_i32_0 : i32, i32
  }
  func.func @transform_6(%arg0: i32) -> (i32, i32, i32) {
    %c0_i32 = arith.constant 0 : i32
    %c0_i32_0 = arith.constant 0 : i32
    %c0_i32_1 = arith.constant 0 : i32
    return %arg0, %c0_i32, %c0_i32_0 : i32, i32, i32
  }
}

</mosaic_0001>

<bundles_post_ra>
// kernel: tpu_custom_call.1
= control target key start
LH: loop header
LB: loop body
LE: loop exit
PB: predicated region body
PF: predicated region fallthrough
CT: control target
= control target key end

     0   :  { %s4791_s21 = smov 0   ;;  %s6749_s0 = inlined_call_operand.vmem [shape: bf16[2,328,8], index: 0, kind: input, shape index: {}]   ;;  %s6750_s1 = inlined_call_operand.vmem [shape: f32[328,1], index: 1, kind: input, shape index: {}]   ;;  %s6751_s2 = inlined_call_operand.vmem [shape: f32[1,8], index: 2, kind: input, shape index: {}]   ;;  %s6752_s3 = inlined_call_operand.vmem [shape: f32[1,8], index: 3, kind: input, shape index: {}]   ;;  %s6753_s4 = inlined_call_operand.vmem [shape: bf16[72,16], index: 4, kind: input, shape index: {}]   ;;  %s6754_s5 = inlined_call_operand.vmem [shape: f32[1,16], index: 5, kind: input, shape index: {}]   ;;  %s6755_s6 = inlined_call_operand.vmem [shape: bf16[2,288,16], index: 6, kind: output, shape index: {}]  }
   0x1 LB: > { %s3864_s22 = sadd.s32 4294967295, %s4753_s21   ;;  %p3868_p0 = scmp.ge.s32.totalorder %s4753_s21, 1  ;;  %s4753_s21 = sphi %s4791_s21, %s16_s21  }
   0x2   : > { %p212_p1 = scmp.lt.s32.totalorder %s4753_s21, 3 }
   0x4   : > { %p213_p2 = pnand %p3868_p0, %p212_p1 }
   0x6   : > { %216 = sbr.rel (%p213_p2) target bundleno = 714 (0x2ca), region = 44 }
   0xb   : > { %v556_v0 = vld [vmem:[%s6750_s1 + $0x10] sm:$0xff]  ;;  %v554_v1 = vld [vmem:[%s6750_s1] sm:$0xff]  ;;  %v4755_v2 = vmov 0   ;;  %v557_v3 = vld [vmem:[%s6750_s1 + $0x18] sm:$0xff]  ;;  %vm1066_vm0 = vcmask 1043456   ;;  %p242_p3 = scmp.lt.s32.totalorder %s3864_s22, 1 }
   0xc   : > { %4746 = vset.pattern.permute.xlu1 %v4755_v2  ;;  %4745 = vset.pattern.permute.xlu0 %v4755_v2  ;;  %v555_v4 = vld [vmem:[%s6750_s1 + $0x8] sm:$0xff]  ;;  %v558_v6 = vld [vmem:[%s6750_s1 + $0x20] sm:$0xff]  ;;  %v577_v9 = vld [vmem:[%s6750_s1 + $0xb8] sm:$0xff] }
   0xd   : > { %607 = vperm.xlu1 %4746, %v556_v0   ;;  %597 = vperm.xlu0 %4745, %v554_v1   ;;  %v559_v5 = vld [vmem:[%s6750_s1 + $0x28] sm:$0xff]  ;;  %v574_v8 = vld [vmem:[%s6750_s1 + $0xa0] sm:$0xff]  ;;  %v576_v10 = vld [vmem:[%s6750_s1 + $0xb0] sm:$0xff]  ;;  %s6937_s22 = smov (!%p242_p3, %s3864_s22), 1 }
   0xe   : > { %v575_v7 = vld [vmem:[%s6750_s1 + $0xa8] sm:$0xff]  ;;  %v861_v11 = vld [vmem:[%s6753_s4 + $0x4] sm:$0xf]  ;;  %v561_v13 = vld [vmem:[%s6750_s1 + $0x38] sm:$0xff]  ;;  %s4734_s15 = smul.u32 164, %s6937_s22 }
   0xf   : > { %4724 = vmatprep.subr.msk.bf16.mxu0 %vm1066_vm0, %v861_v11  ;;  %4725 = vmatprep.subr.msk.bf16.mxu1 %vm1066_vm0, %v861_v11  ;;  %v1068_v12 = vsel %vm1066_vm0, %v861_v11, 0  ;;  %v560_v14 = vld [vmem:[%s6750_s1 + $0x30] sm:$0xff]  ;;  %v579_v15 = vld [vmem:[%s6750_s1 + $0xc8] sm:$0xff]  ;;  %v578_v16 = vld [vmem:[%s6750_s1 + $0xc0] sm:$0xff]  ;;  %s4735_s19 = smul.u32 144, %s6937_s22 }
  0x10   : > { %4381 = vmatpush3.bf16.msra.mxu0 %v1068_v12  ;;  %4723 = vmatpush3.bf16.msra.mxu1 %v1068_v12  ;;  %v563_v17 = vld [vmem:[%s6750_s1 + $0x48] sm:$0xff]  ;;  %v562_v18 = vld [vmem:[%s6750_s1 + $0x40] sm:$0xff]  ;;  %v581_v19 = vld [vmem:[%s6750_s1 + $0xd8] sm:$0xff]  ;;  %s4912_s24 = scalar_lea.vmem %s6749_s0, %s4734_s15 }
  0x11   : > { %612 = vperm.xlu1 %4746, %v557_v3   ;;  %602 = vperm.xlu0 %4745, %v555_v4   ;;  %v580_v20 = vld [vmem:[%s6750_s1 + $0xd0] sm:$0xff]  ;;  %v565_v21 = vld [vmem:[%s6750_s1 + $0x58] sm:$0xff]  ;;  %v583_v23 = vld [vmem:[%s6750_s1 + $0xe8] sm:$0xff]  ;;  %s6604_s22 = scalar_lea.vmem %s6755_s6, %s4735_s19 }
  0x12   : > { %v564_v22 = vld [vmem:[%s6750_s1 + $0x50] sm:$0xff]  ;;  %v582_v24 = vld [vmem:[%s6750_s1 + $0xe0] sm:$0xff]  ;;  %v567_v25 = vld [vmem:[%s6750_s1 + $0x68] sm:$0xff] }
  0x13   : > { %v566_v26 = vld [vmem:[%s6750_s1 + $0x60] sm:$0xff]  ;;  %v585_v27 = vld [vmem:[%s6750_s1 + $0xf8] sm:$0xff]  ;;  %v584_v28 = vld [vmem:[%s6750_s1 + $0xf0] sm:$0xff] }
  0x14   : > { %v4892_v29 = vld [vmem:[%s6753_s4 + $0x8] sm:$0xf]  ;;  %v569_v30 = vld [vmem:[%s6750_s1 + $0x78] sm:$0xff]  ;;  %v568_v31 = vld [vmem:[%s6750_s1 + $0x70] sm:$0xff] }
  0x15   : > { %622 = vperm.xlu1 %4746, %v559_v5   ;;  %617 = vperm.xlu0 %4745, %v558_v6   ;;  %v587_v32 = vld [vmem:[%s6750_s1 + $0x108] sm:$0xff]  ;;  %v586_v33 = vld [vmem:[%s6750_s1 + $0x100] sm:$0xff]  ;;  %v4207_v39 = vld [vmem:[%s4912_s24 + $0x90] sm:$0xff]  }
  0x16   : > { %4727 = vmatprep.subr.msk.bf16.mxu0 %vm1066_vm0, %v4892_v29  ;;  %v4917_v34 = vld [vmem:[%s6753_s4] sm:$0xf]  ;;  %v4198_v35 = vld [vmem:[%s4912_s24 + $0x48] sm:$0xff]   ;;  %v589_v41 = vld [vmem:[%s6750_s1 + $0x118] sm:$0xff]  ;;  %v4185_v45 = vunpack.c.h.bf16 %v4207_v39  ;;  %v4184_v50 = vunpack.c.l.bf16 %v4207_v39 }
  0x17   : > { %v571_v36 = vld [vmem:[%s6750_s1 + $0x88] sm:$0xff]  ;;  %v570_v37 = vld [vmem:[%s6750_s1 + $0x80] sm:$0xff]  ;;  %4726 = vmatprep.subr.msk.bf16.mxu1 %vm1066_vm0, %v4917_v34  ;;  %v4149_v38 = vunpack.c.h.bf16 %v4198_v35  ;;  %v588_v42 = vld [vmem:[%s6750_s1 + $0x110] sm:$0xff]  ;;  %v4148_v44 = vunpack.c.l.bf16 %v4198_v35 }
  0x18   : > { %v4932_v40 = vld [vmem:[%s6751_s2] ss:$0 sm:$0xff]  ;;  %v4208_v51 = vld [vmem:[%s4912_s24 + $0x98] sm:$0xff]   ;;  %v572_v53 = vld [vmem:[%s6750_s1 + $0x90] sm:$0xff] }
  0x19   : > { %702 = vperm.xlu1 %4746, %v575_v7   ;;  %697 = vperm.xlu0 %4745, %v574_v8   ;;  %v361_v43 = vmul.f32 %v4149_v38, %v4932_v40  ;;  %v4944_v46 = vld [vmem:[%s6752_s3] ss:$0 sm:$0xff]  ;;  %v360_v48 = vmul.f32 %v4148_v44, %v4932_v40  ;;  %v379_v49 = vmul.f32 %v4185_v45, %v4932_v40  ;;  %v573_v52 = vld [vmem:[%s6750_s1 + $0x98] sm:$0xff]  ;;  %v4189_v57 = vunpack.c.h.bf16 %v4208_v51  ;;  %v591_v59 = vld [vmem:[%s6750_s1 + $0x128] sm:$0xff] }
  0x1a   : > { %v378_v56 = vmul.f32 %v4184_v50, %v4932_v40  ;;  %v293_v58 = vld [vmem:[%s4912_s24 + $0xa0] sm:$0xf]  ;;  %v4188_v63 = vunpack.c.l.bf16 %v4208_v51  ;;  %v593_v4 = vld [vmem:[%s6750_s1 + $0x138] sm:$0xff]  ;;  %v592_v5 = vld [vmem:[%s6750_s1 + $0x130] sm:$0xff] }
  0x1b   : > { %v4947_v47 = vadd.f32 %v4944_v46, %v361_v43  ;;  %v4959_v54 = vadd.f32 %v4944_v46, %v360_v48  ;;  %v4962_v55 = vadd.f32 %v4944_v46, %v379_v49  ;;  %v590_v60 = vld [vmem:[%s6750_s1 + $0x120] sm:$0xff]  ;;  %v381_v62 = vmul.f32 %v4189_v57, %v4932_v40  ;;  %v4192_v35 = vld [vmem:[%s4912_s24 + $0x18] sm:$0xff]  }
  0x1c   : > { %v4973_v61 = vadd.f32 %v4944_v46, %v378_v56  ;;  %v334_v0 = vunpack.c.l.bf16 %v293_v58  ;;  %v380_v2 = vmul.f32 %v4188_v63, %v4932_v40  ;;  %v594_v8 = vld [vmem:[%s6750_s1 + $0x140] sm:$0xff]  ;;  %v4125_v45 = vunpack.c.h.bf16 %v4192_v35 }
  0x1d   : > { %712 = vperm.xlu1 %4746, %v577_v9   ;;  %707 = vperm.xlu0 %4745, %v576_v10   ;;  %v4977_v1 = vadd.f32 %v4944_v46, %v381_v62  ;;  %v4190_v9 = vld [vmem:[%s4912_s24 + $0x8] sm:$0xff]   ;;  %v4111_v10 = vld [vmem:[%s4912_s24] sm:$0xff]  }
  0x1e   : > { %v382_v3 = vmul.f32 %v4932_v40, %v334_v0  ;;  %v4988_v6 = vadd.f32 %v4944_v46, %v380_v2  ;;  %v4116_v11 = vunpack.c.l.bf16 %v4190_v9  ;;  %v4117_v12 = vunpack.c.h.bf16 %v4190_v9 }
  0x1f   : > { %v349_v0 = vmul.f32 %v4125_v45, %v4932_v40 }
  0x20   : > { %v4991_v7 = vadd.f32 %v4944_v46, %v382_v3 }
  0x21   : > { %632 = vperm.xlu1 %4746, %v561_v13   ;;  %627 = vperm.xlu0 %4745, %v560_v14   ;;  %v4112_v13 = vunpack.c.l.bf16 %v4111_v10  ;;  %v4191_v14 = vld [vmem:[%s4912_s24 + $0x10] sm:$0xff]  }
  0x25   : > { %722 = vperm.xlu1 %4746, %v579_v15   ;;  %717 = vperm.xlu0 %4745, %v578_v16   ;;  %v344_v15 = vmul.f32 %v4116_v11, %v4932_v40  ;;  %v4113_v16 = vunpack.c.h.bf16 %v4111_v10 }
  0x29   : > { %642 = vperm.xlu1 %4746, %v563_v17   ;;  %637 = vperm.xlu0 %4745, %v562_v18   ;;  %v4199_v17 = vld [vmem:[%s4912_s24 + $0x50] sm:$0xff]   ;;  %v345_v18 = vmul.f32 %v4117_v12, %v4932_v40 }
  0x2d   : > { %732 = vperm.xlu1 %4746, %v581_v19   ;;  %727 = vperm.xlu0 %4745, %v580_v20   ;;  %v342_v19 = vmul.f32 %v4112_v13, %v4932_v40  ;;  %v4121_v20 = vunpack.c.h.bf16 %v4191_v14 }
  0x31   : > { %652 = vperm.xlu1 %4746, %v565_v21   ;;  %647 = vperm.xlu0 %4745, %v564_v22   ;;  %v4200_v21 = vld [vmem:[%s4912_s24 + $0x58] sm:$0xff]   ;;  %v4120_v22 = vunpack.c.l.bf16 %v4191_v14  ;;  %v4202_v14 = vld [vmem:[%s4912_s24 + $0x68] sm:$0xff]  }
  0x35   : > { %742 = vperm.xlu1 %4746, %v583_v23   ;;  %737 = vperm.xlu0 %4745, %v582_v24   ;;  %v4153_v23 = vunpack.c.h.bf16 %v4199_v17  ;;  %v392_v24 = vadd.f32 %v4944_v46, %v344_v15  ;;  %v397_v15 = vadd.f32 %v4944_v46, %v349_v0 }
  0x37   : > { %vm433_vm1 = vcmp.ge.f32.partialorder %v392_v24, 0.0  ;;  %vm438_vm11 = vcmp.ge.f32.partialorder %v397_v15, 0.0 }
  0x39   : > { %662 = vperm.xlu1 %4746, %v567_v25   ;;  %657 = vperm.xlu0 %4745, %v566_v26   ;;  %v343_v25 = vmul.f32 %v4113_v16, %v4932_v40  ;;  %v393_v26 = vadd.f32 %v4944_v46, %v345_v18 }
  0x3b   : > { %v475_v38 = vmul.f32 0.01, %v393_v26  ;;  %vm434_vm2 = vcmp.ge.f32.partialorder %v393_v26, 0.0 }
  0x3d   : > { %752 = vperm.xlu1 %4746, %v585_v27   ;;  %747 = vperm.xlu0 %4745, %v584_v28   ;;  %v4152_v27 = vunpack.c.l.bf16 %v4199_v17  ;;  %v4157_v28 = vunpack.c.h.bf16 %v4200_v21  ;;  %v5021_v56 = vsel %vm434_vm2, %v393_v26, %v475_v38  ;;  %v4203_v26 = vld [vmem:[%s4912_s24 + $0x70] sm:$0xff]  }
  0x3f   : > { %v362_v39 = vmul.f32 %v4152_v27, %v4932_v40 }
  0x41   : > { %672 = vperm.xlu1 %4746, %v569_v30   ;;  %667 = vperm.xlu0 %4745, %v568_v31   ;;  %v390_v30 = vadd.f32 %v4944_v46, %v342_v19  ;;  %v347_v31 = vmul.f32 %v4121_v20, %v4932_v40  ;;  %v410_v57 = vadd.f32 %v4944_v46, %v362_v39  ;;  %v4169_v39 = vunpack.c.h.bf16 %v4203_v26 }
  0x43   : > { %v472_v43 = vmul.f32 0.01, %v390_v30  ;;  %v395_v44 = vadd.f32 %v4944_v46, %v347_v31  ;;  %vm431_vm3 = vcmp.ge.f32.partialorder %v390_v30, 0.0  ;;  %v492_v11 = vmul.f32 0.01, %v410_v57 }
  0x44   : > { %vm451_vm8 = vcmp.ge.f32.partialorder %v410_v57, 0.0 }
  0x45   : > { %762 = vperm.xlu1 %4746, %v587_v32   ;;  %757 = vperm.xlu0 %4745, %v586_v33   ;;  %v346_v32 = vmul.f32 %v4120_v22, %v4932_v40  ;;  %v363_v33 = vmul.f32 %v4153_v23, %v4932_v40  ;;  %v5027_v62 = vsel %vm431_vm3, %v390_v30, %v472_v43  ;;  %vm436_vm5 = vcmp.ge.f32.partialorder %v395_v44, 0.0 }
  0x46   : > { %v477_v63 = vmul.f32 0.01, %v395_v44  ;;  %v5051_v27 = vsel %vm451_vm8, %v410_v57, %v492_v11  ;;  %v4164_v30 = vunpack.c.l.bf16 %v4202_v14 }
  0x47   : > { %v394_v48 = vadd.f32 %v4944_v46, %v346_v32  ;;  %v411_v49 = vadd.f32 %v4944_v46, %v363_v33  ;;  %v479_v32 = vmul.f32 0.01, %v397_v15 }
  0x48   : > { %v5038_v17 = vsel %vm436_vm5, %v395_v44, %v477_v63  ;;  %v368_v45 = vmul.f32 %v4164_v30, %v4932_v40 }
  0x49   : > { %682 = vperm.xlu1 %4746, %v571_v36   ;;  %677 = vperm.xlu0 %4745, %v570_v37   ;;  %v474_v36 = vmul.f32 0.01, %v392_v24  ;;  %v391_v37 = vadd.f32 %v4944_v46, %v343_v25  ;;  %vm435_vm6 = vcmp.ge.f32.partialorder %v394_v48, 0.0  ;;  %v476_v2 = vmul.f32 0.01, %v394_v48 }
  0x4a   : > { %v493_v3 = vmul.f32 0.01, %v411_v49  ;;  %vm452_vm7 = vcmp.ge.f32.partialorder %v411_v49, 0.0  ;;  %v4165_v25 = vunpack.c.h.bf16 %v4202_v14 }
  0x4b   : > { %v5018_v50 = vsel %vm433_vm1, %v392_v24, %v474_v36  ;;  %vm432_vm4 = vcmp.ge.f32.partialorder %v391_v37, 0.0  ;;  %v473_v51 = vmul.f32 0.01, %v391_v37  ;;  %v5041_v18 = vsel %vm435_vm6, %v394_v48, %v476_v2  ;;  %v4195_v36 = vld [vmem:[%s4912_s24 + $0x30] sm:$0xff]  }
  0x4c   : > { %v5043_v19 = vsel %vm452_vm7, %v411_v49, %v493_v3  ;;  %v369_v43 = vmul.f32 %v4165_v25, %v4932_v40  ;;  %v4168_v48 = vunpack.c.l.bf16 %v4203_v26  ;;  %v4137_v49 = vunpack.c.h.bf16 %v4195_v36  ;;  %v4204_v3 = vld [vmem:[%s4912_s24 + $0x78] sm:$0xff]  }
  0x4d   : > { %772 = vperm.xlu1 %4746, %v589_v41   ;;  %767 = vperm.xlu0 %4745, %v588_v42   ;;  %v365_v41 = vmul.f32 %v4157_v28, %v4932_v40  ;;  %v4156_v42 = vunpack.c.l.bf16 %v4200_v21  ;;  %v5032_v10 = vsel %vm432_vm4, %v391_v37, %v473_v51  ;;  %v4194_v21 = vld [vmem:[%s4912_s24 + $0x28] sm:$0xff]  }
  0x4e   : > { %v4132_v38 = vunpack.c.l.bf16 %v4194_v21  ;;  %v417_v2 = vadd.f32 %v4944_v46, %v369_v43 }
  0x4f   : > { %v413_v58 = vadd.f32 %v4944_v46, %v365_v41 }
  0x50   : > { %vm458_vm2 = vcmp.ge.f32.partialorder %v417_v2, 0.0 }
  0x51   : > { %692 = vperm.xlu1 %4746, %v573_v52   ;;  %687 = vperm.xlu0 %4745, %v572_v53   ;;  %v4124_v52 = vunpack.c.l.bf16 %v4192_v35  ;;  %v4201_v53 = vld [vmem:[%s4912_s24 + $0x60] sm:$0xff]   ;;  %v495_v12 = vmul.f32 0.01, %v413_v58  ;;  %vm454_vm9 = vcmp.ge.f32.partialorder %v413_v58, 0.0  ;;  %v4133_v35 = vunpack.c.h.bf16 %v4194_v21 }
  0x53   : > { %v5053_v28 = vsel %vm454_vm9, %v413_v58, %v495_v12  ;;  %v353_v57 = vmul.f32 %v4133_v35, %v4932_v40  ;;  %vm862_vm9 = vsmask.f32 7424 }
  0x55   : > { %782 = vperm.xlu1 %4746, %v591_v59   ;;  %777 = vperm.xlu0 %4745, %v590_v60   ;;  %v364_v59 = vmul.f32 %v4156_v42, %v4932_v40  ;;  %v4193_v60 = vld [vmem:[%s4912_s24 + $0x20] sm:$0xff]   ;;  %v401_v12 = vadd.f32 %v4944_v46, %v353_v57 }
  0x56   : > { %v4129_v9 = vunpack.c.h.bf16 %v4193_v60  ;;  %v4128_v16 = vunpack.c.l.bf16 %v4193_v60  ;;  %v371_v60 = vmul.f32 %v4169_v39, %v4932_v40 }
  0x57   : > { %v412_v13 = vadd.f32 %v4944_v46, %v364_v59  ;;  %v352_v59 = vmul.f32 %v4132_v38, %v4932_v40  ;;  %vm442_vm4 = vcmp.ge.f32.partialorder %v401_v12, 0.0 }
  0x58   : > { %v351_v24 = vmul.f32 %v4129_v9, %v4932_v40  ;;  %v350_v33 = vmul.f32 %v4128_v16, %v4932_v40  ;;  %v419_v14 = vadd.f32 %v4944_v46, %v371_v60  ;;  %v4173_v16 = vunpack.c.h.bf16 %v4204_v3 }
  0x59   : > { %792 = vperm.xlu1 %4746, %v593_v4   ;;  %787 = vperm.xlu0 %4745, %v592_v5   ;;  %v4161_v4 = vunpack.c.h.bf16 %v4201_v53  ;;  %v348_v5 = vmul.f32 %v4124_v52, %v4932_v40  ;;  %vm453_vm10 = vcmp.ge.f32.partialorder %v412_v13, 0.0  ;;  %v494_v31 = vmul.f32 0.01, %v412_v13 }
  0x5a   : > { %v399_v42 = vadd.f32 %v4944_v46, %v351_v24  ;;  %v5065_v52 = vsel %vm438_vm11, %v397_v15, %v479_v32  ;;  %v4136_v15 = vunpack.c.l.bf16 %v4195_v36  ;;  %v4196_v32 = vld [vmem:[%s4912_s24 + $0x38] sm:$0xff]   ;;  %v373_v39 = vmul.f32 %v4173_v16, %v4932_v40 }
  0x5b   : > { %v367_v20 = vmul.f32 %v4161_v4, %v4932_v40  ;;  %v396_v22 = vadd.f32 %v4944_v46, %v348_v5  ;;  %v5063_v51 = vsel %vm453_vm10, %v412_v13, %v494_v31  ;;  %v416_v4 = vadd.f32 %v4944_v46, %v368_v45 }
  0x5c   : > { %v481_v0 = vmul.f32 0.01, %v399_v42  ;;  %vm440_vm15 = vcmp.ge.f32.partialorder %v399_v42, 0.0  ;;  %v370_v5 = vmul.f32 %v4168_v48, %v4932_v40  ;;  %v400_v13 = vadd.f32 %v4944_v46, %v352_v59 }
  0x5d   : > { %797 = vperm.xlu0 %4745, %v594_v8   ;;  %v4160_v8 = vunpack.c.l.bf16 %v4201_v53  ;;  %v415_v37 = vadd.f32 %v4944_v46, %v367_v20  ;;  %vm437_vm12 = vcmp.ge.f32.partialorder %v396_v22, 0.0  ;;  %v478_v44 = vmul.f32 0.01, %v396_v22 }
  0x5e   : > { %v398_v53 = vadd.f32 %v4944_v46, %v350_v33  ;;  %v498_v24 = vmul.f32 0.01, %v416_v4  ;;  %v418_v25 = vadd.f32 %v4944_v46, %v370_v5  ;;  %vm457_vm3 = vcmp.ge.f32.partialorder %v416_v4, 0.0 }
  0x5f   : > { %v366_v23 = vmul.f32 %v4160_v8, %v4932_v40  ;;  %vm456_vm13 = vcmp.ge.f32.partialorder %v415_v37, 0.0  ;;  %v497_v58 = vmul.f32 0.01, %v415_v37  ;;  %v355_v8 = vmul.f32 %v4137_v49, %v4932_v40 }
  0x60   : > { %v5077_v9 = vsel %vm437_vm12, %v396_v22, %v478_v44  ;;  %vm439_vm1 = vcmp.ge.f32.partialorder %v398_v53, 0.0  ;;  %v480_v11 = vmul.f32 0.01, %v398_v53  ;;  %v499_v22 = vmul.f32 0.01, %v417_v2 }
  0x61   : > { %v414_v41 = vadd.f32 %v4944_v46, %v366_v23  ;;  %v5083_v20 = vsel %vm456_vm13, %v415_v37, %v497_v58  ;;  %v5088_v23 = vsel %vm440_vm15, %v399_v42, %v481_v0  ;;  %v403_v26 = vadd.f32 %v4944_v46, %v355_v8 }
  0x62   : > { %v5092_v30 = vsel %vm439_vm1, %v398_v53, %v480_v11  ;;  %v483_v31 = vmul.f32 0.01, %v401_v12  ;;  %v482_v36 = vmul.f32 0.01, %v400_v13  ;;  %v501_v37 = vmul.f32 0.01, %v419_v14 }
  0x63   : > { %vm455_vm14 = vcmp.ge.f32.partialorder %v414_v41, 0.0  ;;  %v496_v63 = vmul.f32 0.01, %v414_v41  ;;  %v354_v38 = vmul.f32 %v4136_v15, %v4932_v40  ;;  %vm441_vm5 = vcmp.ge.f32.partialorder %v400_v13, 0.0 }
  0x64   : > { %vm460_vm6 = vcmp.ge.f32.partialorder %v419_v14, 0.0  ;;  %v4172_v42 = vunpack.c.l.bf16 %v4204_v3  ;;  %v5099_v43 = vsel %vm457_vm3, %v416_v4, %v498_v24  ;;  %v500_v44 = vmul.f32 0.01, %v418_v25 }
  0x65   : > { %v5086_v21 = vsel %vm455_vm14, %v414_v41, %v496_v63  ;;  %v5097_v41 = vsel %vm458_vm2, %v417_v2, %v499_v22  ;;  %v485_v45 = vmul.f32 0.01, %v403_v26  ;;  %v4141_v48 = vunpack.c.h.bf16 %v4196_v32  ;;  %v5112_v2 = vld [vmem:[%s4912_s24 + $0x80] sm:$0xff]  }
  0x66   : > { %v5103_v53 = vsel %vm442_vm4, %v401_v12, %v483_v31  ;;  %vm459_vm7 = vcmp.ge.f32.partialorder %v418_v25, 0.0  ;;  %vm444_vm8 = vcmp.ge.f32.partialorder %v403_v26, 0.0  ;;  %v5105_v59 = vsel %vm441_vm5, %v400_v13, %v482_v36 }
  0x67   : > { %v5107_v60 = vsel %vm460_vm6, %v419_v14, %v501_v37  ;;  %v402_v63 = vadd.f32 %v4944_v46, %v354_v38  ;;  %v421_v0 = vadd.f32 %v4944_v46, %v373_v39  ;;  %vm1011_vm10 = vcmask 64512  }
  0x68   : > { %v372_v5 = vmul.f32 %v4172_v42, %v4932_v40  ;;  %v5118_v8 = vsel %vm459_vm7, %v418_v25, %v500_v44  ;;  %v5120_v11 = vsel %vm444_vm8, %v403_v26, %v485_v45  ;;  %v357_v12 = vmul.f32 %v4141_v48, %v4932_v40 }
  0x69   : > { %v4140_v13 = vunpack.c.l.bf16 %v4196_v32  ;;  %vm443_vm11 = vcmp.ge.f32.partialorder %v402_v63, 0.0  ;;  %v484_v22 = vmul.f32 0.01, %v402_v63  ;;  %vm462_vm12 = vcmp.ge.f32.partialorder %v421_v0, 0.0 }
  0x6a   : > { %v503_v24 = vmul.f32 0.01, %v421_v0  ;;  %v420_v32 = vadd.f32 %v4944_v46, %v372_v5  ;;  %vm2023_vm13 = vsmask.f32 6400  ;;  %vm450_vm8 = vcmp.ge.f32.partialorder %v4947_v47, 0.0 }
  0x6b   : > { %v356_v36 = vmul.f32 %v4140_v13, %v4932_v40  ;;  %v5145_v48 = vsel %vm443_vm11, %v402_v63, %v484_v22  ;;  %vm449_vm11 = vcmp.ge.f32.partialorder %v4959_v54, 0.0 }
  0x6c   : > { %vm461_vm14 = vcmp.ge.f32.partialorder %v420_v32, 0.0 }
  0x88   : > { %v608_v33 = vpop.permute.xlu1 %607  ;;  %v598_v35 = vpop.permute.xlu0 %597 }
  0x89   : > { %v802_v49 = vmul.f32 %v608_v33, %v5018_v50  ;;  %v800_v50 = vmul.f32 %v598_v35, %v5027_v62  ;;  %v1576_v62 = vsel %vm1066_vm0, %v4892_v29, 0  ;;  %v5137_v35 = vadd.f32 %v4944_v46, %v357_v12 }
  0x8a   : > { %v5159_v12 = vsel %vm462_vm12, %v421_v0, %v503_v24  ;;  %vm468_vm12 = vcmp.ge.f32.partialorder %v4962_v55, 0.0 }
  0x8b   : > { %vm446_vm15 = vcmp.ge.f32.partialorder %v5137_v35, 0.0 }
  0x8c   : > { %v613_v57 = vpop.permute.xlu1 %612  ;;  %v603_v58 = vpop.permute.xlu0 %602 }
  0x8d   : > { %v803_v3 = vmul.f32 %v613_v57, %v5021_v56  ;;  %v801_v4 = vmul.f32 %v603_v58, %v5032_v10  ;;  %v4177_v56 = vunpack.c.h.bf16 %v5112_v2 }
  0x8f   : > { %v5123_v14 = vpack.c.bf16 %v803_v3, %v802_v49  ;;  %v5125_v15 = vpack.c.bf16 %v801_v4, %v800_v50  ;;  %v5153_v4 = vld [vmem:[%s4912_s24 + $0x40] sm:$0xff]  }
  0x90   : > { %v623_v10 = vpop.permute.xlu1 %622  ;;  %v618_v16 = vpop.permute.xlu0 %617 }
  0x91   : > { %v805_v25 = vmul.f32 %v623_v10, %v5038_v17  ;;  %v804_v26 = vmul.f32 %v618_v16, %v5041_v18  ;;  %v866_v31 = vshll.u32 %v5125_v15, 16  ;;  %v871_v33 = vshll.u32 %v5123_v14, 16 }
  0x92   : > { %v875_v29 = vshrl.u32 %v5123_v14, 16  ;;  %v864_v17 = vshrl.u32 %v5125_v15, 16  ;;  %v4176_v18 = vunpack.c.l.bf16 %v5112_v2 }
  0x93   : > { %v5140_v37 = vpack.c.bf16 %v805_v25, %v804_v26  ;;  %v868_v38 = vrot.slane %v866_v31, 1  ;;  %v873_v44 = vrot.slane %v871_v33, 1  ;;  %v2025_v45 = vrot.slane %v871_v33, 2 }
  0x94   : > { %v703_v39 = vpop.permute.xlu1 %702  ;;  %v698_v42 = vpop.permute.xlu0 %697  ;;  %v2024_v49 = vrot.slane %v875_v29, 1  ;;  %v375_v25 = vmul.f32 %v4177_v56, %v4932_v40  ;;  %v4145_v26 = vunpack.c.h.bf16 %v5153_v4  ;;  %v5181_v56 = vld [vmem:[%s6753_s4 + $0x10] sm:$0xf] }
  0x95   : > { %v821_v57 = vmul.f32 %v703_v39, %v5043_v19  ;;  %v820_v58 = vmul.f32 %v698_v42, %v5051_v27  ;;  %v869_v50 = vor.u32 %v868_v38, %v864_v17  ;;  %v5150_v3 = vshll.u32 %v5140_v37, 16 }
  0x96   : > { %v877_v5 = vor.u32 %v875_v29, %v873_v44  ;;  %v5156_v2 = vshrl.u32 %v5140_v37, 16  ;;  %v2026_v63 = vor.u32 %v2025_v45, %v2024_v49  ;;  %v502_v17 = vmul.f32 0.01, %v420_v32 }
  0x97   : > { %v5161_v13 = vpack.c.bf16 %v821_v57, %v820_v58  ;;  %v874_v19 = vsel %vm862_vm9, %v869_v50, %v873_v44  ;;  %v881_v27 = vrot.slane %v5150_v3, 1  ;;  %v2028_v10 = vrot.slane %v5150_v3, 2 }
  0x98   : > { %v713_v16 = vpop.permute.xlu1 %712  ;;  %v708_v22 = vpop.permute.xlu0 %707  ;;  %4382 = vmatprep.mubr.msk.bf16.mxu0 %vm1011_vm10, %v874_v19  ;;  %v2027_v0 = vrot.slane %v5156_v2, 1  ;;  %v487_v42 = vmul.f32 0.01, %v5137_v35  ;;  %v5193_v49 = vadd.f32 %v4944_v46, %v375_v25  ;;  %v374_v57 = vmul.f32 %v4176_v18, %v4932_v40 }
  0x99   : > { %6801 = vst [vmem:[#allocation2_spill] sm:$0xff] %v5161_v13  ;;  %v823_v24 = vmul.f32 %v713_v16, %v5053_v28  ;;  %v822_v31 = vmul.f32 %v708_v22, %v5063_v51  ;;  %v882_v33 = vsel %vm862_vm9, %v877_v5, %v881_v27  ;;  %v5176_v29 = vshll.u32 %v5161_v13, 16 }
  0x9a   : > { %4383 = vmatmul.mubr.msk.bf16.vlgmr.msra.gmra.mxu0 %vm1011_vm10, %v882_v33  ;;  %v404_v28 = vadd.f32 %v4944_v46, %v356_v36  ;;  %v5185_v38 = vor.u32 %v2028_v10, %v2027_v0  ;;  %v359_v36 = vmul.f32 %v4145_v26, %v4932_v40  ;;  %v5206_v5 = vshrl.u32 %v5161_v13, 16 }
  0x9b   : > { %v5187_v51 = vpack.c.bf16 %v823_v24, %v822_v31  ;;  %v6756_v39 = vrot.slane %v5176_v29, 1  ;;  %4457 = vmatpush3.bf16.msra.mxu0 %v1576_v62  ;;  %v5212_v18 = vsel %vm461_vm14, %v420_v32, %v502_v17  ;;  %v4144_v16 = vunpack.c.l.bf16 %v5153_v4  ;;  %v4206_v31 = vld [vmem:[%s4912_s24 + $0x88] sm:$0xff]  }
  0x9c   : > { %v633_v44 = vpop.permute.xlu1 %632  ;;  %v628_v45 = vpop.permute.xlu0 %627  ;;  %4729 = vmatprep.subr.msk.bf16.mxu0 %vm1066_vm0, %v5181_v56  ;;  %v5201_v58 = vsel %vm2023_vm13, %v2026_v63, %v5185_v38  ;;  %6804 = vst [vmem:[#allocation5_spill] sm:$0xff] %v5206_v5  ;;  %v486_v10 = vmul.f32 0.01, %v404_v28  ;;  %v2921_v63 = vrot.slane %v5156_v2, 2  ;;  %v2922_v25 = vrot.slane %v5150_v3, 3 }
  0x9d   : > { %6802 = vst [vmem:[#allocation3_spill] sm:$0xff] %v5187_v51  ;;  %6803 = vst [vmem:[#allocation4_spill] sm:$0xff] %v5201_v58  ;;  %v807_v50 = vmul.f32 %v633_v44, %v5065_v52  ;;  %v806_v62 = vmul.f32 %v628_v45, %v5077_v9  ;;  %v5209_v19 = vshll.u32 %v5187_v51, 16  ;;  %v949_v52 = vor.u32 %v5206_v5, %v6756_v39 }
  0x9e   : > { %v5226_v32 = vsel %vm446_vm15, %v5137_v35, %v487_v42  ;;  %vm445_vm1 = vcmp.ge.f32.partialorder %v404_v28, 0.0  ;;  %v5229_v4 = vmul.f32 0.01, %v5193_v49  ;;  %v1284_v24 = vsel %vm1066_vm0, %v4917_v34, 0 }
  0x9f   : > { %6805 = vst [vmem:[#allocation6_spill] sm:$0xff] %v5209_v19  ;;  %v5216_v22 = vpack.c.bf16 %v807_v50, %v806_v62  ;;  %v953_v9 = vrot.slane %v5209_v19, 1  ;;  %v5238_v45 = vadd.f32 %v4944_v46, %v374_v57  ;;  %v5248_v34 = vadd.f32 %v4944_v46, %v359_v36 }
  0xa0   : > { %v723_v26 = vpop.permute.xlu1 %722  ;;  %v718_v0 = vpop.permute.xlu0 %717  ;;  %vm464_vm2 = vcmp.ge.f32.partialorder %v5193_v49, 0.0  ;;  %v4181_v57 = vunpack.c.h.bf16 %v4206_v31  ;;  %v5256_v62 = vor.u32 %v2922_v25, %v2921_v63  ;;  %vm467_vm14 = vcmp.ge.f32.partialorder %v4973_v61, 0.0 }
  0xa1   : > { %v825_v33 = vmul.f32 %v723_v26, %v5083_v20  ;;  %v824_v17 = vmul.f32 %v718_v0, %v5086_v21  ;;  %v954_v44 = vsel %vm862_vm9, %v949_v52, %v953_v9  ;;  %v5242_v35 = vshll.u32 %v5216_v22, 16 }
  0xa2   : > { %4402 = vmatprep.mubr.msk.bf16.mxu1 %vm1011_vm10, %v954_v44  ;;  %v5245_v42 = vshrl.u32 %v5216_v22, 16  ;;  %v358_v20 = vmul.f32 %v4144_v16, %v4932_v40  ;;  %v5253_v21 = vsel %vm445_vm1, %v404_v28, %v486_v10  ;;  %v885_v0 = vor.u32 %v5156_v2, %v881_v27 }
  0xa3   : > { %v5251_v50 = vpack.c.bf16 %v825_v33, %v824_v17  ;;  %v889_v36 = vrot.slane %v5242_v35, 1  ;;  %v2032_v16 = vrot.slane %v5242_v35, 2  ;;  %v5265_v28 = vshrl.u32 %v5187_v51, 16 }
  0xa4   : > { %v643_v52 = vpop.permute.xlu1 %642  ;;  %v638_v26 = vpop.permute.xlu0 %637  ;;  %v2031_v44 = vrot.slane %v5245_v42, 1  ;;  %v406_v2 = vadd.f32 %v4944_v46, %v358_v20  ;;  %v4180_v27 = vunpack.c.l.bf16 %v4206_v31  ;;  %vm463_vm3 = vcmp.ge.f32.partialorder %v5238_v45, 0.0 }
  0xa5   : > { %6806 = vst [vmem:[#allocation7_spill] sm:$0xff] %v5251_v50  ;;  %6807 = vst [vmem:[#allocation8_spill] sm:$0xff] %v5265_v28  ;;  %v809_v10 = vmul.f32 %v643_v52, %v5088_v23  ;;  %v808_v63 = vmul.f32 %v638_v26, %v5092_v30  ;;  %v5270_v25 = vshll.u32 %v5251_v50, 16  ;;  %v890_v3 = vsel %vm862_vm9, %v885_v0, %v889_v36 }
  0xa6   : > { %v2033_v33 = vor.u32 %v2032_v16, %v2031_v44  ;;  %v957_v17 = vor.u32 %v5265_v28, %v953_v9  ;;  %4386 = vmatprep.mubr.msk.bf16.mxu0 %vm1011_vm10, %v890_v3  ;;  %v504_v52 = vmul.f32 0.01, %v5238_v45  ;;  %vm448_vm4 = vcmp.ge.f32.partialorder %v5248_v34, 0.0  ;;  %v5296_v16 = vld [vmem:[%s6753_s4 + $0xc] sm:$0xf] }
  0xa7   : > { %6808 = vst [vmem:[#allocation9_spill] sm:$0xff] %v5270_v25  ;;  %v5275_v39 = vpack.c.bf16 %v809_v10, %v808_v63  ;;  %v961_v19 = vrot.slane %v5270_v25, 1  ;;  %v377_v20 = vmul.f32 %v4181_v57, %v4932_v40  ;;  %vm447_vm5 = vcmp.ge.f32.partialorder %v406_v2, 0.0 }
  0xa8   : > { %v733_v23 = vpop.permute.xlu1 %732  ;;  %v728_v30 = vpop.permute.xlu0 %727  ;;  %v5285_v31 = vsel %vm2023_vm13, %v5185_v38, %v2033_v33  ;;  %v489_v38 = vmul.f32 0.01, %v5248_v34  ;;  %v893_v10 = vor.u32 %v5245_v42, %v889_v36  ;;  %vm2380_vm15 = vcmask 1045504  }
  0xa9   : > { %6809 = vst [vmem:[#allocation10_spill] sm:$0xff] %v5285_v31  ;;  %v827_v9 = vmul.f32 %v733_v23, %v5097_v41  ;;  %v826_v26 = vmul.f32 %v728_v30, %v5099_v43  ;;  %v962_v0 = vsel %vm862_vm9, %v957_v17, %v961_v19  ;;  %v5291_v44 = vshll.u32 %v5275_v39, 16 }
  0xaa   : > { %4403 = vmatmul.mubr.msk.bf16.vlgmr.msra.gmra.mxu1 %vm1011_vm10, %v962_v0  ;;  %v5300_v57 = vshrl.u32 %v5275_v39, 16  ;;  %v376_v41 = vmul.f32 %v4180_v27, %v4932_v40  ;;  %v5310_v30 = vshrl.u32 %v5251_v50, 16  ;;  %v488_v0 = vmul.f32 0.01, %v406_v2 }
  0xab   : > { %v5304_v43 = vpack.c.bf16 %v827_v9, %v826_v26  ;;  %v897_v63 = vrot.slane %v5291_v44, 1  ;;  %4419 = vmatpush3.bf16.msra.mxu1 %v1284_v24  ;;  %v2036_v3 = vrot.slane %v5291_v44, 2  ;;  %v425_v25 = vadd.f32 %v4944_v46, %v377_v20 }
  0xac   : > { %v653_v17 = vpop.permute.xlu1 %652  ;;  %v648_v23 = vpop.permute.xlu0 %647  ;;  %6811 = vst [vmem:[#allocation12_spill] sm:$0xff] %v5310_v30  ;;  %4728 = vmatprep.subr.msk.bf16.mxu1 %vm1066_vm0, %v5296_v16  ;;  %v2035_v40 = vrot.slane %v5300_v57, 1  ;;  %v5327_v20 = vsel %vm464_vm2, %v5193_v49, %v5229_v4  ;;  %v5332_v26 = vsel %vm463_vm3, %v5238_v45, %v504_v52  ;;  %v5345_v28 = vsel %vm447_vm5, %v406_v2, %v488_v0 }
  0xad   : > { %6810 = vst [vmem:[#allocation11_spill] sm:$0xff] %v5304_v43  ;;  %v811_v36 = vmul.f32 %v653_v17, %v5103_v53  ;;  %v810_v27 = vmul.f32 %v648_v23, %v5105_v59  ;;  %v898_v24 = vsel %vm862_vm9, %v893_v10, %v897_v63  ;;  %v5320_v9 = vshll.u32 %v5304_v43, 16 }
  0xae   : > { %4387 = vmatmul.mubr.msk.bf16.gmra.mxu0 %vm1011_vm10, %v898_v24  ;;  %v424_v53 = vadd.f32 %v4944_v46, %v376_v41  ;;  %v2037_v59 = vor.u32 %v2036_v3, %v2035_v40  ;;  %v965_v17 = vor.u32 %v5310_v30, %v961_v19  ;;  %v5342_v24 = vsel %vm448_vm4, %v5248_v34, %v489_v38 }
  0xaf   : > { %v5335_v10 = vpack.c.bf16 %v811_v36, %v810_v27  ;;  %v969_v23 = vrot.slane %v5320_v9, 1  ;;  %vm466_vm6 = vcmp.ge.f32.partialorder %v425_v25, 0.0  ;;  %v507_v45 = vmul.f32 0.01, %v425_v25 }
  0xb0   : > { %v743_v49 = vpop.permute.xlu1 %742  ;;  %v738_v4 = vpop.permute.xlu0 %737  ;;  %v5348_v46 = vsel %vm2023_vm13, %v2033_v33, %v2037_v59  ;;  %v5358_v34 = vshrl.u32 %v5304_v43, 16  ;;  %vm465_vm7 = vcmp.ge.f32.partialorder %v424_v53, 0.0  ;;  %v506_v33 = vmul.f32 0.01, %v424_v53 }
  0xb1   : > { %6812 = vst [vmem:[#allocation13_spill] sm:$0xff] %v5348_v46  ;;  %v829_v52 = vmul.f32 %v743_v49, %v5107_v60  ;;  %v828_v19 = vmul.f32 %v738_v4, %v5118_v8  ;;  %v970_v41 = vsel %vm862_vm9, %v965_v17, %v969_v23  ;;  %v5354_v3 = vshll.u32 %v5335_v10, 16 }
  0xb2   : > { %4406 = vmatprep.mubr.msk.bf16.mxu1 %vm1011_vm10, %v970_v41  ;;  %v5361_v2 = vshrl.u32 %v5335_v10, 16  ;;  %v901_v60 = vor.u32 %v5300_v57, %v897_v63  ;;  %v5369_v27 = vsel %vm466_vm6, %v425_v25, %v507_v45  ;;  %v491_v17 = vmul.f32 0.01, %v4947_v47 }
  0xb3   : > { %v5363_v38 = vpack.c.bf16 %v829_v52, %v828_v19  ;;  %v905_v8 = vrot.slane %v5354_v3, 1  ;;  %v2040_v0 = vrot.slane %v5354_v3, 2  ;;  %v2071_v41 = vrot.slane %v5358_v34, 1 }
  0xb4   : > { %v663_v40 = vpop.permute.xlu1 %662  ;;  %v658_v36 = vpop.permute.xlu0 %657  ;;  %v2039_v49 = vrot.slane %v5361_v2, 1  ;;  %v2072_v30 = vrot.slane %v5320_v9, 2  ;;  %vm470_vm1 = vcmp.ge.f32.partialorder %v4977_v1, 0.0  ;;  %vm469_vm2 = vcmp.ge.f32.partialorder %v4988_v6, 0.0 }
  0xb5   : > { %6813 = vst [vmem:[#allocation14_spill] sm:$0xff] %v5363_v38  ;;  %v813_v4 = vmul.f32 %v663_v40, %v5120_v11  ;;  %v812_v52 = vmul.f32 %v658_v36, %v5145_v48  ;;  %v906_v63 = vsel %vm862_vm9, %v901_v60, %v905_v8  ;;  %v5378_v19 = vshll.u32 %v5363_v38, 16 }
  0xb6   : > { %4390 = vmatprep.mubr.msk.bf16.mxu0 %vm1011_vm10, %v906_v63  ;;  %v5382_v25 = vshrl.u32 %v5363_v38, 16  ;;  %v2041_v45 = vor.u32 %v2040_v0, %v2039_v49  ;;  %v973_v11 = vor.u32 %v5358_v34, %v969_v23  ;;  %v5392_v63 = vsel %vm465_vm7, %v424_v53, %v506_v33 }
  0xb7   : > { %v5386_v5 = vpack.c.bf16 %v813_v4, %v812_v52  ;;  %v977_v48 = vrot.slane %v5378_v19, 1  ;;  %v2076_v60 = vrot.slane %v5378_v19, 2  ;;  %v490_v33 = vmul.f32 0.01, %v4959_v54 }
  0xb8   : > { %v753_v40 = vpop.permute.xlu1 %752  ;;  %v748_v36 = vpop.permute.xlu0 %747  ;;  %v5396_v0 = vsel %vm2023_vm13, %v2037_v59, %v2041_v45  ;;  %v2075_v49 = vrot.slane %v5382_v25, 1  ;;  %v5410_v59 = vor.u32 %v2072_v30, %v2071_v41  ;;  %vm1483_vm3 = vcmask 1046528  }
  0xb9   : > { %6814 = vst [vmem:[#allocation15_spill] sm:$0xff] %v5396_v0  ;;  %v831_v4 = vmul.f32 %v753_v40, %v5159_v12  ;;  %v830_v23 = vmul.f32 %v748_v36, %v5212_v18  ;;  %v978_v52 = vsel %vm862_vm9, %v973_v11, %v977_v48  ;;  %v5403_v46 = vshll.u32 %v5386_v5, 16 }
  0xba   : > { %4407 = vmatmul.mubr.msk.bf16.gmra.mxu1 %vm1011_vm10, %v978_v52  ;;  %v5407_v53 = vshrl.u32 %v5386_v5, 16  ;;  %6815 = vst [vmem:[#allocation16_spill] sm:$0xff] %v5410_v59  ;;  %v2077_v0 = vor.u32 %v2076_v60, %v2075_v49  ;;  %v909_v12 = vor.u32 %v5361_v2, %v905_v8  ;;  %v509_v52 = vmul.f32 0.01, %v4962_v55 }
  0xbb   : > { %v5412_v31 = vpack.c.bf16 %v831_v4, %v830_v23  ;;  %v913_v18 = vrot.slane %v5403_v46, 1  ;;  %v2044_v11 = vrot.slane %v5403_v46, 2  ;;  %v5437_v23 = vsel %vm450_vm8, %v4947_v47, %v491_v17 }
  0xbc   : > { %v673_v40 = vpop.permute.xlu1 %672  ;;  %v668_v36 = vpop.permute.xlu0 %667  ;;  %v2043_v58 = vrot.slane %v5407_v53, 1  ;;  %v5422_v30 = vsel %vm2023_vm13, %v5410_v59, %v2077_v0  ;;  %v5452_v47 = vsel %vm468_vm12, %v4962_v55, %v509_v52  ;;  %vm471_vm4 = vcmp.ge.f32.partialorder %v4991_v7, 0.0 }
  0xbd   : > { %6816 = vst [vmem:[#allocation17_spill] sm:$0xff] %v5412_v31  ;;  %6817 = vst [vmem:[#allocation18_spill] sm:$0xff] %v5422_v30  ;;  %v815_v41 = vmul.f32 %v673_v40, %v5226_v32  ;;  %v814_v8 = vmul.f32 %v668_v36, %v5253_v21  ;;  %v914_v60 = vsel %vm862_vm9, %v909_v12, %v913_v18  ;;  %v5428_v49 = vshll.u32 %v5412_v31, 16 }
  0xbe   : > { %4391 = vmatmul.mubr.msk.bf16.gmra.mxu0 %vm1011_vm10, %v914_v60  ;;  %v5432_v4 = vshrl.u32 %v5412_v31, 16  ;;  %v5442_v32 = vsel %vm449_vm11, %v4959_v54, %v490_v33  ;;  %v2045_v21 = vor.u32 %v2044_v11, %v2043_v58  ;;  %v981_v40 = vor.u32 %v5382_v25, %v977_v48 }
  0xbf   : > { %v5444_v12 = vpack.c.bf16 %v815_v41, %v814_v8  ;;  %v985_v36 = vrot.slane %v5428_v49, 1  ;;  %v2080_v60 = vrot.slane %v5428_v49, 2  ;;  %v917_v55 = vor.u32 %v5407_v53, %v913_v18 }
  0xc0   : > { %v763_v30 = vpop.permute.xlu1 %762  ;;  %v758_v59 = vpop.permute.xlu0 %757  ;;  %v5456_v54 = vsel %vm2023_vm13, %v2041_v45, %v2045_v21  ;;  %v2079_v58 = vrot.slane %v5432_v4, 1  ;;  %v508_v45 = vmul.f32 0.01, %v4973_v61  ;;  %v512_v43 = vmul.f32 0.01, %v4991_v7 }
  0xc1   : > { %6818 = vst [vmem:[#allocation19_spill] sm:$0xff] %v5456_v54  ;;  %v833_v17 = vmul.f32 %v763_v30, %v5327_v20  ;;  %v832_v48 = vmul.f32 %v758_v59, %v5332_v26  ;;  %v986_v33 = vsel %vm862_vm9, %v981_v40, %v985_v36  ;;  %v5463_v11 = vshll.u32 %v5444_v12, 16 }
  0xc2   : > { %4410 = vmatprep.mubr.msk.bf16.mxu1 %vm1011_vm10, %v986_v33  ;;  %v5468_v52 = vshrl.u32 %v5444_v12, 16  ;;  %v2081_v41 = vor.u32 %v2080_v60, %v2079_v58  ;;  %v2392_v59 = vrot.slane %v5444_v12, 2  ;;  %v989_v31 = vor.u32 %v5432_v4, %v985_v36 }
  0xc3   : > { %v5471_v8 = vpack.c.bf16 %v833_v17, %v832_v48  ;;  %v921_v20 = vrot.slane %v5463_v11, 1  ;;  %v2048_v26 = vrot.slane %v5463_v11, 2  ;;  %vm2920_vm5 = vsmask.f32 5376 }
  0xc4   : > { %v683_v30 = vpop.permute.xlu1 %682  ;;  %v678_v40 = vpop.permute.xlu0 %677  ;;  %v2047_v33 = vrot.slane %v5468_v52, 1  ;;  %v5478_v18 = vsel %vm2023_vm13, %v2077_v0, %v2081_v41  ;;  %v549_v0 = vsel %vm467_vm14, %v4973_v61, %v508_v45  ;;  %v511_v61 = vmul.f32 0.01, %v4977_v1 }
  0xc5   : > { %6819 = vst [vmem:[#allocation20_spill] sm:$0xff] %v5471_v8  ;;  %6820 = vst [vmem:[#allocation21_spill] sm:$0xff] %v5478_v18  ;;  %v817_v60 = vmul.f32 %v683_v30, %v5342_v24  ;;  %v816_v58 = vmul.f32 %v678_v40, %v5345_v28  ;;  %v922_v17 = vsel %vm862_vm9, %v917_v55, %v921_v20  ;;  %v5485_v48 = vshll.u32 %v5471_v8, 16 }
  0xc6   : > { %4394 = vmatprep.mubr.msk.bf16.mxu0 %vm1011_vm10, %v922_v17  ;;  %v5493_v18 = vshrl.u32 %v5471_v8, 16  ;;  %v2049_v54 = vor.u32 %v2048_v26, %v2047_v33  ;;  %v6823_v30 = vrot.slane %v5386_v5, 2 }
  0xc7   : > { %6821 = vst [vmem:[#allocation22_spill] sm:$0xff] %v5485_v48  ;;  %v5495_v24 = vpack.c.bf16 %v817_v60, %v816_v58  ;;  %v993_v28 = vrot.slane %v5485_v48, 1  ;;  %v2084_v55 = vrot.slane %v5485_v48, 2 }
  0xc8   : > { %6822 = vst [vmem:[#allocation23_spill] sm:$0xff] %v5493_v18  ;;  %v5502_v40 = vsel %vm2380_vm15, %v6823_v30, %v2392_v59  ;;  %v773_v36 = vpop.permute.xlu1 %772  ;;  %v768_v17 = vpop.permute.xlu0 %767  ;;  %v5507_v45 = vsel %vm2023_vm13, %v2045_v21, %v2049_v54  ;;  %v2083_v26 = vrot.slane %v5493_v18, 1 }
  0xc9   : > { %6824 = vst [vmem:[#allocation24_spill] sm:$0xff] %v5502_v40  ;;  %6825 = vst [vmem:[#allocation25_spill] sm:$0xff] %v5507_v45  ;;  %v835_v33 = vmul.f32 %v773_v36, %v5369_v27  ;;  %v834_v60 = vmul.f32 %v768_v17, %v5392_v63  ;;  %v994_v58 = vsel %vm862_vm9, %v989_v31, %v993_v28  ;;  %v5514_v30 = vshll.u32 %v5495_v24, 16 }
  0xca   : > { %4411 = vmatmul.mubr.msk.bf16.gmra.mxu1 %vm1011_vm10, %v994_v58  ;;  %v925_v40 = vor.u32 %v5468_v52, %v921_v20  ;;  %v5520_v21 = vshrl.u32 %v5495_v24, 16  ;;  %v2085_v45 = vor.u32 %v2084_v55, %v2083_v26  ;;  %v510_v58 = vmul.f32 0.01, %v4988_v6 }
  0xcb   : > { %v5522_v8 = vpack.c.bf16 %v835_v33, %v834_v60  ;;  %v929_v27 = vrot.slane %v5514_v30, 1  ;;  %v2052_v31 = vrot.slane %v5514_v30, 2  ;;  %v997_v63 = vor.u32 %v5493_v18, %v993_v28 }
  0xcc   : > { %v693_v36 = vpop.permute.xlu1 %692  ;;  %v688_v17 = vpop.permute.xlu0 %687  ;;  %v2051_v20 = vrot.slane %v5520_v21, 1  ;;  %v5531_v38 = vsel %vm2023_vm13, %v2081_v41, %v2085_v45  ;;  %v1484_v28 = vrot.slane %v5125_v15, 1 }
  0xcd   : > { %6826 = vst [vmem:[#allocation26_spill] sm:$0xff] %v5522_v8  ;;  %6827 = vst [vmem:[#allocation27_spill] sm:$0xff] %v5531_v38  ;;  %v819_v55 = vmul.f32 %v693_v36, %v5437_v23  ;;  %v818_v26 = vmul.f32 %v688_v17, %v5442_v32  ;;  %v930_v33 = vsel %vm862_vm9, %v925_v40, %v929_v27  ;;  %v5537_v60 = vshll.u32 %v5522_v8, 16 }
  0xce   : > { %4395 = vmatmul.mubr.msk.bf16.gmra.mxu0 %vm1011_vm10, %v930_v33  ;;  %v5543_v50 = vshrl.u32 %v5522_v8, 16  ;;  %v2053_v41 = vor.u32 %v2052_v31, %v2051_v20  ;;  %v6829_v40 = vrot.slane %v5495_v24, 2 }
  0xcf   : > { %6828 = vst [vmem:[#allocation28_spill] sm:$0xff] %v5537_v60  ;;  %v5545_v38 = vpack.c.bf16 %v819_v55, %v818_v26  ;;  %v1001_v23 = vrot.slane %v5537_v60, 1  ;;  %v2088_v32 = vrot.slane %v5537_v60, 2 }
  0xd0   : > { %v5552_v36 = vsel %vm2380_vm15, %v2392_v59, %v6829_v40  ;;  %v783_v17 = vpop.permute.xlu1 %782  ;;  %v778_v33 = vpop.permute.xlu0 %777  ;;  %v5557_v51 = vsel %vm2023_vm13, %v2049_v54, %v2053_v41  ;;  %v2087_v31 = vrot.slane %v5543_v50, 1  ;;  %v552_v59 = vsel %vm470_vm1, %v4977_v1, %v511_v61 }
  0xd1   : > { %6830 = vst [vmem:[#allocation29_spill] sm:$0xff] %v5552_v36  ;;  %6831 = vst [vmem:[#allocation30_spill] sm:$0xff] %v5557_v51  ;;  %v837_v20 = vmul.f32 %v783_v17, %v5452_v47  ;;  %v836_v55 = vmul.f32 %v778_v33, %v549_v0  ;;  %v1002_v26 = vsel %vm862_vm9, %v997_v63, %v1001_v23  ;;  %v5563_v60 = vshll.u32 %v5545_v38, 16 }
  0xd2   : > { %4414 = vmatprep.mubr.msk.bf16.mxu1 %vm1011_vm10, %v1002_v26  ;;  %v551_v54 = vsel %vm469_vm2, %v4988_v6, %v510_v58  ;;  %v5573_v40 = vshrl.u32 %v5545_v38, 16  ;;  %v2089_v47 = vor.u32 %v2088_v32, %v2087_v31  ;;  %v933_v1 = vor.u32 %v5520_v21, %v929_v27 }
  0xd3   : > { %v5575_v0 = vpack.c.bf16 %v836_v55, %v836_v55  ;;  %v5577_v63 = vpack.c.bf16 %v837_v20, %v836_v55  ;;  %v937_v17 = vrot.slane %v5563_v60, 1  ;;  %v2056_v33 = vrot.slane %v5563_v60, 2 }
  0xd4   : > { %v793_v26 = vpop.permute.xlu1 %792  ;;  %v788_v13 = vpop.permute.xlu0 %787  ;;  %v553_v6 = vsel %vm471_vm4, %v4991_v7, %v512_v43  ;;  %v2055_v61 = vrot.slane %v5573_v40, 1  ;;  %v5587_v58 = vsel %vm2023_vm13, %v2085_v45, %v2089_v47  ;;  %v6833_v55 = vrot.slane %v5123_v14, 1 }
  0xd5   : > { %6832 = vst [vmem:[#allocation31_spill] sm:$0xff] %v5577_v63  ;;  %v1007_v32 = vshll.u32 %v5575_v0, 16  ;;  %v839_v31 = vmul.f32 %v793_v26, %v552_v59  ;;  %v838_v20 = vmul.f32 %v788_v13, %v551_v54  ;;  %v938_v51 = vsel %vm862_vm9, %v933_v1, %v937_v17 }
  0xd6   : > { %v1486_v36 = vsel %vm1483_vm3, %v1484_v28, %v6833_v55  ;;  %v941_v27 = vor.u32 %v5573_v40, %v937_v17  ;;  %v5595_v48 = vor.u32 %v2056_v33, %v2055_v61  ;;  %v6788_v7 = vshrl.u32 %v5577_v63, 16  ;;  %4398 = vmatprep.mubr.msk.bf16.mxu0 %vm1011_vm10, %v938_v51 }
  0xd7   : > { %v1009_v43 = vrot.slane %v1007_v32, 1  ;;  %v1792_v18 = vpack.c.bf16 %v838_v20, %v838_v20  ;;  %v5598_v45 = vpack.c.bf16 %v839_v31, %v838_v20  ;;  %v1005_v13 = vor.u32 %v5543_v50, %v1001_v23 }
  0xd8   : > { %v798_v59 = vpop.permute.xlu0 %797  ;;  %v6834_v54 = vrot.slane %v5176_v29, 1  ;;  %v5606_v26 = vrot.slane %v5522_v8, 1  ;;  %v5610_v17 = vsel %vm2023_vm13, %v2053_v41, %v5595_v48  ;;  %v2094_v33 = vrot.slane %v6788_v7, 1 }
  0xd9   : > { %v840_v1 = vmul.f32 %v798_v59, %v553_v6  ;;  %v1010_v51 = vsel %vm862_vm9, %v1005_v13, %v1009_v43  ;;  %v6787_v23 = vshll.u32 %v5577_v63, 16  ;;  %v1796_v61 = vrot.slane %v5577_v63, 1 }
  0xda   : > { %v946_v28 = vsel %vm862_vm9, %v941_v27, %v6834_v54  ;;  %4415 = vmatmul.mubr.msk.bf16.gmra.mxu1 %vm1011_vm10, %v1010_v51  ;;  %v2101_v32 = vshrl.u32 %v1792_v18, 16  ;;  %v2104_v31 = vshll.u32 %v1792_v18, 16  ;;  %v1798_v41 = vrot.slane %v1792_v18, 1 }
  0xdb   : > { %4399 = vmatmul.mubr.msk.bf16.gmra.mxu0 %vm1011_vm10, %v946_v28  ;;  %v6789_v20 = vrot.slane %v5545_v38, 2  ;;  %v5621_v55 = vpack.c.bf16 %v840_v1, %v840_v1  ;;  %4420 = vmatprep.mubr.msk.bf16.mxu1 %vm1011_vm10, %v5125_v15  ;;  %v1487_v6 = vrot.slane %v5140_v37, 1  ;;  %v2097_v27 = vrot.slane %v6787_v23, 2 }
  0xdc   : > { %4458 = vmatprep.mubr.msk.bf16.mxu0 %vm1011_vm10, %v1486_v36  ;;  %v5630_v36 = vsel %vm1483_vm3, %v5606_v26, %v1796_v61  ;;  %v2103_v43 = vrot.slane %v2101_v32, 1  ;;  %v2106_v13 = vrot.slane %v2104_v31, 2  ;;  %v5633_v59 = vsel %vm1483_vm3, %v1796_v61, %v1798_v41 }
  0xdd   : > { %v6835_v54 = vrot.slane %v5495_v24, 2  ;;  %v1489_v28 = vrot.slane %v5216_v22, 1  ;;  %v2695_v1 = vrot.slane %v5621_v55, 2  ;;  %v2098_v51 = vor.u32 %v2097_v27, %v2094_v33 }
  0xde   : > { %v2107_v23 = vor.u32 %v2106_v13, %v2103_v43  ;;  %v2929_v7 = vrot.slane %v5291_v44, 3  ;;  %v2928_v32 = vrot.slane %v5300_v57, 2  ;;  %v6836_v61 = vrot.slane %v5123_v14, 1 }
  0xdf   : > { %v5640_v15 = vsel %vm2380_vm15, %v6835_v54, %v6789_v20  ;;  %v1807_v41 = vsel %vm1066_vm0, %v5296_v16, 0  ;;  %v5654_v54 = vsel %vm2023_vm13, %v2089_v47, %v2098_v51  ;;  %v5660_v33 = vrot.slane %v5577_v63, 2 }
  0xe0   : > { %v5649_v31 = vsel %vm1483_vm3, %v6836_v61, %v1487_v6  ;;  %v5657_v20 = vsel %vm2023_vm13, %v2098_v51, %v2107_v23  ;;  %v2693_v44 = vrot.slane %v5598_v45, 2  ;;  %v5666_v57 = vsel %vm1483_vm3, %v1487_v6, %v1489_v28  ;;  %v5674_v23 = vld [vmem:[%s6753_s4 + $0x14] sm:$0xf] }
  0xe1   : > { %v2164_v16 = vsel %vm1066_vm0, %v5181_v56, 0  ;;  %v1491_v47 = vrot.slane %v5275_v39, 1  ;;  %v2416_v27 = vrot.slane %v1792_v18, 2  ;;  %v1493_v6 = vrot.slane %v5335_v10, 1  ;;  %v5684_v56 = vld [vmem:[%s6753_s4 + $0x18] sm:$0xf] }
  0xe2   : > { %4421 = vmatmul.mubr.msk.bf16.vlgmr.msra.gmra.mxu1 %vm1011_vm10, %v5123_v14  ;;  %v5688_v43 = vsel %vm2380_vm15, %v5660_v33, %v2693_v44  ;;  %v5691_v13 = vsel %vm2380_vm15, %v2693_v44, %v2695_v1  ;;  %v2924_v18 = vrot.slane %v5245_v42, 2  ;;  %vm3277_vm9 = vcmask 1044480  }
  0xe3   : > { %4459 = vmatmul.mubr.msk.bf16.vlgmr.msra.gmra.mxu0 %vm1011_vm10, %v5649_v31  ;;  %6837 = vst [vmem:[#allocation32_spill] sm:$0xff] %v5691_v13  ;;  %4495 = vmatpush3.bf16.msra.mxu1 %v1807_v41  ;;  %v5698_v51 = vsel %vm2380_vm15, %v5660_v33, %v2416_v27  ;;  %v2925_v61 = vrot.slane %v5242_v35, 3  ;;  %v2930_v1 = vor.u32 %v2929_v7, %v2928_v32  ;;  %v2932_v44 = vrot.slane %v5361_v2, 2 }
  0xe4   : > { %4462 = vmatprep.mubr.msk.bf16.mxu0 %vm1011_vm10, %v5666_v57  ;;  %4424 = vmatprep.mubr.msk.bf16.mxu1 %vm1011_vm10, %v5140_v37  ;;  %6838 = vst [vmem:[#allocation33_spill] sm:$0xff] %v5698_v51  ;;  %v2933_v42 = vrot.slane %v5354_v3, 3  ;;  %v5706_v41 = vsel %vm1483_vm3, %v1489_v28, %v1491_v47  ;;  %v6791_v51 = vrot.slane %v5386_v5, 3  ;;  %v3287_v35 = vrot.slane %v5444_v12, 3 }
  0xe5   : > { %4533 = vmatpush3.bf16.msra.mxu0 %v2164_v16  ;;  %4730 = vmatprep.subr.msk.bf16.mxu1 %vm1066_vm0, %v5674_v23  ;;  %v2926_v27 = vor.u32 %v2925_v61, %v2924_v18  ;;  %v5713_v16 = vsel %vm1483_vm3, %v1491_v47, %v1493_v6  ;;  %v2936_v7 = vrot.slane %v5407_v53, 2  ;;  %v2937_v2 = vrot.slane %v5403_v46, 3 }
  0xe6   : > { %4731 = vmatprep.subr.msk.bf16.mxu0 %vm1066_vm0, %v5684_v56  ;;  %v2934_v13 = vor.u32 %v2933_v42, %v2932_v44  ;;  %v5727_v32 = vsel %vm3277_vm9, %v6791_v51, %v3287_v35  ;;  %v2940_v47 = vrot.slane %v5468_v52, 2  ;;  %v2941_v46 = vrot.slane %v5463_v11, 3 }
  0xe7   : > { %v5719_v3 = vsel %vm2920_vm5, %v5256_v62, %v2926_v27  ;;  %v5722_v28 = vsel %vm2920_vm5, %v2926_v27, %v2930_v1  ;;  %v2938_v53 = vor.u32 %v2937_v2, %v2936_v7  ;;  %v3289_v61 = vrot.slane %v5495_v24, 3 }
  0xe8   : > { %v5731_v18 = vsel %vm2920_vm5, %v2930_v1, %v2934_v13  ;;  %v6790_v62 = vrot.slane %v5545_v38, 3  ;;  %v2944_v44 = vrot.slane %v5520_v21, 2  ;;  %v2945_v42 = vrot.slane %v5514_v30, 3 }
  0xe9   : > { %v2948_v27 = vrot.slane %v5573_v40, 2  ;;  %v5746_v11 = vsel %vm2920_vm5, %v2934_v13, %v2938_v53  ;;  %v2942_v52 = vor.u32 %v2941_v46, %v2940_v47  ;;  %v5749_v1 = vsel %vm3277_vm9, %v3287_v35, %v3289_v61 }
  0xea   : > { %4425 = vmatmul.mubr.msk.bf16.gmra.mxu1 %vm1011_vm10, %v5216_v22  ;;  %6839 = vst [vmem:[#allocation34_spill] sm:$0xff] %v5749_v1  ;;  %v2949_v7 = vrot.slane %v5563_v60, 3  ;;  %v5757_v30 = vsel %vm3277_vm9, %v3289_v61, %v6790_v62  ;;  %v2946_v21 = vor.u32 %v2945_v42, %v2944_v44  ;;  %v1495_v40 = vrot.slane %v5386_v5, 1 }
  0xeb   : > { %4463 = vmatmul.mubr.msk.bf16.gmra.mxu0 %vm1011_vm10, %v5706_v41  ;;  %4428 = vmatprep.mubr.msk.bf16.mxu1 %vm1011_vm10, %v5275_v39  ;;  %6840 = vst [vmem:[#allocation35_spill] sm:$0xff] %v5757_v30  ;;  %v5761_v13 = vsel %vm2920_vm5, %v2938_v53, %v2942_v52  ;;  %v1497_v35 = vrot.slane %v5444_v12, 1  ;;  %v1499_v61 = vrot.slane %v5495_v24, 1  ;;  %v2964_v44 = vrot.slane %v5358_v34, 2 }
  0xec   : > { %4466 = vmatprep.mubr.msk.bf16.mxu0 %vm1011_vm10, %v5713_v16  ;;  %6841 = vst [vmem:[#allocation36_spill] sm:$0xff] %v5761_v13  ;;  %v5763_v2 = vor.u32 %v2949_v7, %v2948_v27  ;;  %v5767_v60 = vsel %vm2920_vm5, %v2942_v52, %v2946_v21  ;;  %v5774_v46 = vsel %vm1483_vm3, %v1493_v6, %v1495_v40  ;;  %v2965_v53 = vrot.slane %v5320_v9, 3 }
  0xed   : > { %6843 = vst [vmem:[#allocation38_spill] sm:$0xff] %v5767_v60  ;;  %v5782_v42 = vsel %vm1483_vm3, %v1495_v40, %v1497_v35  ;;  %v2968_v6 = vrot.slane %v5382_v25, 2  ;;  %v2969_v27 = vrot.slane %v5378_v19, 3  ;;  %v2972_v34 = vrot.slane %v5432_v4, 2  ;;  %v6846_v4 = vld [vmem:[#allocation23_spill] sm:$0xff] }
  0xee   : > { %6842 = vst [vmem:[#allocation37_spill] sm:$0xff] %v5763_v2  ;;  %v5771_v47 = vsel %vm2920_vm5, %v2946_v21, %v5763_v2  ;;  %v2998_v9 = vshrl.u32 %v5621_v55, 16  ;;  %v3001_v52 = vshll.u32 %v5621_v55, 16  ;;  %v5796_v7 = vsel %vm1483_vm3, %v1497_v35, %v1499_v61  ;;  %v6847_v2 = vld [vmem:[#allocation22_spill] sm:$0xff] }
  0xef   : > { %6844 = vst [vmem:[#allocation39_spill] sm:$0xff] %v5771_v47  ;;  %v5798_v21 = vor.u32 %v2965_v53, %v2964_v44  ;;  %v2970_v40 = vor.u32 %v2969_v27, %v2968_v6  ;;  %v2973_v62 = vrot.slane %v5428_v49, 3  ;;  %v3313_v25 = vrot.slane %v5621_v55, 3  ;;  %v6849_v44 = vld [vmem:[#allocation28_spill] sm:$0xff] }
  0xf0   : > { %v1501_v19 = vrot.slane %v5545_v38, 1  ;;  %v2976_v51 = vrot.slane %v6846_v4, 2  ;;  %v2977_v47 = vrot.slane %v6847_v2, 3  ;;  %v2980_v35 = vrot.slane %v5543_v50, 2 }
  0xf1   : > { %6845 = vst [vmem:[#allocation40_spill] sm:$0xff] %v5798_v21  ;;  %v5807_v60 = vsel %vm2920_vm5, %v5798_v21, %v2970_v40  ;;  %v2974_v30 = vor.u32 %v2973_v62, %v2972_v34  ;;  %v2981_v53 = vrot.slane %v6849_v44, 3  ;;  %v3000_v6 = vrot.slane %v2998_v9, 2  ;;  %v6857_v44 = vld [vmem:[#allocation3_spill] sm:$0xff] }
  0xf2   : > { %4429 = vmatmul.mubr.msk.bf16.gmra.mxu1 %vm1011_vm10, %v5335_v10  ;;  %6848 = vst [vmem:[#allocation23_spill] sm:$0xff] %v5807_v60  ;;  %v3003_v27 = vrot.slane %v3001_v52, 3  ;;  %v2978_v49 = vor.u32 %v2977_v47, %v2976_v51  ;;  %v6794_v55 = vrot.slane %v5577_v63, 3  ;;  %v3311_v2 = vrot.slane %v5598_v45, 3 }
  0xf3   : > { %4467 = vmatmul.mubr.msk.bf16.gmra.mxu0 %vm1011_vm10, %v5774_v46  ;;  %4432 = vmatprep.mubr.msk.bf16.mxu1 %vm1011_vm10, %v5386_v5  ;;  %v5813_v1 = vsel %vm2920_vm5, %v2970_v40, %v2974_v30  ;;  %v2982_v4 = vor.u32 %v2981_v53, %v2980_v35  ;;  %v6851_v13 = vshrl.u32 %v5577_v63, 16  ;;  %v5821_v50 = vsel %vm1483_vm3, %v1499_v61, %v1501_v19 }
  0xf4   : > { %4470 = vmatprep.mubr.msk.bf16.mxu0 %vm1011_vm10, %v5782_v42  ;;  %6850 = vst [vmem:[#allocation22_spill] sm:$0xff] %v5813_v1  ;;  %v5824_v62 = vsel %vm2920_vm5, %v2974_v30, %v2978_v49  ;;  %v6853_v51 = vshll.u32 %v5577_v63, 16  ;;  %v2989_v34 = vshrl.u32 %v5598_v45, 16  ;;  %v5839_v61 = vsel %vm3277_vm9, %v6794_v55, %v3311_v2 }
  0xf5   : > { %v2984_v21 = vrot.slane %v6851_v13, 2  ;;  %6852 = vst [vmem:[#allocation28_spill] sm:$0xff] %v5824_v62  ;;  %v5834_v13 = vsel %vm2920_vm5, %v2978_v49, %v2982_v4  ;;  %6855 = vst [vmem:[#allocation42_spill] sm:$0xff] %v5839_v61  ;;  %v2992_v30 = vshll.u32 %v5598_v45, 16  ;;  %v5843_v9 = vsel %vm3277_vm9, %v3311_v2, %v3313_v25 }
  0xf6   : > { %v2985_v47 = vrot.slane %v6853_v51, 3  ;;  %6854 = vst [vmem:[#allocation41_spill] sm:$0xff] %v5834_v13  ;;  %6856 = vst [vmem:[#allocation43_spill] sm:$0xff] %v5843_v9  ;;  %v2991_v40 = vrot.slane %v2989_v34, 2  ;;  %v1505_v53 = vrot.slane %v6857_v44, 1  ;;  %v6859_v51 = vld [vmem:[#allocation2_spill] sm:$0xff] }
  0xf7   : > { %v2994_v35 = vrot.slane %v2992_v30, 3  ;;  %v1503_v55 = vrot.slane %v6859_v51, 1 }
  0xf8   : > { %v2986_v52 = vor.u32 %v2985_v47, %v2984_v21  ;;  %v6864_v47 = vld [vmem:[#allocation14_spill] sm:$0xff] }
  0xf9   : > { %v2995_v61 = vor.u32 %v2994_v35, %v2991_v40  ;;  %v5853_v45 = vsel %vm1483_vm3, %v1501_v19, %v1503_v55  ;;  %v5864_v21 = vsel %vm1483_vm3, %v1503_v55, %v1505_v53  ;;  %v6862_v19 = vld [vmem:[#allocation7_spill] sm:$0xff]  ;;  %v1511_v34 = vrot.slane %v6864_v47, 1  ;;  %v6866_v35 = vld [vmem:[#allocation20_spill] sm:$0xff] }
  0xfa   : > { %4433 = vmatmul.mubr.msk.bf16.gmra.mxu1 %vm1011_vm10, %v5444_v12  ;;  %v3004_v12 = vor.u32 %v3003_v27, %v3000_v6  ;;  %v5849_v49 = vsel %vm2920_vm5, %v2982_v4, %v2986_v52  ;;  %v1507_v6 = vrot.slane %v6862_v19, 1  ;;  %v6863_v27 = vld [vmem:[#allocation11_spill] sm:$0xff]  ;;  %v2406_v63 = vrot.slane %v6864_v47, 2 }
  0xfb   : > { %4471 = vmatmul.mubr.msk.bf16.gmra.mxu0 %vm1011_vm10, %v5796_v7  ;;  %4436 = vmatprep.mubr.msk.bf16.mxu1 %vm1011_vm10, %v5495_v24  ;;  %6858 = vst [vmem:[#allocation3_spill] sm:$0xff] %v5849_v49  ;;  %v5856_v25 = vsel %vm2920_vm5, %v2986_v52, %v2995_v61  ;;  %v1509_v4 = vrot.slane %v6863_v27, 1 }
  0xfc   : > { %4474 = vmatprep.mubr.msk.bf16.mxu0 %vm1011_vm10, %v5821_v50  ;;  %6860 = vst [vmem:[#allocation2_spill] sm:$0xff] %v5856_v25  ;;  %v5859_v24 = vsel %vm2920_vm5, %v2995_v61, %v3004_v12  ;;  %v5875_v2 = vsel %vm1483_vm3, %v1505_v53, %v1507_v6  ;;  %v6865_v61 = vld [vmem:[#allocation17_spill] sm:$0xff]  ;;  %v1515_v12 = vrot.slane %v6866_v35, 1 }
  0xfd   : > { %6861 = vst [vmem:[#allocation44_spill] sm:$0xff] %v5859_v24  ;;  %v5880_v55 = vsel %vm1483_vm3, %v1507_v6, %v1509_v4  ;;  %v1513_v30 = vrot.slane %v6865_v61, 1  ;;  %v5891_v52 = vsel %vm1483_vm3, %v1509_v4, %v1511_v34  ;;  %v1519_v4 = vrot.slane %v5575_v0, 1  ;;  %v6868_v24 = vld [vmem:[#allocation10_spill] sm:$0xff] }
  0xfe   : > { %v1518_v6 = vsel %vm1483_vm3, %v1515_v12, %v5606_v26  ;;  %v2704_v0 = vsel %vm1066_vm0, %v5684_v56, 0  ;;  %v6872_v56 = vld [vmem:[#allocation25_spill] sm:$0xff]  ;;  %v2408_v13 = vrot.slane %v6865_v61, 2 }
  0xff   : > { %v5896_v40 = vsel %vm1483_vm3, %v1511_v34, %v1513_v30  ;;  %v1516_v53 = vsel %vm1483_vm3, %v1513_v30, %v1515_v12  ;;  %v1520_v34 = vsel %vm1483_vm3, %v5606_v26, %v1519_v4  ;;  %v6867_v30 = vld [vmem:[#allocation4_spill] sm:$0xff]  ;;  %v2473_v12 = vsel %vm1066_vm0, %v5674_v23, 0  ;;  %v5933_v26 = vld [vmem:[%s6753_s4 + $0x1c] sm:$0xf]  ;;  %v6870_v23 = vld [vmem:[#allocation15_spill] sm:$0xff] }
 0x100   : > { %v6869_v4 = vld [vmem:[#allocation13_spill] sm:$0xff] }
 0x102   : > { %4437 = vmatmul.mubr.msk.bf16.gmra.mxu1 %vm1011_vm10, %v5545_v38 }
 0x103   : > { %4475 = vmatmul.mubr.msk.bf16.gmra.mxu0 %vm1011_vm10, %v5853_v45  ;;  %4440 = vmatprep.mubr.msk.bf16.mxu1 %vm1011_vm10, %v6859_v51 }
 0x104   : > { %4478 = vmatprep.mubr.msk.bf16.mxu0 %vm1011_vm10, %v5864_v21 }
 0x10a   : > { %4441 = vmatmul.mubr.msk.bf16.gmra.mxu1 %vm1011_vm10, %v6857_v44 }
 0x10b   : > { %4479 = vmatmul.mubr.msk.bf16.gmra.mxu0 %vm1011_vm10, %v5875_v2  ;;  %4444 = vmatprep.mubr.msk.bf16.mxu1 %vm1011_vm10, %v6862_v19 }
 0x10c   : > { %4482 = vmatprep.mubr.msk.bf16.mxu0 %vm1011_vm10, %v5880_v55 }
 0x112   : > { %4445 = vmatmul.mubr.msk.bf16.gmra.mxu1 %vm1011_vm10, %v6863_v27 }
 0x113   : > { %4483 = vmatmul.mubr.msk.bf16.gmra.mxu0 %vm1011_vm10, %v5891_v52  ;;  %4448 = vmatprep.mubr.msk.bf16.mxu1 %vm1011_vm10, %v6864_v47 }
 0x114   : > { %4486 = vmatprep.mubr.msk.bf16.mxu0 %vm1011_vm10, %v5896_v40 }
 0x11a   : > { %4449 = vmatmul.mubr.msk.bf16.gmra.mxu1 %vm1011_vm10, %v6865_v61  ;;  %v2412_v61 = vrot.slane %v5522_v8, 2 }
 0x11b   : > { %4487 = vmatmul.mubr.msk.bf16.gmra.mxu0 %vm1011_vm10, %v1516_v53  ;;  %4452 = vmatprep.mubr.msk.bf16.mxu1 %vm1011_vm10, %v6866_v35 }
 0x11c   : > { %4490 = vmatprep.mubr.msk.bf16.mxu0 %vm1011_vm10, %v1518_v6 }
 0x122   : > { %4453 = vmatmul.mubr.msk.bf16.gmra.mxu1 %vm1011_vm10, %v5522_v8 }
 0x123   : > { %4491 = vmatmul.mubr.msk.bf16.gmra.mxu0 %vm1011_vm10, %v1520_v34  ;;  %4496 = vmatprep.mubr.msk.bf16.mxu1 %vm1011_vm10, %v5649_v31  ;;  %v5942_v31 = vld [vmem:[%s6753_s4 + $0x20] sm:$0xf] }
 0x124   : > { %4534 = vmatprep.mubr.msk.bf16.mxu0 %vm1011_vm10, %v6867_v30  ;;  %v2060_v30 = vrot.slane %v5176_v29, 2 }
 0x12a   : > { %4497 = vmatmul.mubr.msk.bf16.vlgmr.msra.gmra.mxu1 %vm1011_vm10, %v5666_v57  ;;  %v6871_v57 = vld [vmem:[#allocation19_spill] sm:$0xff] }
 0x12b   : > { %4535 = vmatmul.mubr.msk.bf16.vlgmr.msra.gmra.mxu0 %vm1011_vm10, %v6868_v24  ;;  %4571 = vmatpush3.bf16.msra.mxu1 %v2473_v12  ;;  %v6874_v24 = vld [vmem:[#allocation5_spill] sm:$0xff]  ;;  %v6875_v12 = vld [vmem:[#allocation8_spill] sm:$0xff] }
 0x12c   : > { %4538 = vmatprep.mubr.msk.bf16.mxu0 %vm1011_vm10, %v6869_v4  ;;  %4500 = vmatprep.mubr.msk.bf16.mxu1 %vm1011_vm10, %v5706_v41  ;;  %v6873_v41 = vld [vmem:[#allocation30_spill] sm:$0xff]  ;;  %v2059_v34 = vrot.slane %v6874_v24, 1 }
 0x12d   : > { %4609 = vmatpush3.bf16.msra.mxu0 %v2704_v0  ;;  %4732 = vmatprep.subr.msk.bf16.mxu1 %vm1066_vm0, %v5933_v26  ;;  %v2063_v0 = vrot.slane %v6875_v12, 1 }
 0x12e   : > { %4733 = vmatprep.subr.msk.bf16.mxu0 %vm1066_vm0, %v5942_v31 }
 0x132   : > { %4501 = vmatmul.mubr.msk.bf16.gmra.mxu1 %vm1011_vm10, %v5713_v16  ;;  %v2061_v16 = vor.u32 %v2060_v30, %v2059_v34 }
 0x133   : > { %4539 = vmatmul.mubr.msk.bf16.gmra.mxu0 %vm1011_vm10, %v6870_v23  ;;  %4504 = vmatprep.mubr.msk.bf16.mxu1 %vm1011_vm10, %v5774_v46  ;;  %v6876_v46 = vld [vmem:[#allocation6_spill] sm:$0xff] }
 0x134   : > { %4542 = vmatprep.mubr.msk.bf16.mxu0 %vm1011_vm10, %v6871_v57  ;;  %v2064_v4 = vrot.slane %v6876_v46, 2  ;;  %v2062_v23 = vsel %vm2023_vm13, %v5595_v48, %v2061_v16  ;;  %v6877_v57 = vld [vmem:[#allocation12_spill] sm:$0xff] }
 0x13a   : > { %4505 = vmatmul.mubr.msk.bf16.gmra.mxu1 %vm1011_vm10, %v5782_v42  ;;  %v2067_v42 = vrot.slane %v6877_v57, 1 }
 0x13b   : > { %4543 = vmatmul.mubr.msk.bf16.gmra.mxu0 %vm1011_vm10, %v6872_v56  ;;  %4508 = vmatprep.mubr.msk.bf16.mxu1 %vm1011_vm10, %v5796_v7  ;;  %v6878_v56 = vld [vmem:[#allocation9_spill] sm:$0xff]  ;;  %v2065_v7 = vor.u32 %v2064_v4, %v2063_v0 }
 0x13c   : > { %4546 = vmatprep.mubr.msk.bf16.mxu0 %vm1011_vm10, %v6873_v41  ;;  %v2068_v41 = vrot.slane %v6878_v56, 2 }
 0x13d   : > { %v2066_v30 = vsel %vm2023_vm13, %v2061_v16, %v2065_v7  ;;  %v6881_v16 = vld [vmem:[#allocation21_spill] sm:$0xff] }
 0x13e   : > { %v2069_v34 = vor.u32 %v2068_v41, %v2067_v42  ;;  %v3370_v42 = vsel %vm1066_vm0, %v5942_v31, 0 }
 0x140   : > { %v2070_v48 = vsel %vm2023_vm13, %v2065_v7, %v2069_v34 }
 0x142   : > { %4509 = vmatmul.mubr.msk.bf16.gmra.mxu1 %vm1011_vm10, %v5821_v50 }
 0x143   : > { %4547 = vmatmul.mubr.msk.bf16.gmra.mxu0 %vm1011_vm10, %v5610_v17  ;;  %4512 = vmatprep.mubr.msk.bf16.mxu1 %vm1011_vm10, %v5853_v45  ;;  %v6879_v17 = vld [vmem:[#allocation16_spill] sm:$0xff]  ;;  %v6880_v45 = vld [vmem:[#allocation18_spill] sm:$0xff] }
 0x144   : > { %4550 = vmatprep.mubr.msk.bf16.mxu0 %vm1011_vm10, %v2062_v23  ;;  %v2074_v50 = vsel %vm2023_vm13, %v2069_v34, %v6879_v17  ;;  %v3061_v23 = vsel %vm1066_vm0, %v5933_v26, 0  ;;  %v6884_v17 = vld [vmem:[#allocation24_spill] sm:$0xff]  ;;  %vm3772_vm0 = vcmask 125952  }
 0x14a   : > { %4513 = vmatmul.mubr.msk.bf16.gmra.mxu1 %vm1011_vm10, %v5864_v21  ;;  %v6882_v21 = vld [vmem:[#allocation27_spill] sm:$0xff] }
 0x14b   : > { %4551 = vmatmul.mubr.msk.bf16.gmra.mxu0 %vm1011_vm10, %v2066_v30  ;;  %4516 = vmatprep.mubr.msk.bf16.mxu1 %vm1011_vm10, %v5875_v2  ;;  %v6883_v30 = vrot.slane %v5386_v5, 2 }
 0x14c   : > { %4554 = vmatprep.mubr.msk.bf16.mxu0 %vm1011_vm10, %v2070_v48 }
 0x152   : > { %4517 = vmatmul.mubr.msk.bf16.gmra.mxu1 %vm1011_vm10, %v5880_v55  ;;  %v2384_v55 = vrot.slane %v5216_v22, 2 }
 0x153   : > { %4555 = vmatmul.mubr.msk.bf16.gmra.mxu0 %vm1011_vm10, %v2074_v50  ;;  %4520 = vmatprep.mubr.msk.bf16.mxu1 %vm1011_vm10, %v5891_v52  ;;  %v2382_v52 = vrot.slane %v5140_v37, 2 }
 0x154   : > { %4558 = vmatprep.mubr.msk.bf16.mxu0 %vm1011_vm10, %v6880_v45 }
 0x15a   : > { %4521 = vmatmul.mubr.msk.bf16.gmra.mxu1 %vm1011_vm10, %v5896_v40  ;;  %v6012_v2 = vpop.f32.mrf.mxu0 }
 0x15b   : > { %4559 = vmatmul.mubr.msk.bf16.gmra.mxu0 %vm1011_vm10, %v6881_v16  ;;  %4524 = vmatprep.mubr.msk.bf16.mxu1 %vm1011_vm10, %v1516_v53  ;;  %v2381_v53 = vrot.slane %v5123_v14, 2  ;;  %v2388_v14 = vrot.slane %v5335_v10, 2 }
 0x15c   : > { %4562 = vmatprep.mubr.msk.bf16.mxu0 %vm1011_vm10, %v6882_v21  ;;  %v6016_v40 = vpop.f32.mrf.mxu0 }
 0x15d   : > { %v2391_v31 = vsel %vm2380_vm15, %v2388_v14, %v6883_v30 }
 0x162   : > { %4525 = vmatmul.mubr.msk.bf16.gmra.mxu1 %vm1011_vm10, %v1518_v6  ;;  %v2386_v6 = vrot.slane %v5275_v39, 2 }
 0x163   : > { %4563 = vmatmul.mubr.msk.bf16.gmra.mxu0 %vm1011_vm10, %v5587_v58  ;;  %4528 = vmatprep.mubr.msk.bf16.mxu1 %vm1011_vm10, %v5630_v36  ;;  %v2385_v58 = vsel %vm2380_vm15, %v2382_v52, %v2384_v55  ;;  %v2383_v36 = vsel %vm2380_vm15, %v2381_v53, %v2382_v52 }
 0x164   : > { %4566 = vmatprep.mubr.msk.bf16.mxu0 %vm1011_vm10, %v5654_v54  ;;  %v6027_v54 = vpop.f32.mrf.mxu0  ;;  %v2387_v4 = vsel %vm2380_vm15, %v2384_v55, %v2386_v6  ;;  %v6885_v55 = vld [vmem:[#allocation29_spill] sm:$0xff] }
 0x166   : > { %v6031_v0 = vpop.f32.mrf.mxu0 }
 0x16a   : > { %4529 = vmatmul.mubr.msk.bf16.gmra.mxu1 %vm1011_vm10, %v5633_v59  ;;  %v2389_v59 = vsel %vm2380_vm15, %v2386_v6, %v2388_v14  ;;  %v2398_v6 = vrot.slane %v6859_v51, 2 }
 0x16b   : > { %4567 = vmatmul.mubr.msk.bf16.gmra.mxu0 %vm1011_vm10, %v5657_v20  ;;  %4572 = vmatprep.mubr.msk.bf16.mxu1 %vm1011_vm10, %v2383_v36  ;;  %v6033_v20 = vpop.f32.mrf.mxu1 }
 0x16c   : > { %4610 = vmatprep.mubr.msk.bf16.mxu0 %vm1011_vm10, %v2385_v58 }
 0x16d   : > { %v6047_v7 = vpop.f32.mrf.mxu1 }
 0x16e   : > { %v6042_v41 = vpop.f32.mrf.mxu0 }
 0x16f   : > { %v6051_v34 = vpop.f32.mrf.mxu1 }
 0x170   : > { %v6049_v26 = vpop.f32.mrf.mxu0 }
 0x171   : > { %v6063_v50 = vpop.f32.mrf.mxu1 }
 0x172   : > { %4573 = vmatmul.mubr.msk.bf16.vlgmr.msra.gmra.mxu1 %vm1011_vm10, %v2385_v58  ;;  %v6057_v48 = vpop.f32.mrf.mxu0  ;;  %v2400_v58 = vrot.slane %v6857_v44, 2 }
 0x173   : > { %4611 = vmatmul.mubr.msk.bf16.vlgmr.msra.gmra.mxu0 %vm1011_vm10, %v2387_v4  ;;  %4647 = vmatpush3.bf16.msra.mxu1 %v3061_v23 }
 0x174   : > { %4614 = vmatprep.mubr.msk.bf16.mxu0 %vm1011_vm10, %v2389_v59  ;;  %4576 = vmatprep.mubr.msk.bf16.mxu1 %vm1011_vm10, %v2387_v4  ;;  %v6065_v45 = vpop.f32.mrf.mxu0  ;;  %v6888_v4 = vrot.slane %v5545_v38, 2 }
 0x175   : > { %4685 = vmatpush3.bf16.msra.mxu0 %v3370_v42 }
 0x176   : > { %v2399_v23 = vsel %vm2380_vm15, %v6888_v4, %v2398_v6 }
 0x17a   : > { %4577 = vmatmul.mubr.msk.bf16.gmra.mxu1 %vm1011_vm10, %v2389_v59  ;;  %v6067_v16 = vpop.f32.mrf.mxu1  ;;  %v2401_v59 = vsel %vm2380_vm15, %v2398_v6, %v2400_v58 }
 0x17b   : > { %4615 = vmatmul.mubr.msk.bf16.gmra.mxu0 %vm1011_vm10, %v2391_v31  ;;  %4580 = vmatprep.mubr.msk.bf16.mxu1 %vm1011_vm10, %v2391_v31 }
 0x17c   : > { %4618 = vmatprep.mubr.msk.bf16.mxu0 %vm1011_vm10, %v6884_v17  ;;  %v6073_v52 = vpop.f32.mrf.mxu1 }
 0x17d   : > { %6886 = vst [vmem:[#allocation7_spill] sm:$0xff] %v6073_v52 }
 0x17e   : > { %v6069_v21 = vpop.f32.mrf.mxu0  ;;  %v6084_v36 = vpop.f32.mrf.mxu1 }
 0x17f   : > { %6887 = vst [vmem:[#allocation4_spill] sm:$0xff] %v6084_v36 }
 0x180   : > { %v6081_v53 = vpop.f32.mrf.mxu0  ;;  %v6094_v42 = vpop.f32.mrf.mxu1 }
 0x181   : > { %6889 = vst [vmem:[#allocation10_spill] sm:$0xff] %v6094_v42 }
 0x182   : > { %4581 = vmatmul.mubr.msk.bf16.gmra.mxu1 %vm1011_vm10, %v6884_v17  ;;  %v6087_v14 = vpop.f32.mrf.mxu0  ;;  %v2402_v17 = vrot.slane %v6862_v19, 2 }
 0x183   : > { %4619 = vmatmul.mubr.msk.bf16.gmra.mxu0 %vm1011_vm10, %v6885_v55  ;;  %4584 = vmatprep.mubr.msk.bf16.mxu1 %vm1011_vm10, %v6885_v55  ;;  %v2404_v55 = vrot.slane %v6863_v27, 2 }
 0x184   : > { %4622 = vmatprep.mubr.msk.bf16.mxu0 %vm1011_vm10, %v5640_v15  ;;  %v6100_v30 = vpop.f32.mrf.mxu0  ;;  %v2403_v25 = vsel %vm2380_vm15, %v2400_v58, %v2402_v17 }
 0x18a   : > { %4585 = vmatmul.mubr.msk.bf16.gmra.mxu1 %vm1011_vm10, %v5640_v15  ;;  %v6102_v31 = vpop.f32.mrf.mxu1  ;;  %v2405_v15 = vsel %vm2380_vm15, %v2402_v17, %v2404_v55  ;;  %v2407_v17 = vsel %vm2380_vm15, %v2404_v55, %v2406_v63  ;;  %v2410_v55 = vrot.slane %v6866_v35, 2 }
 0x18b   : > { %4623 = vmatmul.mubr.msk.bf16.gmra.mxu0 %vm1011_vm10, %v2399_v23  ;;  %4588 = vmatprep.mubr.msk.bf16.mxu1 %vm1011_vm10, %v2399_v23  ;;  %6890 = vst [vmem:[#allocation13_spill] sm:$0xff] %v6102_v31 }
 0x18c   : > { %4626 = vmatprep.mubr.msk.bf16.mxu0 %vm1011_vm10, %v2401_v59  ;;  %v6108_v6 = vpop.f32.mrf.mxu1 }
 0x18d   : > { %6891 = vst [vmem:[#allocation15_spill] sm:$0xff] %v6108_v6 }
 0x18e   : > { %v6106_v4 = vpop.f32.mrf.mxu0  ;;  %v6120_v49 = vpop.f32.mrf.mxu1 }
 0x18f   : > { %6892 = vst [vmem:[#allocation19_spill] sm:$0xff] %v6120_v49 }
 0x190   : > { %v6110_v9 = vpop.f32.mrf.mxu0  ;;  %v6126_v58 = vpop.f32.mrf.mxu1 }
 0x191   : > { %6893 = vst [vmem:[#allocation25_spill] sm:$0xff] %v6126_v58 }
 0x192   : > { %4589 = vmatmul.mubr.msk.bf16.gmra.mxu1 %vm1011_vm10, %v2401_v59  ;;  %v6117_v23 = vpop.f32.mrf.mxu0  ;;  %v2409_v59 = vsel %vm2380_vm15, %v2406_v63, %v2408_v13 }
 0x193   : > { %4627 = vmatmul.mubr.msk.bf16.gmra.mxu0 %vm1011_vm10, %v2403_v25  ;;  %4592 = vmatprep.mubr.msk.bf16.mxu1 %vm1011_vm10, %v2403_v25 }
 0x194   : > { %4630 = vmatprep.mubr.msk.bf16.mxu0 %vm1011_vm10, %v2405_v15  ;;  %v6124_v62 = vpop.f32.mrf.mxu0 }
 0x19a   : > { %v6134_v25 = vpop.f32.mrf.mxu1  ;;  %4593 = vmatmul.mubr.msk.bf16.gmra.mxu1 %vm1011_vm10, %v2405_v15  ;;  %v2411_v15 = vsel %vm2380_vm15, %v2408_v13, %v2410_v55 }
 0x19b   : > { %v6129_v1 = vpop.f32.mrf.mxu0  ;;  %4631 = vmatmul.mubr.msk.bf16.gmra.mxu0 %vm1011_vm10, %v2407_v17  ;;  %6894 = vst [vmem:[#allocation30_spill] sm:$0xff] %v6134_v25  ;;  %4596 = vmatprep.mubr.msk.bf16.mxu1 %vm1011_vm10, %v2407_v17  ;;  %v2413_v17 = vsel %vm2380_vm15, %v2410_v55, %v2412_v61 }
 0x19c   : > { %4634 = vmatprep.mubr.msk.bf16.mxu0 %vm1011_vm10, %v2409_v59  ;;  %v6140_v49 = vpop.f32.mrf.mxu1 }
 0x19d   : > { %v6137_v60 = vpop.f32.mrf.mxu0  ;;  %6895 = vst [vmem:[#allocation5_spill] sm:$0xff] %v6140_v49 }
 0x19e   : > { %v6146_v6 = vpop.f32.mrf.mxu1 }
 0x19f   : > { %v6143_v58 = vpop.f32.mrf.mxu0  ;;  %6896 = vst [vmem:[#allocation8_spill] sm:$0xff] %v6146_v6 }
 0x1a0   : > { %v6150_v47 = vpop.f32.mrf.mxu1 }
 0x1a1   : > { %v6148_v63 = vpop.f32.mrf.mxu0  ;;  %6897 = vst [vmem:[#allocation6_spill] sm:$0xff] %v6150_v47 }
 0x1a2   : > { %v4422_v49 = vpop.f32.mrf.mxu1  ;;  %4597 = vmatmul.mubr.msk.bf16.gmra.mxu1 %vm1011_vm10, %v2409_v59  ;;  %v2415_v59 = vsel %vm2380_vm15, %v2412_v61, %v5660_v33 }
 0x1a3   : > { %v4460_v25 = vpop.f32.mrf.mxu0  ;;  %4635 = vmatmul.mubr.msk.bf16.gmra.mxu0 %vm1011_vm10, %v2411_v15  ;;  %v1329_v8 = vadd.f32 %v4422_v49, %v6012_v2  ;;  %4600 = vmatprep.mubr.msk.bf16.mxu1 %vm1011_vm10, %v2411_v15 }
 0x1a4   : > { %4638 = vmatprep.mubr.msk.bf16.mxu0 %vm1011_vm10, %v2413_v17  ;;  %v1320_v6 = vpop.f32.mrf.mxu1 }
 0x1a5   : > { %v1612_v35 = vpop.f32.mrf.mxu0  ;;  %v1321_v47 = vadd.f32 %v1320_v6, %v6016_v40  ;;  %v6160_v13 = vadd.f32 %v4460_v25, %v1329_v8 }
 0x1a6   : > { %v4423_v42 = vpop.f32.mrf.mxu1 }
 0x1a7   : > { %v4461_v31 = vpop.f32.mrf.mxu0  ;;  %v1332_v36 = vadd.f32 %v4423_v42, %v6027_v54  ;;  %v6163_v27 = vadd.f32 %v1612_v35, %v1321_v47 }
 0x1a8   : > { %v1323_v52 = vpop.f32.mrf.mxu1 }
 0x1a9   : > { %v1615_v55 = vpop.f32.mrf.mxu0  ;;  %v1324_v49 = vadd.f32 %v1323_v52, %v6031_v0  ;;  %v6169_v15 = vadd.f32 %v4461_v31, %v1332_v36  ;;  %v3279_v0 = vrot.slane %v5216_v22, 3  ;;  %v3278_v31 = vrot.slane %v5140_v37, 3 }
 0x1aa   : > { %v4426_v8 = vpop.f32.mrf.mxu1  ;;  %4601 = vmatmul.mubr.msk.bf16.gmra.mxu1 %vm1011_vm10, %v2413_v17 }
 0x1ab   : > { %v4464_v2 = vpop.f32.mrf.mxu0  ;;  %4639 = vmatmul.mubr.msk.bf16.gmra.mxu0 %vm1011_vm10, %v2415_v59  ;;  %v1345_v47 = vadd.f32 %v4426_v8, %v6042_v41  ;;  %4604 = vmatprep.mubr.msk.bf16.mxu1 %vm1011_vm10, %v2415_v59  ;;  %v6176_v40 = vadd.f32 %v1615_v55, %v1324_v49  ;;  %v6898_v55 = vld [vmem:[#allocation32_spill] sm:$0xff]  ;;  %v3281_v8 = vrot.slane %v5275_v39, 3 }
 0x1ac   : > { %4642 = vmatprep.mubr.msk.bf16.mxu0 %vm1011_vm10, %v5688_v43  ;;  %v1336_v33 = vpop.f32.mrf.mxu1 }
 0x1ad   : > { %v1628_v35 = vpop.f32.mrf.mxu0  ;;  %v1337_v61 = vadd.f32 %v1336_v33, %v6049_v26  ;;  %v6180_v52 = vadd.f32 %v4464_v2, %v1345_v47  ;;  %v3280_v26 = vsel %vm3277_vm9, %v3278_v31, %v3279_v0  ;;  %v3283_v33 = vrot.slane %v5335_v10, 3 }
 0x1ae   : > { %v4427_v36 = vpop.f32.mrf.mxu1 }
 0x1af   : > { %v4465_v54 = vpop.f32.mrf.mxu0  ;;  %v1348_v43 = vadd.f32 %v4427_v36, %v6057_v48  ;;  %v6184_v41 = vadd.f32 %v1628_v35, %v1337_v61  ;;  %v6899_v48 = vld [vmem:[#allocation33_spill] sm:$0xff]  ;;  %v3284_v39 = vsel %vm3277_vm9, %v3281_v8, %v3283_v33 }
 0x1b0   : > { %v1339_v6 = vpop.f32.mrf.mxu1 }
 0x1b1   : > { %v1631_v42 = vpop.f32.mrf.mxu0  ;;  %v1340_v25 = vadd.f32 %v1339_v6, %v6065_v45  ;;  %v6190_v22 = vadd.f32 %v4465_v54, %v1348_v43 }
 0x1b2   : > { %v4430_v59 = vpop.f32.mrf.mxu1  ;;  %4605 = vmatmul.mubr.msk.bf16.gmra.mxu1 %vm1011_vm10, %v6899_v48 }
 0x1b3   : > { %v4468_v17 = vpop.f32.mrf.mxu0  ;;  %4643 = vmatmul.mubr.msk.bf16.gmra.mxu0 %vm1011_vm10, %v6898_v55  ;;  %v1361_v37 = vadd.f32 %v4430_v59, %v6069_v21  ;;  %4648 = vmatprep.mubr.msk.bf16.mxu1 %vm1011_vm10, %v5719_v3  ;;  %v6198_v45 = vadd.f32 %v1631_v42, %v1340_v25  ;;  %v3282_v3 = vsel %vm3277_vm9, %v3279_v0, %v3281_v8 }
 0x1b4   : > { %4686 = vmatprep.mubr.msk.bf16.mxu0 %vm1011_vm10, %v3280_v26  ;;  %v1352_v2 = vpop.f32.mrf.mxu1 }
 0x1b5   : > { %v1644_v49 = vpop.f32.mrf.mxu0  ;;  %v1353_v47 = vadd.f32 %v1352_v2, %v6081_v53  ;;  %v6203_v61 = vadd.f32 %v4468_v17, %v1361_v37 }
 0x1b6   : > { %v4431_v54 = vpop.f32.mrf.mxu1 }
 0x1b7   : > { %v4469_v35 = vpop.f32.mrf.mxu0  ;;  %v1364_v36 = vadd.f32 %v4431_v54, %v6087_v14  ;;  %v6206_v43 = vadd.f32 %v1644_v49, %v1353_v47 }
 0x1b8   : > { %v1355_v31 = vpop.f32.mrf.mxu1 }
 0x1b9   : > { %v1647_v21 = vpop.f32.mrf.mxu0  ;;  %v1356_v42 = vadd.f32 %v1355_v31, %v6100_v30  ;;  %v6212_v53 = vadd.f32 %v4469_v35, %v1364_v36 }
 0x1ba   : > { %v4434_v10 = vpop.f32.mrf.mxu1  ;;  %4649 = vmatmul.mubr.msk.bf16.vlgmr.msra.gmra.mxu1 %vm1011_vm10, %v5722_v28 }
 0x1bb   : > { %v4472_v6 = vpop.f32.mrf.mxu0  ;;  %4687 = vmatmul.mubr.msk.bf16.vlgmr.msra.gmra.mxu0 %vm1011_vm10, %v3282_v3  ;;  %v1377_v14 = vadd.f32 %v4434_v10, %v6106_v4  ;;  %4652 = vmatprep.mubr.msk.bf16.mxu1 %vm1011_vm10, %v5731_v18  ;;  %v6220_v30 = vadd.f32 %v1647_v21, %v1356_v42  ;;  %v6900_v4 = vrot.slane %v5386_v5, 3  ;;  %v6901_v5 = vld [vmem:[#allocation36_spill] sm:$0xff] }
 0x1bc   : > { %4690 = vmatprep.mubr.msk.bf16.mxu0 %vm1011_vm10, %v3284_v39  ;;  %v1368_v0 = vpop.f32.mrf.mxu1  ;;  %v6902_v39 = vld [vmem:[#allocation34_spill] sm:$0xff] }
 0x1bd   : > { %v1660_v25 = vpop.f32.mrf.mxu0  ;;  %v1369_v17 = vadd.f32 %v1368_v0, %v6110_v9  ;;  %v6223_v26 = vadd.f32 %v4472_v6, %v1377_v14  ;;  %v3286_v2 = vsel %vm3277_vm9, %v3283_v33, %v6900_v4  ;;  %v6903_v14 = vld [vmem:[#allocation35_spill] sm:$0xff]  ;;  %v2957_v0 = vrot.slane %v6876_v46, 3 }
 0x1be   : > { %v4435_v59 = vpop.f32.mrf.mxu1  ;;  %v3295_v4 = vrot.slane %v6857_v44, 3 }
 0x1bf   : > { %v4473_v55 = vpop.f32.mrf.mxu0  ;;  %v1380_v48 = vadd.f32 %v4435_v59, %v6117_v23  ;;  %v6226_v49 = vadd.f32 %v1660_v25, %v1369_v17  ;;  %v6904_v25 = vld [vmem:[#allocation38_spill] sm:$0xff]  ;;  %v2952_v59 = vrot.slane %v6874_v24, 2 }
 0x1c0   : > { %v1371_v28 = vpop.f32.mrf.mxu1 }
 0x1c1   : > { %v1663_v37 = vpop.f32.mrf.mxu0  ;;  %v1372_v18 = vadd.f32 %v1371_v28, %v6124_v62  ;;  %v6233_v9 = vadd.f32 %v4473_v55, %v1380_v48  ;;  %v6905_v55 = vld [vmem:[#allocation39_spill] sm:$0xff]  ;;  %v2953_v48 = vrot.slane %v5176_v29, 3 }
 0x1c2   : > { %v4438_v47 = vpop.f32.mrf.mxu1  ;;  %4653 = vmatmul.mubr.msk.bf16.gmra.mxu1 %vm1011_vm10, %v5746_v11 }
 0x1c3   : > { %v4476_v8 = vpop.f32.mrf.mxu0  ;;  %4691 = vmatmul.mubr.msk.bf16.gmra.mxu0 %vm1011_vm10, %v3286_v2  ;;  %v1393_v23 = vadd.f32 %v4438_v47, %v6129_v1  ;;  %4656 = vmatprep.mubr.msk.bf16.mxu1 %vm1011_vm10, %v6901_v5  ;;  %v6242_v33 = vadd.f32 %v1663_v37, %v1372_v18  ;;  %v2954_v24 = vor.u32 %v2953_v48, %v2952_v59  ;;  %v6906_v5 = vrot.slane %v5545_v38, 3 }
 0x1c4   : > { %4694 = vmatprep.mubr.msk.bf16.mxu0 %vm1011_vm10, %v5727_v32  ;;  %v1384_v62 = vpop.f32.mrf.mxu1 }
 0x1c5   : > { %v1676_v35 = vpop.f32.mrf.mxu0  ;;  %v1385_v54 = vadd.f32 %v1384_v62, %v6137_v60  ;;  %v6245_v21 = vadd.f32 %v4476_v8, %v1393_v23  ;;  %v2960_v62 = vrot.slane %v6877_v57, 2 }
 0x1c6   : > { %v4439_v31 = vpop.f32.mrf.mxu1 }
 0x1c7   : > { %v4477_v36 = vpop.f32.mrf.mxu0  ;;  %v1396_v32 = vadd.f32 %v4439_v31, %v6143_v58  ;;  %v6248_v42 = vadd.f32 %v1676_v35, %v1385_v54  ;;  %v2956_v58 = vrot.slane %v6875_v12, 2  ;;  %v2961_v31 = vrot.slane %v6878_v56, 3  ;;  %v6908_v56 = vld [vmem:[#allocation7_spill] sm:$0xff] }
 0x1c8   : > { %v1387_v11 = vpop.f32.mrf.mxu1 }
 0x1c9   : > { %v1679_v3 = vpop.f32.mrf.mxu0  ;;  %v1388_v1 = vadd.f32 %v1387_v11, %v6148_v63  ;;  %v6253_v10 = vadd.f32 %v4477_v36, %v1396_v32  ;;  %v2958_v8 = vor.u32 %v2957_v0, %v2956_v58  ;;  %v2962_v58 = vor.u32 %v2961_v31, %v2960_v62  ;;  %v6916_v31 = vld [vmem:[#allocation17_spill] sm:$0xff] }
 0x1ca   : > { %v4442_v60 = vpop.f32.mrf.mxu1  ;;  %4657 = vmatmul.mubr.msk.bf16.gmra.mxu1 %vm1011_vm10, %v6904_v25 }
 0x1cb   : > { %v4480_v6 = vpop.f32.mrf.mxu0  ;;  %4695 = vmatmul.mubr.msk.bf16.gmra.mxu0 %vm1011_vm10, %v6902_v39  ;;  %v1409_v17 = vadd.f32 %v4442_v60, %v6033_v20  ;;  %4660 = vmatprep.mubr.msk.bf16.mxu1 %vm1011_vm10, %v6905_v55  ;;  %v6266_v37 = vadd.f32 %v1679_v3, %v1388_v1  ;;  %v3293_v20 = vrot.slane %v6859_v51, 3  ;;  %v6907_v51 = vld [vmem:[#allocation37_spill] sm:$0xff]  ;;  %v2959_v3 = vsel %vm2920_vm5, %v2954_v24, %v2958_v8  ;;  %v6909_v60 = vld [vmem:[#allocation11_spill] sm:$0xff] }
 0x1cc   : > { %4698 = vmatprep.mubr.msk.bf16.mxu0 %vm1011_vm10, %v6903_v14  ;;  %v1400_v28 = vpop.f32.mrf.mxu1  ;;  %v3299_v25 = vrot.slane %v6909_v60, 3  ;;  %v6918_v60 = vld [vmem:[#allocation25_spill] sm:$0xff] }
 0x1cd   : > { %v1692_v63 = vpop.f32.mrf.mxu0  ;;  %v1401_v2 = vadd.f32 %v1400_v28, %v6047_v7  ;;  %v6270_v18 = vadd.f32 %v4480_v6, %v1409_v17  ;;  %v3294_v44 = vsel %vm3277_vm9, %v6906_v5, %v3293_v20  ;;  %v3296_v7 = vsel %vm3277_vm9, %v3293_v20, %v3295_v4 }
 0x1ce   : > { %v4443_v46 = vpop.f32.mrf.mxu1  ;;  %v3297_v6 = vrot.slane %v6862_v19, 3  ;;  %v2963_v20 = vsel %vm2920_vm5, %v2958_v8, %v2962_v58 }
 0x1cf   : > { %v4481_v12 = vpop.f32.mrf.mxu0  ;;  %v1412_v47 = vadd.f32 %v4443_v46, %v6051_v34  ;;  %v6274_v35 = vadd.f32 %v1692_v63, %v1401_v2  ;;  %v2955_v34 = vsel %vm2920_vm5, %v6907_v51, %v2954_v24  ;;  %v6910_v63 = vld [vmem:[#allocation4_spill] sm:$0xff]  ;;  %v6911_v2 = vld [vmem:[#allocation10_spill] sm:$0xff] }
 0x1d0   : > { %v1403_v29 = vpop.f32.mrf.mxu1  ;;  %v3298_v28 = vsel %vm3277_vm9, %v3295_v4, %v3297_v6  ;;  %v3300_v46 = vsel %vm3277_vm9, %v3297_v6, %v3299_v25  ;;  %v6912_v24 = vld [vmem:[#allocation40_spill] sm:$0xff]  ;;  %v6913_v4 = vld [vmem:[#allocation13_spill] sm:$0xff] }
 0x1d1   : > { %v1695_v23 = vpop.f32.mrf.mxu0  ;;  %v1404_v54 = vadd.f32 %v1403_v29, %v6063_v50  ;;  %v6286_v32 = vadd.f32 %v4481_v12, %v1412_v47  ;;  %v2967_v29 = vsel %vm2920_vm5, %v2962_v58, %v6912_v24  ;;  %v6923_v24 = vld [vmem:[#allocation5_spill] sm:$0xff] }
 0x1d2   : > { %v4446_v38 = vpop.f32.mrf.mxu1  ;;  %4661 = vmatmul.mubr.msk.bf16.gmra.mxu1 %vm1011_vm10, %v2955_v34 }
 0x1d3   : > { %v4484_v36 = vpop.f32.mrf.mxu0  ;;  %4699 = vmatmul.mubr.msk.bf16.gmra.mxu0 %vm1011_vm10, %v3294_v44  ;;  %v1425_v57 = vadd.f32 %v4446_v38, %v6067_v16  ;;  %4664 = vmatprep.mubr.msk.bf16.mxu1 %vm1011_vm10, %v2959_v3  ;;  %v6293_v11 = vadd.f32 %v1695_v23, %v1404_v54  ;;  %v6914_v54 = vld [vmem:[#allocation14_spill] sm:$0xff]  ;;  %v3303_v38 = vrot.slane %v6916_v31, 3 }
 0x1d4   : > { %4702 = vmatprep.mubr.msk.bf16.mxu0 %vm1011_vm10, %v3296_v7  ;;  %v1416_v1 = vpop.f32.mrf.mxu1  ;;  %v3301_v8 = vrot.slane %v6914_v54, 3 }
 0x1d5   : > { %v1708_v50 = vpop.f32.mrf.mxu0  ;;  %v1417_v39 = vadd.f32 %v1416_v1, %v6908_v56  ;;  %v6298_v0 = vadd.f32 %v4484_v36, %v1425_v57  ;;  %v6915_v36 = vld [vmem:[#allocation15_spill] sm:$0xff] }
 0x1d6   : > { %v4447_v17 = vpop.f32.mrf.mxu1 }
 0x1d7   : > { %v4485_v14 = vpop.f32.mrf.mxu0  ;;  %v1428_v55 = vadd.f32 %v4447_v17, %v6910_v63  ;;  %v6301_v59 = vadd.f32 %v1708_v50, %v1417_v39  ;;  %v6917_v50 = vld [vmem:[#allocation19_spill] sm:$0xff]  ;;  %v3304_v63 = vsel %vm3277_vm9, %v3301_v8, %v3303_v38 }
 0x1d8   : > { %v1419_v48 = vpop.f32.mrf.mxu1 }
 0x1d9   : > { %v1711_v16 = vpop.f32.mrf.mxu0  ;;  %v1420_v12 = vadd.f32 %v1419_v48, %v6911_v2  ;;  %v6308_v47 = vadd.f32 %v4485_v14, %v1428_v55  ;;  %v3302_v14 = vsel %vm3277_vm9, %v3299_v25, %v3301_v8  ;;  %v6919_v48 = vld [vmem:[#allocation23_spill] sm:$0xff]  ;;  %v6925_v8 = vld [vmem:[#allocation8_spill] sm:$0xff] }
 0x1da   : > { %v4450_v23 = vpop.f32.mrf.mxu1  ;;  %4665 = vmatmul.mubr.msk.bf16.gmra.mxu1 %vm1011_vm10, %v2963_v20  ;;  %v6922_v20 = vld [vmem:[#allocation20_spill] sm:$0xff] }
 0x1db   : > { %v4488_v19 = vpop.f32.mrf.mxu0  ;;  %4703 = vmatmul.mubr.msk.bf16.gmra.mxu0 %vm1011_vm10, %v3298_v28  ;;  %v1441_v5 = vadd.f32 %v4450_v23, %v6913_v4  ;;  %4668 = vmatprep.mubr.msk.bf16.mxu1 %vm1011_vm10, %v2967_v29  ;;  %v6316_v7 = vadd.f32 %v1711_v16, %v1420_v12  ;;  %v6920_v28 = vld [vmem:[#allocation30_spill] sm:$0xff]  ;;  %v3305_v23 = vrot.slane %v6922_v20, 3 }
 0x1dc   : > { %4706 = vmatprep.mubr.msk.bf16.mxu0 %vm1011_vm10, %v3300_v46  ;;  %v1432_v62 = vpop.f32.mrf.mxu1 }
 0x1dd   : > { %v1724_v44 = vpop.f32.mrf.mxu0  ;;  %v1433_v51 = vadd.f32 %v1432_v62, %v6915_v36  ;;  %v6321_v3 = vadd.f32 %v4488_v19, %v1441_v5  ;;  %v6921_v19 = vld [vmem:[#allocation22_spill] sm:$0xff] }
 0x1de   : > { %v4451_v57 = vpop.f32.mrf.mxu1  ;;  %v6924_v5 = vld [vmem:[#allocation26_spill] sm:$0xff] }
 0x1df   : > { %v4489_v34 = vpop.f32.mrf.mxu0  ;;  %v1444_v1 = vadd.f32 %v4451_v57, %v6917_v50  ;;  %v6324_v56 = vadd.f32 %v1724_v44, %v1433_v51  ;;  %v3307_v44 = vrot.slane %v6924_v5, 3  ;;  %v3306_v57 = vsel %vm3277_vm9, %v3303_v38, %v3305_v23  ;;  %v6926_v50 = vld [vmem:[#allocation6_spill] sm:$0xff] }
 0x1e0   : > { %v1435_v39 = vpop.f32.mrf.mxu1 }
 0x1e1   : > { %v1727_v6 = vpop.f32.mrf.mxu0  ;;  %v1436_v58 = vadd.f32 %v1435_v39, %v6918_v60  ;;  %v6330_v55 = vadd.f32 %v4489_v34, %v1444_v1  ;;  %v3308_v39 = vsel %vm3277_vm9, %v3305_v23, %v3307_v44 }
 0x1e2   : > { %v4454_v16 = vpop.f32.mrf.mxu1  ;;  %4669 = vmatmul.mubr.msk.bf16.gmra.mxu1 %vm1011_vm10, %v6919_v48 }
 0x1e3   : > { %v4492_v17 = vpop.f32.mrf.mxu0  ;;  %4707 = vmatmul.mubr.msk.bf16.gmra.mxu0 %vm1011_vm10, %v3302_v14  ;;  %v1457_v2 = vadd.f32 %v4454_v16, %v6920_v28  ;;  %4672 = vmatprep.mubr.msk.bf16.mxu1 %vm1011_vm10, %v6921_v19  ;;  %v6338_v25 = vadd.f32 %v1727_v6, %v1436_v58  ;;  %v6927_v58 = vld [vmem:[#allocation28_spill] sm:$0xff]  ;;  %v6928_v16 = vld [vmem:[#allocation41_spill] sm:$0xff] }
 0x1e4   : > { %4710 = vmatprep.mubr.msk.bf16.mxu0 %vm1011_vm10, %v3304_v63  ;;  %v1448_v46 = vpop.f32.mrf.mxu1 }
 0x1e5   : > { %v1740_v12 = vpop.f32.mrf.mxu0  ;;  %v1449_v29 = vadd.f32 %v1448_v46, %v6923_v24  ;;  %v6343_v62 = vadd.f32 %v4492_v17, %v1457_v2 }
 0x1e6   : > { %v4455_v54 = vpop.f32.mrf.mxu1 }
 0x1e7   : > { %v4493_v4 = vpop.f32.mrf.mxu0  ;;  %v1460_v36 = vadd.f32 %v4455_v54, %v6925_v8  ;;  %v6346_v34 = vadd.f32 %v1740_v12, %v1449_v29  ;;  %v6931_v8 = vld [vmem:[#allocation42_spill] sm:$0xff] }
 0x1e8   : > { %v1451_v31 = vpop.f32.mrf.mxu1 }
 0x1e9   : > { %v1743_v51 = vpop.f32.mrf.mxu0  ;;  %v1452_v1 = vadd.f32 %v1451_v31, %v6926_v50  ;;  %v6352_v14 = vadd.f32 %v4493_v4, %v1460_v36 }
 0x1ea   : > { %v4498_v60 = vpop.f32.mrf.mxu1  ;;  %4673 = vmatmul.mubr.msk.bf16.gmra.mxu1 %vm1011_vm10, %v6927_v58 }
 0x1eb   : > { %v4536_v6 = vpop.f32.mrf.mxu0  ;;  %4711 = vmatmul.mubr.msk.bf16.gmra.mxu0 %vm1011_vm10, %v3306_v57  ;;  %v1988_v17 = vadd.f32 %v4498_v60, %v6160_v13  ;;  %4676 = vmatprep.mubr.msk.bf16.mxu1 %vm1011_vm10, %v6928_v16  ;;  %v6360_v38 = vadd.f32 %v1743_v51, %v1452_v1  ;;  %v6929_v13 = vld [vmem:[#allocation31_spill] sm:$0xff]  ;;  %v6933_v57 = vld [vmem:[#allocation2_spill] sm:$0xff] }
 0x1ec   : > { %4714 = vmatprep.mubr.msk.bf16.mxu0 %vm1011_vm10, %v3308_v39  ;;  %v1843_v48 = vpop.f32.mrf.mxu1  ;;  %v6930_v29 = vrot.slane %v6929_v13, 3 }
 0x1ed   : > { %v2200_v63 = vpop.f32.mrf.mxu0  ;;  %v1986_v28 = vadd.f32 %v1843_v48, %v6163_v27  ;;  %v6363_v12 = vadd.f32 %v4536_v6, %v1988_v17  ;;  %v6934_v48 = vld [vmem:[#allocation43_spill] sm:$0xff] }
 0x1ee   : > { %v4499_v19 = vpop.f32.mrf.mxu1  ;;  %v3310_v4 = vsel %vm3277_vm9, %v3307_v44, %v6930_v29 }
 0x1ef   : > { %v4537_v2 = vpop.f32.mrf.mxu0  ;;  %v1989_v46 = vadd.f32 %v4499_v19, %v6169_v15  ;;  %v6366_v23 = vadd.f32 %v2200_v63, %v1986_v28  ;;  %v6932_v15 = vld [vmem:[#allocation3_spill] sm:$0xff] }
 0x1f0   : > { %v1846_v24 = vpop.f32.mrf.mxu1 }
 0x1f1   : > { %v2203_v20 = vpop.f32.mrf.mxu0  ;;  %v1987_v5 = vadd.f32 %v1846_v24, %v6176_v40  ;;  %v6373_v27 = vadd.f32 %v4537_v2, %v1989_v46 }
 0x1f2   : > { %v4502_v36 = vpop.f32.mrf.mxu1  ;;  %4677 = vmatmul.mubr.msk.bf16.gmra.mxu1 %vm1011_vm10, %v6932_v15 }
 0x1f3   : > { %v4540_v54 = vpop.f32.mrf.mxu0  ;;  %4715 = vmatmul.mubr.msk.bf16.gmra.mxu0 %vm1011_vm10, %v3310_v4  ;;  %v1992_v51 = vadd.f32 %v4502_v36, %v6180_v52  ;;  %4680 = vmatprep.mubr.msk.bf16.mxu1 %vm1011_vm10, %v6933_v57  ;;  %v6382_v44 = vadd.f32 %v2203_v20, %v1987_v5 }
 0x1f4   : > { %4718 = vmatprep.mubr.msk.bf16.mxu0 %vm1011_vm10, %v6931_v8  ;;  %v1859_v40 = vpop.f32.mrf.mxu1 }
 0x1f5   : > { %v2216_v31 = vpop.f32.mrf.mxu0  ;;  %v1990_v50 = vadd.f32 %v1859_v40, %v6184_v41  ;;  %v6385_v6 = vadd.f32 %v4540_v54, %v1992_v51  ;;  %v6935_v41 = vld [vmem:[#allocation44_spill] sm:$0xff] }
 0x1f6   : > { %v4503_v39 = vpop.f32.mrf.mxu1 }
 0x1f7   : > { %v4541_v1 = vpop.f32.mrf.mxu0  ;;  %v1993_v60 = vadd.f32 %v4503_v39, %v6190_v22  ;;  %v6388_v17 = vadd.f32 %v2216_v31, %v1990_v50 }
 0x1f8   : > { %v1862_v63 = vpop.f32.mrf.mxu1 }
 0x1f9   : > { %v2219_v58 = vpop.f32.mrf.mxu0  ;;  %v1991_v52 = vadd.f32 %v1862_v63, %v6198_v45  ;;  %v6393_v28 = vadd.f32 %v4541_v1, %v1993_v60 }
 0x1fa   : > { %v4506_v2 = vpop.f32.mrf.mxu1  ;;  %4681 = vmatmul.mubr.msk.bf16.gmra.mxu1 %vm1011_vm10, %v6935_v41 }
 0x1fb   : > { %v4544_v16 = vpop.f32.mrf.mxu0  ;;  %4719 = vmatmul.mubr.msk.bf16.gmra.mxu0 %vm1011_vm10, %v6934_v48  ;;  %v1996_v19 = vadd.f32 %v4506_v2, %v6203_v61  ;;  %v6398_v22 = vadd.f32 %v2219_v58, %v1991_v52 }
 0x1fc   : > { %v1875_v20 = vpop.f32.mrf.mxu1 }
 0x1fd   : > { %v2232_v46 = vpop.f32.mrf.mxu0  ;;  %v1994_v24 = vadd.f32 %v1875_v20, %v6206_v43  ;;  %v6401_v45 = vadd.f32 %v4544_v16, %v1996_v19 }
 0x1fe   : > { %v4507_v29 = vpop.f32.mrf.mxu1 }
 0x1ff   : > { %v4545_v13 = vpop.f32.mrf.mxu0  ;;  %v1997_v4 = vadd.f32 %v4507_v29, %v6212_v53  ;;  %v6404_v54 = vadd.f32 %v2232_v46, %v1994_v24 }
 0x200   : > { %v1878_v8 = vpop.f32.mrf.mxu1 }
 0x201   : > { %v2235_v5 = vpop.f32.mrf.mxu0  ;;  %v1995_v36 = vadd.f32 %v1878_v8, %v6220_v30  ;;  %v6407_v61 = vadd.f32 %v4545_v13, %v1997_v4 }
 0x202   : > { %v4510_v51 = vpop.f32.mrf.mxu1 }
 0x203   : > { %v4548_v15 = vpop.f32.mrf.mxu0  ;;  %v2000_v31 = vadd.f32 %v4510_v51, %v6223_v26  ;;  %v6410_v43 = vadd.f32 %v2235_v5, %v1995_v36 }
 0x204   : > { %v1891_v40 = vpop.f32.mrf.mxu1 }
 0x205   : > { %v2248_v57 = vpop.f32.mrf.mxu0  ;;  %v1998_v50 = vadd.f32 %v1891_v40, %v6226_v49  ;;  %v6413_v53 = vadd.f32 %v4548_v15, %v2000_v31 }
 0x206   : > { %v4511_v39 = vpop.f32.mrf.mxu1 }
 0x207   : > { %v4549_v1 = vpop.f32.mrf.mxu0  ;;  %v2001_v60 = vadd.f32 %v4511_v39, %v6233_v9  ;;  %v6416_v30 = vadd.f32 %v2248_v57, %v1998_v50 }
 0x208   : > { %v1894_v63 = vpop.f32.mrf.mxu1 }
 0x209   : > { %v2251_v58 = vpop.f32.mrf.mxu0  ;;  %v1999_v52 = vadd.f32 %v1894_v63, %v6242_v33  ;;  %v6419_v26 = vadd.f32 %v4549_v1, %v2001_v60 }
 0x20a   : > { %v4514_v48 = vpop.f32.mrf.mxu1 }
 0x20b   : > { %v4552_v16 = vpop.f32.mrf.mxu0  ;;  %v2004_v2 = vadd.f32 %v4514_v48, %v6245_v21  ;;  %v6422_v49 = vadd.f32 %v2251_v58, %v1999_v52 }
 0x20c   : > { %v1907_v19 = vpop.f32.mrf.mxu1 }
 0x20d   : > { %v2264_v41 = vpop.f32.mrf.mxu0  ;;  %v2002_v46 = vadd.f32 %v1907_v19, %v6248_v42  ;;  %v6425_v9 = vadd.f32 %v4552_v16, %v2004_v2 }
 0x20e   : > { %v4515_v24 = vpop.f32.mrf.mxu1 }
 0x20f   : > { %v4553_v20 = vpop.f32.mrf.mxu0  ;;  %v2005_v13 = vadd.f32 %v4515_v24, %v6253_v10  ;;  %v6428_v33 = vadd.f32 %v2264_v41, %v2002_v46 }
 0x210   : > { %v1910_v4 = vpop.f32.mrf.mxu1 }
 0x211   : > { %v2267_v29 = vpop.f32.mrf.mxu0  ;;  %v2003_v5 = vadd.f32 %v1910_v4, %v6266_v37  ;;  %v6431_v21 = vadd.f32 %v4553_v20, %v2005_v13 }
 0x212   : > { %v4518_v36 = vpop.f32.mrf.mxu1 }
 0x213   : > { %v4556_v8 = vpop.f32.mrf.mxu0  ;;  %v2008_v15 = vadd.f32 %v4518_v36, %v6270_v18  ;;  %v6434_v42 = vadd.f32 %v2267_v29, %v2003_v5 }
 0x214   : > { %v1923_v31 = vpop.f32.mrf.mxu1 }
 0x215   : > { %v2280_v51 = vpop.f32.mrf.mxu0  ;;  %v2006_v57 = vadd.f32 %v1923_v31, %v6274_v35  ;;  %v6437_v10 = vadd.f32 %v4556_v8, %v2008_v15 }
 0x216   : > { %v4519_v50 = vpop.f32.mrf.mxu1 }
 0x217   : > { %v4557_v40 = vpop.f32.mrf.mxu0  ;;  %v2009_v1 = vadd.f32 %v4519_v50, %v6286_v32  ;;  %v6440_v37 = vadd.f32 %v2280_v51, %v2006_v57 }
 0x218   : > { %v1926_v60 = vpop.f32.mrf.mxu1 }
 0x219   : > { %v2283_v39 = vpop.f32.mrf.mxu0  ;;  %v2007_v58 = vadd.f32 %v1926_v60, %v6293_v11  ;;  %v6443_v18 = vadd.f32 %v4557_v40, %v2009_v1 }
 0x21a   : > { %v4522_v52 = vpop.f32.mrf.mxu1 }
 0x21b   : > { %v4560_v63 = vpop.f32.mrf.mxu0  ;;  %v2012_v16 = vadd.f32 %v4522_v52, %v6298_v0  ;;  %v6446_v35 = vadd.f32 %v2283_v39, %v2007_v58 }
 0x21c   : > { %v1939_v2 = vpop.f32.mrf.mxu1 }
 0x21d   : > { %v2296_v48 = vpop.f32.mrf.mxu0  ;;  %v2010_v41 = vadd.f32 %v1939_v2, %v6301_v59  ;;  %v6449_v32 = vadd.f32 %v4560_v63, %v2012_v16 }
 0x21e   : > { %v4523_v46 = vpop.f32.mrf.mxu1 }
 0x21f   : > { %v4561_v19 = vpop.f32.mrf.mxu0  ;;  %v2013_v20 = vadd.f32 %v4523_v46, %v6308_v47  ;;  %v6452_v11 = vadd.f32 %v2296_v48, %v2010_v41 }
 0x220   : > { %v1942_v13 = vpop.f32.mrf.mxu1 }
 0x221   : > { %v2299_v24 = vpop.f32.mrf.mxu0  ;;  %v2011_v29 = vadd.f32 %v1942_v13, %v6316_v7  ;;  %v6455_v0 = vadd.f32 %v4561_v19, %v2013_v20 }
 0x222   : > { %v4526_v5 = vpop.f32.mrf.mxu1 }
 0x223   : > { %v4564_v4 = vpop.f32.mrf.mxu0  ;;  %v2016_v8 = vadd.f32 %v4526_v5, %v6321_v3  ;;  %v6458_v59 = vadd.f32 %v2299_v24, %v2011_v29 }
 0x224   : > { %v1955_v15 = vpop.f32.mrf.mxu1 }
 0x225   : > { %v2312_v36 = vpop.f32.mrf.mxu0  ;;  %v2014_v51 = vadd.f32 %v1955_v15, %v6324_v56  ;;  %v6461_v47 = vadd.f32 %v4564_v4, %v2016_v8 }
 0x226   : > { %v4527_v57 = vpop.f32.mrf.mxu1 }
 0x227   : > { %v4565_v31 = vpop.f32.mrf.mxu0  ;;  %v2017_v40 = vadd.f32 %v4527_v57, %v6330_v55  ;;  %v6464_v7 = vadd.f32 %v2312_v36, %v2014_v51 }
 0x228   : > { %v1958_v1 = vpop.f32.mrf.mxu1 }
 0x229   : > { %v2315_v50 = vpop.f32.mrf.mxu0  ;;  %v2015_v39 = vadd.f32 %v1958_v1, %v6338_v25  ;;  %v6467_v3 = vadd.f32 %v4565_v31, %v2017_v40 }
 0x22a   : > { %v4530_v58 = vpop.f32.mrf.mxu1 }
 0x22b   : > { %v4568_v60 = vpop.f32.mrf.mxu0  ;;  %v2020_v63 = vadd.f32 %v4530_v58, %v6343_v62  ;;  %v6470_v56 = vadd.f32 %v2315_v50, %v2015_v39 }
 0x22c   : > { %v1971_v16 = vpop.f32.mrf.mxu1 }
 0x22d   : > { %v2328_v52 = vpop.f32.mrf.mxu0  ;;  %v2018_v48 = vadd.f32 %v1971_v16, %v6346_v34  ;;  %v6473_v55 = vadd.f32 %v4568_v60, %v2020_v63 }
 0x22e   : > { %v4531_v41 = vpop.f32.mrf.mxu1 }
 0x22f   : > { %v4569_v2 = vpop.f32.mrf.mxu0  ;;  %v2021_v19 = vadd.f32 %v4531_v41, %v6352_v14  ;;  %v6476_v25 = vadd.f32 %v2328_v52, %v2018_v48 }
 0x230   : > { %v1974_v20 = vpop.f32.mrf.mxu1 }
 0x231   : > { %v2331_v46 = vpop.f32.mrf.mxu0  ;;  %v2019_v24 = vadd.f32 %v1974_v20, %v6360_v38  ;;  %v6479_v62 = vadd.f32 %v4569_v2, %v2021_v19 }
 0x232   : > { %v4574_v29 = vpop.f32.mrf.mxu1 }
 0x233   : > { %v4612_v13 = vpop.f32.mrf.mxu0  ;;  %v2654_v4 = vadd.f32 %v4574_v29, %v6363_v12  ;;  %v6482_v34 = vadd.f32 %v2331_v46, %v2019_v24 }
 0x234   : > { %v2509_v8 = vpop.f32.mrf.mxu1 }
 0x235   : > { %v2740_v5 = vpop.f32.mrf.mxu0  ;;  %v2652_v36 = vadd.f32 %v2509_v8, %v6366_v23  ;;  %v6485_v14 = vadd.f32 %v4612_v13, %v2654_v4 }
 0x236   : > { %v4575_v51 = vpop.f32.mrf.mxu1 }
 0x237   : > { %v4613_v15 = vpop.f32.mrf.mxu0  ;;  %v2655_v31 = vadd.f32 %v4575_v51, %v6373_v27  ;;  %v6488_v38 = vadd.f32 %v2740_v5, %v2652_v36 }
 0x238   : > { %v2512_v40 = vpop.f32.mrf.mxu1 }
 0x239   : > { %v2743_v57 = vpop.f32.mrf.mxu0  ;;  %v2653_v50 = vadd.f32 %v2512_v40, %v6382_v44  ;;  %v6491_v12 = vadd.f32 %v4613_v15, %v2655_v31 }
 0x23a   : > { %v4578_v39 = vpop.f32.mrf.mxu1 }
 0x23b   : > { %v4616_v1 = vpop.f32.mrf.mxu0  ;;  %v2658_v60 = vadd.f32 %v4578_v39, %v6385_v6  ;;  %v6494_v23 = vadd.f32 %v2743_v57, %v2653_v50 }
 0x23c   : > { %v2525_v63 = vpop.f32.mrf.mxu1 }
 0x23d   : > { %v2756_v58 = vpop.f32.mrf.mxu0  ;;  %v2656_v52 = vadd.f32 %v2525_v63, %v6388_v17  ;;  %v6497_v27 = vadd.f32 %v4616_v1, %v2658_v60 }
 0x23e   : > { %v4579_v48 = vpop.f32.mrf.mxu1 }
 0x23f   : > { %v4617_v16 = vpop.f32.mrf.mxu0  ;;  %v2659_v2 = vadd.f32 %v4579_v48, %v6393_v28  ;;  %v6500_v44 = vadd.f32 %v2756_v58, %v2656_v52 }
 0x240   : > { %v2528_v19 = vpop.f32.mrf.mxu1 }
 0x241   : > { %v2759_v41 = vpop.f32.mrf.mxu0  ;;  %v2657_v46 = vadd.f32 %v2528_v19, %v6398_v22  ;;  %v6503_v6 = vadd.f32 %v4617_v16, %v2659_v2 }
 0x242   : > { %v4582_v24 = vpop.f32.mrf.mxu1 }
 0x243   : > { %v4620_v20 = vpop.f32.mrf.mxu0  ;;  %v2662_v13 = vadd.f32 %v4582_v24, %v6401_v45  ;;  %v6506_v17 = vadd.f32 %v2759_v41, %v2657_v46 }
 0x244   : > { %v2541_v4 = vpop.f32.mrf.mxu1 }
 0x245   : > { %v2772_v29 = vpop.f32.mrf.mxu0  ;;  %v2660_v5 = vadd.f32 %v2541_v4, %v6404_v54  ;;  %v6509_v28 = vadd.f32 %v4620_v20, %v2662_v13 }
 0x246   : > { %v4583_v36 = vpop.f32.mrf.mxu1 }
 0x247   : > { %v4621_v8 = vpop.f32.mrf.mxu0  ;;  %v2663_v15 = vadd.f32 %v4583_v36, %v6407_v61  ;;  %v6512_v22 = vadd.f32 %v2772_v29, %v2660_v5 }
 0x248   : > { %v2544_v31 = vpop.f32.mrf.mxu1 }
 0x249   : > { %v2775_v51 = vpop.f32.mrf.mxu0  ;;  %v2661_v57 = vadd.f32 %v2544_v31, %v6410_v43  ;;  %v6515_v45 = vadd.f32 %v4621_v8, %v2663_v15 }
 0x24a   : > { %v4586_v50 = vpop.f32.mrf.mxu1 }
 0x24b   : > { %v4624_v40 = vpop.f32.mrf.mxu0  ;;  %v2666_v1 = vadd.f32 %v4586_v50, %v6413_v53  ;;  %v6518_v54 = vadd.f32 %v2775_v51, %v2661_v57 }
 0x24c   : > { %v2557_v60 = vpop.f32.mrf.mxu1 }
 0x24d   : > { %v2788_v39 = vpop.f32.mrf.mxu0  ;;  %v2664_v58 = vadd.f32 %v2557_v60, %v6416_v30  ;;  %v6521_v61 = vadd.f32 %v4624_v40, %v2666_v1 }
 0x24e   : > { %v4587_v52 = vpop.f32.mrf.mxu1 }
 0x24f   : > { %v4625_v63 = vpop.f32.mrf.mxu0  ;;  %v2667_v16 = vadd.f32 %v4587_v52, %v6419_v26  ;;  %v6524_v43 = vadd.f32 %v2788_v39, %v2664_v58 }
 0x250   : > { %v2560_v2 = vpop.f32.mrf.mxu1 }
 0x251   : > { %v2791_v48 = vpop.f32.mrf.mxu0  ;;  %v2665_v41 = vadd.f32 %v2560_v2, %v6422_v49  ;;  %v6527_v53 = vadd.f32 %v4625_v63, %v2667_v16 }
 0x252   : > { %v4590_v46 = vpop.f32.mrf.mxu1 }
 0x253   : > { %v4628_v19 = vpop.f32.mrf.mxu0  ;;  %v2670_v20 = vadd.f32 %v4590_v46, %v6425_v9  ;;  %v6530_v30 = vadd.f32 %v2791_v48, %v2665_v41 }
 0x254   : > { %v2573_v13 = vpop.f32.mrf.mxu1 }
 0x255   : > { %v2804_v24 = vpop.f32.mrf.mxu0  ;;  %v2668_v29 = vadd.f32 %v2573_v13, %v6428_v33  ;;  %v6533_v26 = vadd.f32 %v4628_v19, %v2670_v20 }
 0x256   : > { %v4591_v5 = vpop.f32.mrf.mxu1 }
 0x257   : > { %v4629_v4 = vpop.f32.mrf.mxu0  ;;  %v2671_v8 = vadd.f32 %v4591_v5, %v6431_v21  ;;  %v6536_v49 = vadd.f32 %v2804_v24, %v2668_v29 }
 0x258   : > { %v2576_v15 = vpop.f32.mrf.mxu1 }
 0x259   : > { %v2807_v36 = vpop.f32.mrf.mxu0  ;;  %v2669_v51 = vadd.f32 %v2576_v15, %v6434_v42  ;;  %v6539_v9 = vadd.f32 %v4629_v4, %v2671_v8 }
 0x25a   : > { %v4594_v57 = vpop.f32.mrf.mxu1 }
 0x25b   : > { %v4632_v31 = vpop.f32.mrf.mxu0  ;;  %v2674_v40 = vadd.f32 %v4594_v57, %v6437_v10  ;;  %v6542_v33 = vadd.f32 %v2807_v36, %v2669_v51 }
 0x25c   : > { %v2589_v1 = vpop.f32.mrf.mxu1 }
 0x25d   : > { %v2820_v50 = vpop.f32.mrf.mxu0  ;;  %v2672_v39 = vadd.f32 %v2589_v1, %v6440_v37  ;;  %v6545_v21 = vadd.f32 %v4632_v31, %v2674_v40 }
 0x25e   : > { %v4595_v58 = vpop.f32.mrf.mxu1 }
 0x25f   : > { %v4633_v60 = vpop.f32.mrf.mxu0  ;;  %v2675_v63 = vadd.f32 %v4595_v58, %v6443_v18  ;;  %v6548_v42 = vadd.f32 %v2820_v50, %v2672_v39 }
 0x260   : > { %v2592_v16 = vpop.f32.mrf.mxu1 }
 0x261   : > { %v2823_v52 = vpop.f32.mrf.mxu0  ;;  %v2673_v48 = vadd.f32 %v2592_v16, %v6446_v35  ;;  %v6551_v10 = vadd.f32 %v4633_v60, %v2675_v63 }
 0x262   : > { %v4598_v41 = vpop.f32.mrf.mxu1 }
 0x263   : > { %v4636_v2 = vpop.f32.mrf.mxu0  ;;  %v2678_v19 = vadd.f32 %v4598_v41, %v6449_v32  ;;  %v6554_v37 = vadd.f32 %v2823_v52, %v2673_v48 }
 0x264   : > { %v2605_v20 = vpop.f32.mrf.mxu1 }
 0x265   : > { %v2836_v46 = vpop.f32.mrf.mxu0  ;;  %v2676_v24 = vadd.f32 %v2605_v20, %v6452_v11  ;;  %v6557_v18 = vadd.f32 %v4636_v2, %v2678_v19 }
 0x266   : > { %v4599_v29 = vpop.f32.mrf.mxu1 }
 0x267   : > { %v4637_v13 = vpop.f32.mrf.mxu0  ;;  %v2679_v4 = vadd.f32 %v4599_v29, %v6455_v0  ;;  %v6560_v35 = vadd.f32 %v2836_v46, %v2676_v24 }
 0x268   : > { %v2608_v8 = vpop.f32.mrf.mxu1 }
 0x269   : > { %v2839_v5 = vpop.f32.mrf.mxu0  ;;  %v2677_v36 = vadd.f32 %v2608_v8, %v6458_v59  ;;  %v6563_v32 = vadd.f32 %v4637_v13, %v2679_v4 }
 0x26a   : > { %v4602_v51 = vpop.f32.mrf.mxu1 }
 0x26b   : > { %v4640_v15 = vpop.f32.mrf.mxu0  ;;  %v2682_v31 = vadd.f32 %v4602_v51, %v6461_v47  ;;  %v6566_v11 = vadd.f32 %v2839_v5, %v2677_v36 }
 0x26c   : > { %v2621_v40 = vpop.f32.mrf.mxu1 }
 0x26d   : > { %v2852_v57 = vpop.f32.mrf.mxu0  ;;  %v2680_v50 = vadd.f32 %v2621_v40, %v6464_v7  ;;  %v6569_v0 = vadd.f32 %v4640_v15, %v2682_v31 }
 0x26e   : > { %v4603_v39 = vpop.f32.mrf.mxu1 }
 0x26f   : > { %v4641_v1 = vpop.f32.mrf.mxu0  ;;  %v2683_v60 = vadd.f32 %v4603_v39, %v6467_v3  ;;  %v6572_v59 = vadd.f32 %v2852_v57, %v2680_v50 }
 0x270   : > { %v2624_v63 = vpop.f32.mrf.mxu1 }
 0x271   : > { %v2855_v58 = vpop.f32.mrf.mxu0  ;;  %v2681_v52 = vadd.f32 %v2624_v63, %v6470_v56  ;;  %v6575_v47 = vadd.f32 %v4641_v1, %v2683_v60 }
 0x272   : > { %v4606_v48 = vpop.f32.mrf.mxu1 }
 0x273   : > { %v4644_v16 = vpop.f32.mrf.mxu0  ;;  %v2686_v2 = vadd.f32 %v4606_v48, %v6473_v55  ;;  %v6578_v7 = vadd.f32 %v2855_v58, %v2681_v52 }
 0x274   : > { %v2637_v19 = vpop.f32.mrf.mxu1 }
 0x275   : > { %v2868_v41 = vpop.f32.mrf.mxu0  ;;  %v2684_v46 = vadd.f32 %v2637_v19, %v6476_v25  ;;  %v6581_v20 = vadd.f32 %v4644_v16, %v2686_v2 }
 0x276   : > { %v4607_v24 = vpop.f32.mrf.mxu1 }
 0x277   : > { %v4645_v3 = vpop.f32.mrf.mxu0  ;;  %v2687_v13 = vadd.f32 %v4607_v24, %v6479_v62  ;;  %v6584_v29 = vadd.f32 %v2868_v41, %v2684_v46  ;;  %v6596_v62 = vld [vmem:[%s6754_s5] ss:$0 sm:$0xff] }
 0x278   : > { %v2640_v4 = vpop.f32.mrf.mxu1 }
 0x279   : > { %v2871_v56 = vpop.f32.mrf.mxu0  ;;  %v2685_v5 = vadd.f32 %v2640_v4, %v6482_v34  ;;  %v6587_v8 = vadd.f32 %v4645_v3, %v2687_v13 }
 0x27a   : > { %v4650_v36 = vpop.f32.mrf.mxu1 }
 0x27b   : > { %v4688_v55 = vpop.f32.mrf.mxu0  ;;  %v3242_v15 = vadd.f32 %v4650_v36, %v6485_v14  ;;  %v6590_v25 = vadd.f32 %v2871_v56, %v2685_v5 }
 0x27c   : > { %v3097_v31 = vpop.f32.mrf.mxu1 }
 0x27d   : > { %v3406_v51 = vpop.f32.mrf.mxu0  ;;  %v3551_v57 = vadd.f32 %v4688_v55, %v3242_v15  ;;  %v3240_v40 = vadd.f32 %v3097_v31, %v6488_v38 }
 0x27e   : > { %v4651_v50 = vpop.f32.mrf.mxu1 }
 0x27f   : > { %v4689_v34 = vpop.f32.mrf.mxu0  ;;  %v3594_v1 = vadd.f32 %v6596_v62, %v3551_v57  ;;  %v3549_v39 = vadd.f32 %v3406_v51, %v3240_v40  ;;  %v3243_v14 = vadd.f32 %v4651_v50, %v6491_v12 }
 0x280   : > { %v3100_v58 = vpop.f32.mrf.mxu1 }
 0x281   : > { %v3409_v60 = vpop.f32.mrf.mxu0  ;;  %v4076_v63 = vpack.c.bf16 %v3594_v1, %v3594_v1  ;;  %v3592_v38 = vadd.f32 %v6596_v62, %v3549_v39  ;;  %v3552_v52 = vadd.f32 %v4689_v34, %v3243_v14  ;;  %v3241_v16 = vadd.f32 %v3100_v58, %v6494_v23 }
 0x282   : > { %v4654_v2 = vpop.f32.mrf.mxu1 }
 0x283   : > { %v4692_v48 = vpop.f32.mrf.mxu0  ;;  %3775 = vst.msk [vmem:[%s6604_s22 + $0x8] sm:$0xf] %vm3772_vm0, %v4076_v63  ;;  %v4074_v12 = vpack.c.bf16 %v3592_v38, %v3592_v38  ;;  %v3595_v41 = vadd.f32 %v6596_v62, %v3552_v52  ;;  %v3550_v19 = vadd.f32 %v3409_v60, %v3241_v16  ;;  %v3246_v46 = vadd.f32 %v4654_v2, %v6497_v27 }
 0x284   : > { %v3113_v24 = vpop.f32.mrf.mxu1 }
 0x285   : > { %v3422_v3 = vpop.f32.mrf.mxu0  ;;  %3773 = vst.msk [vmem:[%s6604_s22] sm:$0xf] %vm3772_vm0, %v4074_v12  ;;  %v4077_v13 = vpack.c.bf16 %v3595_v41, %v3595_v41  ;;  %v3593_v56 = vadd.f32 %v6596_v62, %v3550_v19  ;;  %v3555_v23 = vadd.f32 %v4692_v48, %v3246_v46  ;;  %v3244_v4 = vadd.f32 %v3113_v24, %v6500_v44 }
 0x286   : > { %v4655_v55 = vpop.f32.mrf.mxu1 }
 0x287   : > { %v4693_v5 = vpop.f32.mrf.mxu0  ;;  %3776 = vst.msk [vmem:[%s6604_s22 + $0xc] sm:$0xf] %vm3772_vm0, %v4077_v13  ;;  %v4075_v36 = vpack.c.bf16 %v3593_v56, %v3593_v56  ;;  %v3598_v15 = vadd.f32 %v6596_v62, %v3555_v23  ;;  %v3553_v27 = vadd.f32 %v3422_v3, %v3244_v4  ;;  %v3247_v51 = vadd.f32 %v4655_v55, %v6503_v6 }
 0x288   : > { %v3116_v57 = vpop.f32.mrf.mxu1 }
 0x289   : > { %v3425_v31 = vpop.f32.mrf.mxu0  ;;  %3774 = vst.msk [vmem:[%s6604_s22 + $0x4] sm:$0xf] %vm3772_vm0, %v4075_v36  ;;  %v4080_v40 = vpack.c.bf16 %v3598_v15, %v3598_v15  ;;  %v3596_v34 = vadd.f32 %v6596_v62, %v3553_v27  ;;  %v3556_v44 = vadd.f32 %v4693_v5, %v3247_v51  ;;  %v3245_v50 = vadd.f32 %v3116_v57, %v6506_v17 }
 0x28a   : > { %v4658_v39 = vpop.f32.mrf.mxu1 }
 0x28b   : > { %v4696_v1 = vpop.f32.mrf.mxu0  ;;  %3779 = vst.msk [vmem:[%s6604_s22 + $0x18] sm:$0xf] %vm3772_vm0, %v4080_v40  ;;  %v4078_v14 = vpack.c.bf16 %v3596_v34, %v3596_v34  ;;  %v3599_v60 = vadd.f32 %v6596_v62, %v3556_v44  ;;  %v3554_v6 = vadd.f32 %v3425_v31, %v3245_v50  ;;  %v3250_v58 = vadd.f32 %v4658_v39, %v6509_v28 }
 0x28c   : > { %v3129_v38 = vpop.f32.mrf.mxu1 }
 0x28d   : > { %v3438_v63 = vpop.f32.mrf.mxu0  ;;  %3777 = vst.msk [vmem:[%s6604_s22 + $0x10] sm:$0xf] %vm3772_vm0, %v4078_v14  ;;  %v4081_v52 = vpack.c.bf16 %v3599_v60, %v3599_v60  ;;  %v3597_v16 = vadd.f32 %v6596_v62, %v3554_v6  ;;  %v3559_v17 = vadd.f32 %v4696_v1, %v3250_v58  ;;  %v3248_v48 = vadd.f32 %v3129_v38, %v6512_v22 }
 0x28e   : > { %v4659_v12 = vpop.f32.mrf.mxu1 }
 0x28f   : > { %v4697_v2 = vpop.f32.mrf.mxu0  ;;  %3780 = vst.msk [vmem:[%s6604_s22 + $0x1c] sm:$0xf] %vm3772_vm0, %v4081_v52  ;;  %v4079_v41 = vpack.c.bf16 %v3597_v16, %v3597_v16  ;;  %v3602_v19 = vadd.f32 %v6596_v62, %v3559_v17  ;;  %v3557_v28 = vadd.f32 %v3438_v63, %v3248_v48  ;;  %v3251_v46 = vadd.f32 %v4659_v12, %v6515_v45 }
 0x290   : > { %v3132_v24 = vpop.f32.mrf.mxu1 }
 0x291   : > { %v3441_v3 = vpop.f32.mrf.mxu0  ;;  %3778 = vst.msk [vmem:[%s6604_s22 + $0x14] sm:$0xf] %vm3772_vm0, %v4079_v41  ;;  %v4084_v13 = vpack.c.bf16 %v3602_v19, %v3602_v19  ;;  %v3600_v56 = vadd.f32 %v6596_v62, %v3557_v28  ;;  %v3560_v22 = vadd.f32 %v4697_v2, %v3251_v46  ;;  %v3249_v23 = vadd.f32 %v3132_v24, %v6518_v54 }
 0x292   : > { %v4662_v5 = vpop.f32.mrf.mxu1 }
 0x293   : > { %v4700_v4 = vpop.f32.mrf.mxu0  ;;  %3783 = vst.msk [vmem:[%s6604_s22 + $0x28] sm:$0xf] %vm3772_vm0, %v4084_v13  ;;  %v4082_v55 = vpack.c.bf16 %v3600_v56, %v3600_v56  ;;  %v3603_v36 = vadd.f32 %v6596_v62, %v3560_v22  ;;  %v3558_v45 = vadd.f32 %v3441_v3, %v3249_v23  ;;  %v3254_v15 = vadd.f32 %v4662_v5, %v6521_v61 }
 0x294   : > { %v3145_v51 = vpop.f32.mrf.mxu1 }
 0x295   : > { %v3454_v27 = vpop.f32.mrf.mxu0  ;;  %3781 = vst.msk [vmem:[%s6604_s22 + $0x20] sm:$0xf] %vm3772_vm0, %v4082_v55  ;;  %v4085_v31 = vpack.c.bf16 %v3603_v36, %v3603_v36  ;;  %v3601_v57 = vadd.f32 %v6596_v62, %v3558_v45  ;;  %v3563_v54 = vadd.f32 %v4700_v4, %v3254_v15  ;;  %v3252_v40 = vadd.f32 %v3145_v51, %v6524_v43 }
 0x296   : > { %v4663_v44 = vpop.f32.mrf.mxu1 }
 0x297   : > { %v4701_v34 = vpop.f32.mrf.mxu0  ;;  %3784 = vst.msk [vmem:[%s6604_s22 + $0x2c] sm:$0xf] %vm3772_vm0, %v4085_v31  ;;  %v4083_v50 = vpack.c.bf16 %v3601_v57, %v3601_v57  ;;  %v3606_v1 = vadd.f32 %v6596_v62, %v3563_v54  ;;  %v3561_v61 = vadd.f32 %v3454_v27, %v3252_v40  ;;  %v3255_v39 = vadd.f32 %v4663_v44, %v6527_v53 }
 0x298   : > { %v3148_v60 = vpop.f32.mrf.mxu1 }
 0x299   : > { %v3457_v14 = vpop.f32.mrf.mxu0  ;;  %3782 = vst.msk [vmem:[%s6604_s22 + $0x24] sm:$0xf] %vm3772_vm0, %v4083_v50  ;;  %v4088_v6 = vpack.c.bf16 %v3606_v1, %v3606_v1  ;;  %v3604_v58 = vadd.f32 %v6596_v62, %v3561_v61  ;;  %v3564_v43 = vadd.f32 %v4701_v34, %v3255_v39  ;;  %v3253_v63 = vadd.f32 %v3148_v60, %v6530_v30 }
 0x29a   : > { %v4666_v52 = vpop.f32.mrf.mxu1 }
 0x29b   : > { %v4704_v38 = vpop.f32.mrf.mxu0  ;;  %3787 = vst.msk [vmem:[%s6604_s22 + $0x38] sm:$0xf] %vm3772_vm0, %v4088_v6  ;;  %v4086_v16 = vpack.c.bf16 %v3604_v58, %v3604_v58  ;;  %v3607_v17 = vadd.f32 %v6596_v62, %v3564_v43  ;;  %v3562_v53 = vadd.f32 %v3457_v14, %v3253_v63  ;;  %v3258_v48 = vadd.f32 %v4666_v52, %v6533_v26 }
 0x29c   : > { %v3161_v12 = vpop.f32.mrf.mxu1 }
 0x29d   : > { %v3470_v2 = vpop.f32.mrf.mxu0  ;;  %3785 = vst.msk [vmem:[%s6604_s22 + $0x30] sm:$0xf] %vm3772_vm0, %v4086_v16  ;;  %v4089_v41 = vpack.c.bf16 %v3607_v17, %v3607_v17  ;;  %v3605_v19 = vadd.f32 %v6596_v62, %v3562_v53  ;;  %v3567_v30 = vadd.f32 %v4704_v38, %v3258_v48  ;;  %v3256_v28 = vadd.f32 %v3161_v12, %v6536_v49 }
 0x29e   : > { %v4667_v3 = vpop.f32.mrf.mxu1 }
 0x29f   : > { %v4705_v46 = vpop.f32.mrf.mxu0  ;;  %3788 = vst.msk [vmem:[%s6604_s22 + $0x3c] sm:$0xf] %vm3772_vm0, %v4089_v41  ;;  %v4087_v24 = vpack.c.bf16 %v3605_v19, %v3605_v19  ;;  %v3610_v13 = vadd.f32 %v6596_v62, %v3567_v30  ;;  %v3565_v26 = vadd.f32 %v3470_v2, %v3256_v28  ;;  %v3259_v56 = vadd.f32 %v4667_v3, %v6539_v9 }
 0x2a0   : > { %v3164_v23 = vpop.f32.mrf.mxu1 }
 0x2a1   : > { %v3473_v22 = vpop.f32.mrf.mxu0  ;;  %3786 = vst.msk [vmem:[%s6604_s22 + $0x34] sm:$0xf] %vm3772_vm0, %v4087_v24  ;;  %v4092_v4 = vpack.c.bf16 %v3610_v13, %v3610_v13  ;;  %v3608_v5 = vadd.f32 %v6596_v62, %v3565_v26  ;;  %v3568_v49 = vadd.f32 %v4705_v46, %v3259_v56  ;;  %v3257_v55 = vadd.f32 %v3164_v23, %v6542_v33 }
 0x2a2   : > { %v4670_v45 = vpop.f32.mrf.mxu1 }
 0x2a3   : > { %v4708_v36 = vpop.f32.mrf.mxu0  ;;  %3791 = vst.msk [vmem:[%s6604_s22 + $0x48] sm:$0xf] %vm3772_vm0, %v4092_v4  ;;  %v4090_v15 = vpack.c.bf16 %v3608_v5, %v3608_v5  ;;  %v3611_v27 = vadd.f32 %v6596_v62, %v3568_v49  ;;  %v3566_v9 = vadd.f32 %v3473_v22, %v3257_v55  ;;  %v3262_v51 = vadd.f32 %v4670_v45, %v6545_v21 }
 0x2a4   : > { %v3177_v57 = vpop.f32.mrf.mxu1 }
 0x2a5   : > { %v3486_v31 = vpop.f32.mrf.mxu0  ;;  %3789 = vst.msk [vmem:[%s6604_s22 + $0x40] sm:$0xf] %vm3772_vm0, %v4090_v15  ;;  %v4093_v54 = vpack.c.bf16 %v3611_v27, %v3611_v27  ;;  %v3609_v40 = vadd.f32 %v6596_v62, %v3566_v9  ;;  %v3571_v33 = vadd.f32 %v4708_v36, %v3262_v51  ;;  %v3260_v34 = vadd.f32 %v3177_v57, %v6548_v42 }
 0x2a6   : > { %v4671_v50 = vpop.f32.mrf.mxu1 }
 0x2a7   : > { %v4709_v44 = vpop.f32.mrf.mxu0  ;;  %3792 = vst.msk [vmem:[%s6604_s22 + $0x4c] sm:$0xf] %vm3772_vm0, %v4093_v54  ;;  %v4091_v1 = vpack.c.bf16 %v3609_v40, %v3609_v40  ;;  %v3614_v61 = vadd.f32 %v6596_v62, %v3571_v33  ;;  %v3569_v21 = vadd.f32 %v3486_v31, %v3260_v34  ;;  %v3263_v39 = vadd.f32 %v4671_v50, %v6551_v10 }
 0x2a8   : > { %v3180_v60 = vpop.f32.mrf.mxu1 }
 0x2a9   : > { %v3489_v14 = vpop.f32.mrf.mxu0  ;;  %3790 = vst.msk [vmem:[%s6604_s22 + $0x44] sm:$0xf] %vm3772_vm0, %v4091_v1  ;;  %v4096_v6 = vpack.c.bf16 %v3614_v61, %v3614_v61  ;;  %v3612_v58 = vadd.f32 %v6596_v62, %v3569_v21  ;;  %v3572_v42 = vadd.f32 %v4709_v44, %v3263_v39  ;;  %v3261_v43 = vadd.f32 %v3180_v60, %v6554_v37 }
 0x2aa   : > { %v4674_v38 = vpop.f32.mrf.mxu1 }
 0x2ab   : > { %v4712_v63 = vpop.f32.mrf.mxu0  ;;  %3795 = vst.msk [vmem:[%s6604_s22 + $0x58] sm:$0xf] %vm3772_vm0, %v4096_v6  ;;  %v4094_v52 = vpack.c.bf16 %v3612_v58, %v3612_v58  ;;  %v3615_v16 = vadd.f32 %v6596_v62, %v3572_v42  ;;  %v3570_v10 = vadd.f32 %v3489_v14, %v3261_v43  ;;  %v3266_v17 = vadd.f32 %v4674_v38, %v6557_v18 }
 0x2ac   : > { %v3193_v48 = vpop.f32.mrf.mxu1 }
 0x2ad   : > { %v3502_v53 = vpop.f32.mrf.mxu0  ;;  %3793 = vst.msk [vmem:[%s6604_s22 + $0x50] sm:$0xf] %vm3772_vm0, %v4094_v52  ;;  %v4097_v2 = vpack.c.bf16 %v3615_v16, %v3615_v16  ;;  %v3613_v12 = vadd.f32 %v6596_v62, %v3570_v10  ;;  %v3575_v37 = vadd.f32 %v4712_v63, %v3266_v17  ;;  %v3264_v41 = vadd.f32 %v3193_v48, %v6560_v35 }
 0x2ae   : > { %v4675_v30 = vpop.f32.mrf.mxu1 }
 0x2af   : > { %v4713_v19 = vpop.f32.mrf.mxu0  ;;  %3796 = vst.msk [vmem:[%s6604_s22 + $0x5c] sm:$0xf] %vm3772_vm0, %v4097_v2  ;;  %v4095_v28 = vpack.c.bf16 %v3613_v12, %v3613_v12  ;;  %v3618_v46 = vadd.f32 %v6596_v62, %v3575_v37  ;;  %v3573_v18 = vadd.f32 %v3502_v53, %v3264_v41  ;;  %v3267_v3 = vadd.f32 %v4675_v30, %v6563_v32 }
 0x2b0   : > { %v3196_v13 = vpop.f32.mrf.mxu1 }
 0x2b1   : > { %v3505_v24 = vpop.f32.mrf.mxu0  ;;  %3794 = vst.msk [vmem:[%s6604_s22 + $0x54] sm:$0xf] %vm3772_vm0, %v4095_v28  ;;  %v4100_v26 = vpack.c.bf16 %v3618_v46, %v3618_v46  ;;  %v3616_v56 = vadd.f32 %v6596_v62, %v3573_v18  ;;  %v3576_v35 = vadd.f32 %v4713_v19, %v3267_v3  ;;  %v3265_v22 = vadd.f32 %v3196_v13, %v6566_v11 }
 0x2b2   : > { %v4678_v4 = vpop.f32.mrf.mxu1 }
 0x2b3   : > { %v4716_v23 = vpop.f32.mrf.mxu0  ;;  %3799 = vst.msk [vmem:[%s6604_s22 + $0x68] sm:$0xf] %vm3772_vm0, %v4100_v26  ;;  %v4098_v5 = vpack.c.bf16 %v3616_v56, %v3616_v56  ;;  %v3619_v49 = vadd.f32 %v6596_v62, %v3576_v35  ;;  %v3574_v32 = vadd.f32 %v3505_v24, %v3265_v22  ;;  %v3270_v55 = vadd.f32 %v4678_v4, %v6569_v0 }
 0x2b4   : > { %v3209_v45 = vpop.f32.mrf.mxu1 }
 0x2b5   : > { %v3518_v36 = vpop.f32.mrf.mxu0  ;;  %3797 = vst.msk [vmem:[%s6604_s22 + $0x60] sm:$0xf] %vm3772_vm0, %v4098_v5  ;;  %v4101_v15 = vpack.c.bf16 %v3619_v49, %v3619_v49  ;;  %v3617_v27 = vadd.f32 %v6596_v62, %v3574_v32  ;;  %v3579_v11 = vadd.f32 %v4716_v23, %v3270_v55  ;;  %v3268_v9 = vadd.f32 %v3209_v45, %v6572_v59 }
 0x2b6   : > { %v4679_v31 = vpop.f32.mrf.mxu1 }
 0x2b7   : > { %v4717_v51 = vpop.f32.mrf.mxu0  ;;  %3800 = vst.msk [vmem:[%s6604_s22 + $0x6c] sm:$0xf] %vm3772_vm0, %v4101_v15  ;;  %v4099_v57 = vpack.c.bf16 %v3617_v27, %v3617_v27  ;;  %v3622_v54 = vadd.f32 %v6596_v62, %v3579_v11  ;;  %v3577_v0 = vadd.f32 %v3518_v36, %v3268_v9  ;;  %v3271_v40 = vadd.f32 %v4679_v31, %v6575_v47 }
 0x2b8   : > { %v3212_v34 = vpop.f32.mrf.mxu1 }
 0x2b9   : > { %v3521_v33 = vpop.f32.mrf.mxu0  ;;  %3798 = vst.msk [vmem:[%s6604_s22 + $0x64] sm:$0xf] %vm3772_vm0, %v4099_v57  ;;  %v4104_v44 = vpack.c.bf16 %v3622_v54, %v3622_v54  ;;  %v3620_v50 = vadd.f32 %v6596_v62, %v3577_v0  ;;  %v3580_v59 = vadd.f32 %v4717_v51, %v3271_v40  ;;  %v3269_v1 = vadd.f32 %v3212_v34, %v6578_v7 }
 0x2ba   : > { %v4682_v21 = vpop.f32.mrf.mxu1 }
 0x2bb   : > { %v4720_v61 = vpop.f32.mrf.mxu0  ;;  %3803 = vst.msk [vmem:[%s6604_s22 + $0x78] sm:$0xf] %vm3772_vm0, %v4104_v44  ;;  %v4102_v39 = vpack.c.bf16 %v3620_v50, %v3620_v50  ;;  %v3623_v14 = vadd.f32 %v6596_v62, %v3580_v59  ;;  %v3578_v47 = vadd.f32 %v3521_v33, %v3269_v1  ;;  %v3274_v60 = vadd.f32 %v4682_v21, %v6581_v20 }
 0x2bc   : > { %v3225_v58 = vpop.f32.mrf.mxu1 }
 0x2bd   : > { %v3534_v6 = vpop.f32.mrf.mxu0  ;;  %3801 = vst.msk [vmem:[%s6604_s22 + $0x70] sm:$0xf] %vm3772_vm0, %v4102_v39  ;;  %v4105_v42 = vpack.c.bf16 %v3623_v14, %v3623_v14  ;;  %v3621_v43 = vadd.f32 %v6596_v62, %v3578_v47  ;;  %v3583_v7 = vadd.f32 %v4720_v61, %v3274_v60  ;;  %v3272_v63 = vadd.f32 %v3225_v58, %v6584_v29 }
 0x2be   : > { %v4683_v52 = vpop.f32.mrf.mxu1 }
 0x2bf   : > { %v4721_v38 = vpop.f32.mrf.mxu0  ;;  %3804 = vst.msk [vmem:[%s6604_s22 + $0x7c] sm:$0xf] %vm3772_vm0, %v4105_v42  ;;  %v4103_v16 = vpack.c.bf16 %v3621_v43, %v3621_v43  ;;  %v3626_v20 = vadd.f32 %v6596_v62, %v3583_v7  ;;  %v3581_v10 = vadd.f32 %v3534_v6, %v3272_v63  ;;  %v3275_v17 = vadd.f32 %v4683_v52, %v6587_v8 }
 0x2c0   : > { %v3228_v53 = vpop.f32.mrf.mxu1 }
 0x2c1   : > { %3802 = vst.msk [vmem:[%s6604_s22 + $0x74] sm:$0xf] %vm3772_vm0, %v4103_v16  ;;  %v4108_v48 = vpack.c.bf16 %v3626_v20, %v3626_v20  ;;  %v3624_v2 = vadd.f32 %v6596_v62, %v3581_v10  ;;  %v3584_v29 = vadd.f32 %v4721_v38, %v3275_v17  ;;  %v3273_v12 = vadd.f32 %v3228_v53, %v6590_v25  ;;  %v3537_v37 = vpop.f32.mrf.mxu0 }
 0x2c3   : > { %3807 = vst.msk [vmem:[%s6604_s22 + $0x88] sm:$0xf] %vm3772_vm0, %v4108_v48  ;;  %v4106_v41 = vpack.c.bf16 %v3624_v2, %v3624_v2  ;;  %v3627_v19 = vadd.f32 %v6596_v62, %v3584_v29  ;;  %v3582_v30 = vadd.f32 %v3537_v37, %v3273_v12 }
 0x2c5   : > { %3805 = vst.msk [vmem:[%s6604_s22 + $0x80] sm:$0xf] %vm3772_vm0, %v4106_v41  ;;  %v4109_v8 = vpack.c.bf16 %v3627_v19, %v3627_v19  ;;  %v3625_v28 = vadd.f32 %v6596_v62, %v3582_v30 }
 0x2c7   : > { %3808 = vst.msk [vmem:[%s6604_s22 + $0x8c] sm:$0xf] %vm3772_vm0, %v4109_v8  ;;  %v4107_v46 = vpack.c.bf16 %v3625_v28, %v3625_v28 }
 0x2c9   : > { %3806 = vst.msk [vmem:[%s6604_s22 + $0x84] sm:$0xf] %vm3772_vm0, %v4107_v46 }
 0x2ca PF: > { %s16_s21 = sadd.s32 1, %s4753_s21  }
 0x2cb   : > { %p13_p4 = scmp.ge.s32.totalorder %s16_s21, 4  }
 0x2cd   :  { %15 = sbr.rel (!%p13_p4) target bundleno = 1 (0x1), region = 74 }

</bundles_post_ra>
